<compile_context>
chip_gen: v7x
topology: tpu7x:2x2x1
jax: 0.10.0
libtpu: 0.0.40
codegen_flags: <defaults>
</compile_context>

<pallas_src>
import functools
import math

import jax
import jax.numpy as jnp
from jax.experimental import pallas as pl
from jax.experimental.pallas import tpu as pltpu


# ---------------------------------------------------------------------------
# Wrapper-side layout plumbing (no hot-path compute, ~2x activation bytes)
# ---------------------------------------------------------------------------
def _pad_split_planes(x):
    """Zero-pad H/W by 1 and pre-slice the 8 (row-parity r, col-parity s,
    col-tap b) planes of a (B, C, H, W) activation.

    Plane p = 4*r + 2*s + b has per-image shape (C, (H/2+1)*(W/2)), flattened
    row-major over (row, col).  With this layout every tap (di, dj) = (2a+r,
    2b+s) of the 4x4 / stride-2 convolution is a CONTIGUOUS window of
    (H/2)*(W/2) spatial positions starting at lane offset a*(W/2), so the
    kernel never gathers or re-shapes data.
    """
    B, C, H, W = map(int, x.shape)
    Ho, Wo = H // 2, W // 2
    xp = jnp.pad(x, ((0, 0), (0, 0), (1, 1), (1, 1)))      # Conv2d zero padding
    planes = []
    for r in (0, 1):
        for s in (0, 1):
            par = xp[:, :, r::2, s::2]                     # (B, C, Ho+1, Wo+1)
            for b in (0, 1):
                planes.append(par[:, :, :, b:b + Wo])      # (B, C, Ho+1, Wo)
    xq = jnp.stack(planes, axis=1)                         # (B, 8, C, Ho+1, Wo)
    return xq.reshape(B * 8, C, (Ho + 1) * Wo)


# ---------------------------------------------------------------------------
# In-kernel helpers
# ---------------------------------------------------------------------------
def _accumulate_conv_taps(xq_ref, w_ref, *, Wo, rows, Cout):
    """Conv2d(k=4, s=2, p=1) for ONE image as 16 accumulated MXU matmuls.

    xq_ref: (8, Cin, (Ho+1)*Wo)  bf16 pre-sliced planes (see _pad_split_planes)
    w_ref : (16, Cout, Cin)      bf16, tap index t = 4*di + dj
    returns (Cout, Ho*Wo) float32
    """
    acc = jnp.zeros((Cout, rows), jnp.float32)
    for r in (0, 1):
        for s in (0, 1):
            for b in (0, 1):
                plane = xq_ref[4 * r + 2 * s + b]           # (Cin, (Ho+1)*Wo)
                for a in (0, 1):
                    # tap (di, dj) = (2a + r, 2b + s)
                    win = plane[:, a * Wo:a * Wo + rows]    # (Cin, Ho*Wo)
                    t = 4 * (2 * a + r) + (2 * b + s)
                    acc = acc + jnp.dot(w_ref[t], win,
                                        preferred_element_type=jnp.float32)
    return acc


def _instance_norm_lrelu(y, *, norm, negative_slope, eps=1e-5):
    """y: (Cout, Ho*Wo) f32 for one image.  InstanceNorm2d(affine=False):
    per-channel mean / biased variance over the spatial axis, eps=1e-5
    (PyTorch default), then LeakyReLU(negative_slope).  Kept in f32 (v5e)."""
    if norm == "in":
        mu = jnp.mean(y, axis=1, keepdims=True)
        var = jnp.mean(jnp.square(y - mu), axis=1, keepdims=True)
        y = (y - mu) * jax.lax.rsqrt(var + eps)
    return jnp.where(y > 0, y, negative_slope * y)


# ---------------------------------------------------------------------------
# Pallas kernels
# ---------------------------------------------------------------------------
def _conv_block_kernel(xq_ref, w_ref, b_ref, o_ref, *, Wo, rows, Cout,
                       norm, negative_slope):
    """Fused Conv(4,2,1) + bias [+ InstanceNorm] + LeakyReLU for one image."""
    y = _accumulate_conv_taps(xq_ref, w_ref, Wo=Wo, rows=rows, Cout=Cout)
    y = y + b_ref[...]                     # (Cout, 1) broadcast over spatial lanes
    y = _instance_norm_lrelu(y, norm=norm, negative_slope=negative_slope)
    o_ref[...] = y.astype(o_ref.dtype)     # lane-dense (Cout, Ho*Wo) store


def _conv_head_kernel(*refs, Wo, rows, Cout, norm, negative_slope, vae_like):
    """Last conv block fused with AvgPool2d(8) + flatten + fc (+ fcVar)."""
    if vae_like:
        (xq_ref, w_ref, b_ref, fcw_ref, fcb_ref,
         fvw_ref, fvb_ref, o_ref, ov_ref) = refs
    else:
        xq_ref, w_ref, b_ref, fcw_ref, fcb_ref, o_ref = refs

    y = _accumulate_conv_taps(xq_ref, w_ref, Wo=Wo, rows=rows, Cout=Cout)
    y = y + b_ref[...]
    y = _instance_norm_lrelu(y, norm=norm, negative_slope=negative_slope)
    # AvgPool2d(8) over the 8x8 final map == global spatial mean; view(B,-1)
    # then collapses the 1x1 map, so the flat features are just `pooled`.
    pooled = jnp.mean(y, axis=1, keepdims=True)            # (Cout, 1) f32
    o_ref[0] = (jnp.dot(fcw_ref[...], pooled,
                        preferred_element_type=jnp.float32) + fcb_ref[...])
    if vae_like:
        ov_ref[0] = (jnp.dot(fvw_ref[...], pooled,
                             preferred_element_type=jnp.float32) + fvb_ref[...])


# ---------------------------------------------------------------------------
# pallas_call wrappers
# ---------------------------------------------------------------------------
def conv4x4s2_block(x, w, b, *, norm, negative_slope):
    """Fused Conv2d(k=4,s=2,p=1) [+ InstanceNorm] + LeakyReLU.
    x: (B, Cin, H, W); w: (Cout, Cin, 4, 4) PyTorch layout; b: (Cout,).
    Returns (B, Cout, H//2, W//2) bfloat16."""
    B, Cin, H, W = map(int, x.shape)
    assert H % 2 == 0 and W % 2 == 0
    Cout = int(w.shape[0])
    Ho, Wo = H // 2, W // 2
    rows = Ho * Wo
    ncols = (Ho + 1) * Wo

    xq = _pad_split_planes(x.astype(jnp.bfloat16))          # (B*8, Cin, ncols)
    w_k = jnp.transpose(w, (2, 3, 0, 1)).reshape(16, Cout, Cin).astype(jnp.bfloat16)
    b_k = b.reshape(Cout, 1).astype(jnp.float32)

    kernel = functools.partial(_conv_block_kernel, Wo=Wo, rows=rows, Cout=Cout,
                               norm=norm, negative_slope=negative_slope)
    out = pl.pallas_call(
        kernel,
        out_shape=jax.ShapeDtypeStruct((B * Cout, rows), jnp.bfloat16),
        grid=(B,),
        in_specs=[
            pl.BlockSpec((8, Cin, ncols), lambda i: (i, 0, 0)),
            pl.BlockSpec((16, Cout, Cin), lambda i: (0, 0, 0)),
            pl.BlockSpec((Cout, 1), lambda i: (0, 0)),
        ],
        out_specs=pl.BlockSpec((Cout, rows), lambda i: (i, 0)),
        compiler_params=pltpu.CompilerParams(
            dimension_semantics=("parallel",)),
    )(xq, w_k, b_k)
    return out.reshape(B, Cout, Ho, Wo)


def conv4x4s2_head(x, w, b, fc_w, fc_b, fcv_w, fcv_b, *, norm, negative_slope):
    """Last conv block + AvgPool2d(8) + flatten + Linear (+ Linear for fcVar)."""
    B, Cin, H, W = map(int, x.shape)
    Cout = int(w.shape[0])
    Ho, Wo = H // 2, W // 2
    rows = Ho * Wo
    ncols = (Ho + 1) * Wo
    assert Ho == 8 and Wo == 8, (
        "E_NLayers applies AvgPool2d(8) then Linear(ndf*nf_mult, output_nc); the "
        f"final conv map must be exactly 8x8 (got {Ho}x{Wo}); use input spatial "
        "= 8 * 2**n_layers.")
    nz = int(fc_w.shape[0])
    vae_like = fcv_w is not None

    xq = _pad_split_planes(x.astype(jnp.bfloat16))
    w_k = jnp.transpose(w, (2, 3, 0, 1)).reshape(16, Cout, Cin).astype(jnp.bfloat16)
    b_k = b.reshape(Cout, 1).astype(jnp.float32)
    fcw_k = fc_w.astype(jnp.float32)                        # (nz, Cout)
    fcb_k = fc_b.reshape(nz, 1).astype(jnp.float32)

    args = [xq, w_k, b_k, fcw_k, fcb_k]
    in_specs = [
        pl.BlockSpec((8, Cin, ncols), lambda i: (i, 0, 0)),
        pl.BlockSpec((16, Cout, Cin), lambda i: (0, 0, 0)),
        pl.BlockSpec((Cout, 1), lambda i: (0, 0)),
        pl.BlockSpec((nz, Cout), lambda i: (0, 0)),
        pl.BlockSpec((nz, 1), lambda i: (0, 0)),
    ]
    out_shape = [jax.ShapeDtypeStruct((B, nz, 1), jnp.float32)]
    out_specs = [pl.BlockSpec((1, nz, 1), lambda i: (i, 0, 0))]
    if vae_like:
        args += [fcv_w.astype(jnp.float32),
                 fcv_b.reshape(nz, 1).astype(jnp.float32)]
        in_specs += [pl.BlockSpec((nz, Cout), lambda i: (0, 0)),
                     pl.BlockSpec((nz, 1), lambda i: (0, 0))]
        out_shape.append(jax.ShapeDtypeStruct((B, nz, 1), jnp.float32))
        out_specs.append(pl.BlockSpec((1, nz, 1), lambda i: (i, 0, 0)))

    kernel = functools.partial(_conv_head_kernel, Wo=Wo, rows=rows, Cout=Cout,
                               norm=norm, negative_slope=negative_slope,
                               vae_like=vae_like)
    outs = pl.pallas_call(
        kernel,
        out_shape=tuple(out_shape),
        grid=(B,),
        in_specs=in_specs,
        out_specs=tuple(out_specs),
        compiler_params=pltpu.CompilerParams(
            dimension_semantics=("parallel",)),
    )(*args)
    if vae_like:
        return outs[0].reshape(B, nz), outs[1].reshape(B, nz)
    return outs[0].reshape(B, nz)


# ---------------------------------------------------------------------------
# E_NLayers forward (Pallas) and parameter init
# ---------------------------------------------------------------------------
def e_nlayers_forward(x_nchw, params, *, norm="in", negative_slope=0.2,
                      vae_like=True):
    """E_NLayers.forward: [Conv(4,2,1)+LReLU] + (n_layers-1) x
    [Conv(4,2,1)+IN+LReLU] + AvgPool2d(8) + flatten + fc (+ fcVar)."""
    convs = params["convs"]
    n = len(convs)
    h = x_nchw
    for li in range(n - 1):
        p = convs[li]
        h = conv4x4s2_block(h, p["w"], p["b"],
                            norm=("none" if li == 0 else norm),
                            negative_slope=negative_slope)
    p = convs[-1]
    fcv = params["fcVar"] if vae_like else None
    return conv4x4s2_head(
        h, p["w"], p["b"], params["fc"]["w"], params["fc"]["b"],
        fcv["w"] if vae_like else None, fcv["b"] if vae_like else None,
        norm=(norm if n > 1 else "none"), negative_slope=negative_slope)


def init_e_nlayers_params(key, *, input_nc, output_nc, ndf, n_layers, vae_like):
    """Deterministic synthetic weights with the exact shapes of the PyTorch module."""
    def uniform(k, shape, fan_in):
        s = 1.0 / math.sqrt(float(fan_in))
        return jax.random.uniform(k, shape, jnp.float32, minval=-s, maxval=s)

    chans = [(input_nc, ndf)]
    nf_mult = 1
    for n in range(1, n_layers):
        nf_mult_prev, nf_mult = nf_mult, min(2 ** n, 4)
        chans.append((ndf * nf_mult_prev, ndf * nf_mult))
    feat = ndf * nf_mult

    keys = jax.random.split(key, 2 * len(chans) + 2 + (2 if vae_like else 0))
    ki = 0
    convs = []
    for cin, cout in chans:
        fan_in = cin * 4 * 4
        convs.append({"w": uniform(keys[ki], (cout, cin, 4, 4), fan_in),
                      "b": uniform(keys[ki + 1], (cout,), fan_in)})
        ki += 2
    params = {"convs": convs,
              "fc": {"w": uniform(keys[ki], (output_nc, feat), feat),
                     "b": uniform(keys[ki + 1], (output_nc,), feat)}}
    ki += 2
    if vae_like:
        params["fcVar"] = {"w": uniform(keys[ki], (output_nc, feat), feat),
                           "b": uniform(keys[ki + 1], (output_nc,), feat)}
    return params


# ---------------------------------------------------------------------------
# Pure-XLA f32 reference (for a numerical cross-check only)
# ---------------------------------------------------------------------------
def _reference_forward(x, params, *, norm, negative_slope, vae_like):
    h = x.astype(jnp.float32)
    for li, p in enumerate(params["convs"]):
        h = jax.lax.conv_general_dilated(
            h, p["w"].astype(jnp.float32), window_strides=(2, 2),
            padding=((1, 1), (1, 1)),
            dimension_numbers=("NCHW", "OIHW", "NCHW"))
        h = h + p["b"].astype(jnp.float32).reshape(1, -1, 1, 1)
        if li > 0 and norm == "in":
            mu = jnp.mean(h, axis=(2, 3), keepdims=True)
            var = jnp.mean(jnp.square(h - mu), axis=(2, 3), keepdims=True)
            h = (h - mu) * jax.lax.rsqrt(var + 1e-5)
        h = jnp.where(h > 0, h, negative_slope * h)
    pooled = jnp.mean(h, axis=(2, 3))                      # AvgPool2d(8) on 8x8 map
    out = pooled @ params["fc"]["w"].T + params["fc"]["b"]
    if vae_like:
        outv = pooled @ params["fcVar"]["w"].T + params["fcVar"]["b"]
        return out, outv
    return out


# ---------------------------------------------------------------------------
if __name__ == "__main__":
    key = jax.random.PRNGKey(0)
    k_x, k_p = jax.random.split(key)

    # Module config: AvgPool2d(8) after n_layers=3 stride-2 convs forces a 64x64
    # input (64 -> 32 -> 16 -> 8 -> 1x1) so the flatten matches Linear's in_features.
    B, input_nc, H = 2, 4, 64
    output_nc, ndf, n_layers = 8, 16, 3
    vae_like = True

    x = jax.random.normal(k_x, (B, input_nc, H, H), jnp.float32)
    params = init_e_nlayers_params(k_p, input_nc=input_nc, output_nc=output_nc,
                                   ndf=ndf, n_layers=n_layers, vae_like=vae_like)

    fwd = jax.jit(functools.partial(e_nlayers_forward, norm="in",
                                    negative_slope=0.2, vae_like=vae_like))
    out, out_var = fwd(x, params)
    out, out_var = jax.block_until_ready((out, out_var))

    assert out.shape == (B, output_nc), out.shape
    assert out_var.shape == (B, output_nc), out_var.shape
    assert bool(jnp.all(jnp.isfinite(out))) and bool(jnp.all(jnp.isfinite(out_var)))

    # Cross-check against a pure-XLA f32 reference (tolerance covers bf16 MXU
    # operands and bf16 intermediate activations).
    ref, ref_var = _reference_forward(x, params, norm="in", negative_slope=0.2,
                                      vae_like=vae_like)
    err = max(float(jnp.max(jnp.abs(out - ref))),
              float(jnp.max(jnp.abs(out_var - ref_var))))
    assert err < 0.1, f"mismatch vs reference: max abs err = {err}"

    print("KERNEL_OK")
</pallas_src>

<mosaic_0001>
module attributes {stable_mosaic.version = 11 : i64} {
  func.func @_conv_block_kernel(%arg0: i32, %arg1: memref<8x4x1056xbf16, #tpu.memory_space<vmem>>, %arg2: memref<16x16x4xbf16, #tpu.memory_space<vmem>>, %arg3: memref<16x1xf32, #tpu.memory_space<vmem>>, %arg4: memref<16x1024xbf16, #tpu.memory_space<vmem>>) attributes {dimension_semantics = [#tpu.dimension_semantics<parallel>], iteration_bounds = array<i64: 2>, scalar_prefetch = 0 : i64, scratch_operands = 0 : i64, tpu.core_type = #tpu.core_type<tc>, window_params = [{transform_indices = @transform_0, window_bounds = array<i64: 8, 4, 1056>}, {pipeline_mode = #tpu.pipeline_mode<synchronous>, transform_indices = @transform_1, window_bounds = array<i64: 16, 16, 4>}, {pipeline_mode = #tpu.pipeline_mode<synchronous>, transform_indices = @transform_2, window_bounds = array<i64: 16, 1>}, {transform_indices = @transform_3, window_bounds = array<i64: 16, 1024>}]} {
    %cst = arith.constant 0.000000e+00 : f32
    %0 = vector.broadcast %cst : f32 to vector<16x1024xf32>
    %c0 = arith.constant 0 : index
    %c0_0 = arith.constant 0 : index
    %c0_1 = arith.constant 0 : index
    %1 = vector.load %arg1[%c0, %c0_0, %c0_1] : memref<8x4x1056xbf16, #tpu.memory_space<vmem>>, vector<1x4x1056xbf16>
    %2 = vector.shape_cast %1 : vector<1x4x1056xbf16> to vector<4x1056xbf16>
    %3 = vector.extract_strided_slice %2 {offsets = [0, 0], sizes = [4, 1024], strides = [1, 1]} : vector<4x1056xbf16> to vector<4x1024xbf16>
    %c0_2 = arith.constant 0 : index
    %c0_3 = arith.constant 0 : index
    %c0_4 = arith.constant 0 : index
    %4 = vector.load %arg2[%c0_2, %c0_3, %c0_4] : memref<16x16x4xbf16, #tpu.memory_space<vmem>>, vector<1x16x4xbf16>
    %5 = vector.shape_cast %4 : vector<1x16x4xbf16> to vector<16x4xbf16>
    %cst_5 = arith.constant dense<0.000000e+00> : vector<16x1024xf32>
    %6 = tpu.matmul %5, %3, %cst_5 {dimension_numbers = #tpu.dot_dimension_numbers<[1], [0], [0], [1], [0, 0, 1, 1], [], []>} : vector<16x4xbf16>, vector<4x1024xbf16>, vector<16x1024xf32> -> vector<16x1024xf32>
    %7 = arith.addf %0, %6 : vector<16x1024xf32>
    %8 = vector.extract_strided_slice %2 {offsets = [0, 32], sizes = [4, 1024], strides = [1, 1]} : vector<4x1056xbf16> to vector<4x1024xbf16>
    %c8 = arith.constant 8 : index
    %c0_6 = arith.constant 0 : index
    %c0_7 = arith.constant 0 : index
    %9 = vector.load %arg2[%c8, %c0_6, %c0_7] : memref<16x16x4xbf16, #tpu.memory_space<vmem>>, vector<1x16x4xbf16>
    %10 = vector.shape_cast %9 : vector<1x16x4xbf16> to vector<16x4xbf16>
    %cst_8 = arith.constant dense<0.000000e+00> : vector<16x1024xf32>
    %11 = tpu.matmul %10, %8, %cst_8 {dimension_numbers = #tpu.dot_dimension_numbers<[1], [0], [0], [1], [0, 0, 1, 1], [], []>} : vector<16x4xbf16>, vector<4x1024xbf16>, vector<16x1024xf32> -> vector<16x1024xf32>
    %12 = arith.addf %7, %11 : vector<16x1024xf32>
    %c1 = arith.constant 1 : index
    %c0_9 = arith.constant 0 : index
    %c0_10 = arith.constant 0 : index
    %13 = vector.load %arg1[%c1, %c0_9, %c0_10] : memref<8x4x1056xbf16, #tpu.memory_space<vmem>>, vector<1x4x1056xbf16>
    %14 = vector.shape_cast %13 : vector<1x4x1056xbf16> to vector<4x1056xbf16>
    %15 = vector.extract_strided_slice %14 {offsets = [0, 0], sizes = [4, 1024], strides = [1, 1]} : vector<4x1056xbf16> to vector<4x1024xbf16>
    %c2 = arith.constant 2 : index
    %c0_11 = arith.constant 0 : index
    %c0_12 = arith.constant 0 : index
    %16 = vector.load %arg2[%c2, %c0_11, %c0_12] : memref<16x16x4xbf16, #tpu.memory_space<vmem>>, vector<1x16x4xbf16>
    %17 = vector.shape_cast %16 : vector<1x16x4xbf16> to vector<16x4xbf16>
    %cst_13 = arith.constant dense<0.000000e+00> : vector<16x1024xf32>
    %18 = tpu.matmul %17, %15, %cst_13 {dimension_numbers = #tpu.dot_dimension_numbers<[1], [0], [0], [1], [0, 0, 1, 1], [], []>} : vector<16x4xbf16>, vector<4x1024xbf16>, vector<16x1024xf32> -> vector<16x1024xf32>
    %19 = arith.addf %12, %18 : vector<16x1024xf32>
    %20 = vector.extract_strided_slice %14 {offsets = [0, 32], sizes = [4, 1024], strides = [1, 1]} : vector<4x1056xbf16> to vector<4x1024xbf16>
    %c10 = arith.constant 10 : index
    %c0_14 = arith.constant 0 : index
    %c0_15 = arith.constant 0 : index
    %21 = vector.load %arg2[%c10, %c0_14, %c0_15] : memref<16x16x4xbf16, #tpu.memory_space<vmem>>, vector<1x16x4xbf16>
    %22 = vector.shape_cast %21 : vector<1x16x4xbf16> to vector<16x4xbf16>
    %cst_16 = arith.constant dense<0.000000e+00> : vector<16x1024xf32>
    %23 = tpu.matmul %22, %20, %cst_16 {dimension_numbers = #tpu.dot_dimension_numbers<[1], [0], [0], [1], [0, 0, 1, 1], [], []>} : vector<16x4xbf16>, vector<4x1024xbf16>, vector<16x1024xf32> -> vector<16x1024xf32>
    %24 = arith.addf %19, %23 : vector<16x1024xf32>
    %c2_17 = arith.constant 2 : index
    %c0_18 = arith.constant 0 : index
    %c0_19 = arith.constant 0 : index
    %25 = vector.load %arg1[%c2_17, %c0_18, %c0_19] : memref<8x4x1056xbf16, #tpu.memory_space<vmem>>, vector<1x4x1056xbf16>
    %26 = vector.shape_cast %25 : vector<1x4x1056xbf16> to vector<4x1056xbf16>
    %27 = vector.extract_strided_slice %26 {offsets = [0, 0], sizes = [4, 1024], strides = [1, 1]} : vector<4x1056xbf16> to vector<4x1024xbf16>
    %c1_20 = arith.constant 1 : index
    %c0_21 = arith.constant 0 : index
    %c0_22 = arith.constant 0 : index
    %28 = vector.load %arg2[%c1_20, %c0_21, %c0_22] : memref<16x16x4xbf16, #tpu.memory_space<vmem>>, vector<1x16x4xbf16>
    %29 = vector.shape_cast %28 : vector<1x16x4xbf16> to vector<16x4xbf16>
    %cst_23 = arith.constant dense<0.000000e+00> : vector<16x1024xf32>
    %30 = tpu.matmul %29, %27, %cst_23 {dimension_numbers = #tpu.dot_dimension_numbers<[1], [0], [0], [1], [0, 0, 1, 1], [], []>} : vector<16x4xbf16>, vector<4x1024xbf16>, vector<16x1024xf32> -> vector<16x1024xf32>
    %31 = arith.addf %24, %30 : vector<16x1024xf32>
    %32 = vector.extract_strided_slice %26 {offsets = [0, 32], sizes = [4, 1024], strides = [1, 1]} : vector<4x1056xbf16> to vector<4x1024xbf16>
    %c9 = arith.constant 9 : index
    %c0_24 = arith.constant 0 : index
    %c0_25 = arith.constant 0 : index
    %33 = vector.load %arg2[%c9, %c0_24, %c0_25] : memref<16x16x4xbf16, #tpu.memory_space<vmem>>, vector<1x16x4xbf16>
    %34 = vector.shape_cast %33 : vector<1x16x4xbf16> to vector<16x4xbf16>
    %cst_26 = arith.constant dense<0.000000e+00> : vector<16x1024xf32>
    %35 = tpu.matmul %34, %32, %cst_26 {dimension_numbers = #tpu.dot_dimension_numbers<[1], [0], [0], [1], [0, 0, 1, 1], [], []>} : vector<16x4xbf16>, vector<4x1024xbf16>, vector<16x1024xf32> -> vector<16x1024xf32>
    %36 = arith.addf %31, %35 : vector<16x1024xf32>
    %c3 = arith.constant 3 : index
    %c0_27 = arith.constant 0 : index
    %c0_28 = arith.constant 0 : index
    %37 = vector.load %arg1[%c3, %c0_27, %c0_28] : memref<8x4x1056xbf16, #tpu.memory_space<vmem>>, vector<1x4x1056xbf16>
    %38 = vector.shape_cast %37 : vector<1x4x1056xbf16> to vector<4x1056xbf16>
    %39 = vector.extract_strided_slice %38 {offsets = [0, 0], sizes = [4, 1024], strides = [1, 1]} : vector<4x1056xbf16> to vector<4x1024xbf16>
    %c3_29 = arith.constant 3 : index
    %c0_30 = arith.constant 0 : index
    %c0_31 = arith.constant 0 : index
    %40 = vector.load %arg2[%c3_29, %c0_30, %c0_31] : memref<16x16x4xbf16, #tpu.memory_space<vmem>>, vector<1x16x4xbf16>
    %41 = vector.shape_cast %40 : vector<1x16x4xbf16> to vector<16x4xbf16>
    %cst_32 = arith.constant dense<0.000000e+00> : vector<16x1024xf32>
    %42 = tpu.matmul %41, %39, %cst_32 {dimension_numbers = #tpu.dot_dimension_numbers<[1], [0], [0], [1], [0, 0, 1, 1], [], []>} : vector<16x4xbf16>, vector<4x1024xbf16>, vector<16x1024xf32> -> vector<16x1024xf32>
    %43 = arith.addf %36, %42 : vector<16x1024xf32>
    %44 = vector.extract_strided_slice %38 {offsets = [0, 32], sizes = [4, 1024], strides = [1, 1]} : vector<4x1056xbf16> to vector<4x1024xbf16>
    %c11 = arith.constant 11 : index
    %c0_33 = arith.constant 0 : index
    %c0_34 = arith.constant 0 : index
    %45 = vector.load %arg2[%c11, %c0_33, %c0_34] : memref<16x16x4xbf16, #tpu.memory_space<vmem>>, vector<1x16x4xbf16>
    %46 = vector.shape_cast %45 : vector<1x16x4xbf16> to vector<16x4xbf16>
    %cst_35 = arith.constant dense<0.000000e+00> : vector<16x1024xf32>
    %47 = tpu.matmul %46, %44, %cst_35 {dimension_numbers = #tpu.dot_dimension_numbers<[1], [0], [0], [1], [0, 0, 1, 1], [], []>} : vector<16x4xbf16>, vector<4x1024xbf16>, vector<16x1024xf32> -> vector<16x1024xf32>
    %48 = arith.addf %43, %47 : vector<16x1024xf32>
    %c4 = arith.constant 4 : index
    %c0_36 = arith.constant 0 : index
    %c0_37 = arith.constant 0 : index
    %49 = vector.load %arg1[%c4, %c0_36, %c0_37] : memref<8x4x1056xbf16, #tpu.memory_space<vmem>>, vector<1x4x1056xbf16>
    %50 = vector.shape_cast %49 : vector<1x4x1056xbf16> to vector<4x1056xbf16>
    %51 = vector.extract_strided_slice %50 {offsets = [0, 0], sizes = [4, 1024], strides = [1, 1]} : vector<4x1056xbf16> to vector<4x1024xbf16>
    %c4_38 = arith.constant 4 : index
    %c0_39 = arith.constant 0 : index
    %c0_40 = arith.constant 0 : index
    %52 = vector.load %arg2[%c4_38, %c0_39, %c0_40] : memref<16x16x4xbf16, #tpu.memory_space<vmem>>, vector<1x16x4xbf16>
    %53 = vector.shape_cast %52 : vector<1x16x4xbf16> to vector<16x4xbf16>
    %cst_41 = arith.constant dense<0.000000e+00> : vector<16x1024xf32>
    %54 = tpu.matmul %53, %51, %cst_41 {dimension_numbers = #tpu.dot_dimension_numbers<[1], [0], [0], [1], [0, 0, 1, 1], [], []>} : vector<16x4xbf16>, vector<4x1024xbf16>, vector<16x1024xf32> -> vector<16x1024xf32>
    %55 = arith.addf %48, %54 : vector<16x1024xf32>
    %56 = vector.extract_strided_slice %50 {offsets = [0, 32], sizes = [4, 1024], strides = [1, 1]} : vector<4x1056xbf16> to vector<4x1024xbf16>
    %c12 = arith.constant 12 : index
    %c0_42 = arith.constant 0 : index
    %c0_43 = arith.constant 0 : index
    %57 = vector.load %arg2[%c12, %c0_42, %c0_43] : memref<16x16x4xbf16, #tpu.memory_space<vmem>>, vector<1x16x4xbf16>
    %58 = vector.shape_cast %57 : vector<1x16x4xbf16> to vector<16x4xbf16>
    %cst_44 = arith.constant dense<0.000000e+00> : vector<16x1024xf32>
    %59 = tpu.matmul %58, %56, %cst_44 {dimension_numbers = #tpu.dot_dimension_numbers<[1], [0], [0], [1], [0, 0, 1, 1], [], []>} : vector<16x4xbf16>, vector<4x1024xbf16>, vector<16x1024xf32> -> vector<16x1024xf32>
    %60 = arith.addf %55, %59 : vector<16x1024xf32>
    %c5 = arith.constant 5 : index
    %c0_45 = arith.constant 0 : index
    %c0_46 = arith.constant 0 : index
    %61 = vector.load %arg1[%c5, %c0_45, %c0_46] : memref<8x4x1056xbf16, #tpu.memory_space<vmem>>, vector<1x4x1056xbf16>
    %62 = vector.shape_cast %61 : vector<1x4x1056xbf16> to vector<4x1056xbf16>
    %63 = vector.extract_strided_slice %62 {offsets = [0, 0], sizes = [4, 1024], strides = [1, 1]} : vector<4x1056xbf16> to vector<4x1024xbf16>
    %c6 = arith.constant 6 : index
    %c0_47 = arith.constant 0 : index
    %c0_48 = arith.constant 0 : index
    %64 = vector.load %arg2[%c6, %c0_47, %c0_48] : memref<16x16x4xbf16, #tpu.memory_space<vmem>>, vector<1x16x4xbf16>
    %65 = vector.shape_cast %64 : vector<1x16x4xbf16> to vector<16x4xbf16>
    %cst_49 = arith.constant dense<0.000000e+00> : vector<16x1024xf32>
    %66 = tpu.matmul %65, %63, %cst_49 {dimension_numbers = #tpu.dot_dimension_numbers<[1], [0], [0], [1], [0, 0, 1, 1], [], []>} : vector<16x4xbf16>, vector<4x1024xbf16>, vector<16x1024xf32> -> vector<16x1024xf32>
    %67 = arith.addf %60, %66 : vector<16x1024xf32>
    %68 = vector.extract_strided_slice %62 {offsets = [0, 32], sizes = [4, 1024], strides = [1, 1]} : vector<4x1056xbf16> to vector<4x1024xbf16>
    %c14 = arith.constant 14 : index
    %c0_50 = arith.constant 0 : index
    %c0_51 = arith.constant 0 : index
    %69 = vector.load %arg2[%c14, %c0_50, %c0_51] : memref<16x16x4xbf16, #tpu.memory_space<vmem>>, vector<1x16x4xbf16>
    %70 = vector.shape_cast %69 : vector<1x16x4xbf16> to vector<16x4xbf16>
    %cst_52 = arith.constant dense<0.000000e+00> : vector<16x1024xf32>
    %71 = tpu.matmul %70, %68, %cst_52 {dimension_numbers = #tpu.dot_dimension_numbers<[1], [0], [0], [1], [0, 0, 1, 1], [], []>} : vector<16x4xbf16>, vector<4x1024xbf16>, vector<16x1024xf32> -> vector<16x1024xf32>
    %72 = arith.addf %67, %71 : vector<16x1024xf32>
    %c6_53 = arith.constant 6 : index
    %c0_54 = arith.constant 0 : index
    %c0_55 = arith.constant 0 : index
    %73 = vector.load %arg1[%c6_53, %c0_54, %c0_55] : memref<8x4x1056xbf16, #tpu.memory_space<vmem>>, vector<1x4x1056xbf16>
    %74 = vector.shape_cast %73 : vector<1x4x1056xbf16> to vector<4x1056xbf16>
    %75 = vector.extract_strided_slice %74 {offsets = [0, 0], sizes = [4, 1024], strides = [1, 1]} : vector<4x1056xbf16> to vector<4x1024xbf16>
    %c5_56 = arith.constant 5 : index
    %c0_57 = arith.constant 0 : index
    %c0_58 = arith.constant 0 : index
    %76 = vector.load %arg2[%c5_56, %c0_57, %c0_58] : memref<16x16x4xbf16, #tpu.memory_space<vmem>>, vector<1x16x4xbf16>
    %77 = vector.shape_cast %76 : vector<1x16x4xbf16> to vector<16x4xbf16>
    %cst_59 = arith.constant dense<0.000000e+00> : vector<16x1024xf32>
    %78 = tpu.matmul %77, %75, %cst_59 {dimension_numbers = #tpu.dot_dimension_numbers<[1], [0], [0], [1], [0, 0, 1, 1], [], []>} : vector<16x4xbf16>, vector<4x1024xbf16>, vector<16x1024xf32> -> vector<16x1024xf32>
    %79 = arith.addf %72, %78 : vector<16x1024xf32>
    %80 = vector.extract_strided_slice %74 {offsets = [0, 32], sizes = [4, 1024], strides = [1, 1]} : vector<4x1056xbf16> to vector<4x1024xbf16>
    %c13 = arith.constant 13 : index
    %c0_60 = arith.constant 0 : index
    %c0_61 = arith.constant 0 : index
    %81 = vector.load %arg2[%c13, %c0_60, %c0_61] : memref<16x16x4xbf16, #tpu.memory_space<vmem>>, vector<1x16x4xbf16>
    %82 = vector.shape_cast %81 : vector<1x16x4xbf16> to vector<16x4xbf16>
    %cst_62 = arith.constant dense<0.000000e+00> : vector<16x1024xf32>
    %83 = tpu.matmul %82, %80, %cst_62 {dimension_numbers = #tpu.dot_dimension_numbers<[1], [0], [0], [1], [0, 0, 1, 1], [], []>} : vector<16x4xbf16>, vector<4x1024xbf16>, vector<16x1024xf32> -> vector<16x1024xf32>
    %84 = arith.addf %79, %83 : vector<16x1024xf32>
    %c7 = arith.constant 7 : index
    %c0_63 = arith.constant 0 : index
    %c0_64 = arith.constant 0 : index
    %85 = vector.load %arg1[%c7, %c0_63, %c0_64] : memref<8x4x1056xbf16, #tpu.memory_space<vmem>>, vector<1x4x1056xbf16>
    %86 = vector.shape_cast %85 : vector<1x4x1056xbf16> to vector<4x1056xbf16>
    %87 = vector.extract_strided_slice %86 {offsets = [0, 0], sizes = [4, 1024], strides = [1, 1]} : vector<4x1056xbf16> to vector<4x1024xbf16>
    %c7_65 = arith.constant 7 : index
    %c0_66 = arith.constant 0 : index
    %c0_67 = arith.constant 0 : index
    %88 = vector.load %arg2[%c7_65, %c0_66, %c0_67] : memref<16x16x4xbf16, #tpu.memory_space<vmem>>, vector<1x16x4xbf16>
    %89 = vector.shape_cast %88 : vector<1x16x4xbf16> to vector<16x4xbf16>
    %cst_68 = arith.constant dense<0.000000e+00> : vector<16x1024xf32>
    %90 = tpu.matmul %89, %87, %cst_68 {dimension_numbers = #tpu.dot_dimension_numbers<[1], [0], [0], [1], [0, 0, 1, 1], [], []>} : vector<16x4xbf16>, vector<4x1024xbf16>, vector<16x1024xf32> -> vector<16x1024xf32>
    %91 = arith.addf %84, %90 : vector<16x1024xf32>
    %92 = vector.extract_strided_slice %86 {offsets = [0, 32], sizes = [4, 1024], strides = [1, 1]} : vector<4x1056xbf16> to vector<4x1024xbf16>
    %c15 = arith.constant 15 : index
    %c0_69 = arith.constant 0 : index
    %c0_70 = arith.constant 0 : index
    %93 = vector.load %arg2[%c15, %c0_69, %c0_70] : memref<16x16x4xbf16, #tpu.memory_space<vmem>>, vector<1x16x4xbf16>
    %94 = vector.shape_cast %93 : vector<1x16x4xbf16> to vector<16x4xbf16>
    %cst_71 = arith.constant dense<0.000000e+00> : vector<16x1024xf32>
    %95 = tpu.matmul %94, %92, %cst_71 {dimension_numbers = #tpu.dot_dimension_numbers<[1], [0], [0], [1], [0, 0, 1, 1], [], []>} : vector<16x4xbf16>, vector<4x1024xbf16>, vector<16x1024xf32> -> vector<16x1024xf32>
    %96 = arith.addf %91, %95 : vector<16x1024xf32>
    %c0_72 = arith.constant 0 : index
    %c0_73 = arith.constant 0 : index
    %97 = vector.load %arg3[%c0_72, %c0_73] : memref<16x1xf32, #tpu.memory_space<vmem>>, vector<16x1xf32>
    %98 = vector.broadcast %97 : vector<16x1xf32> to vector<16x1024xf32>
    %99 = arith.addf %96, %98 : vector<16x1024xf32>
    %cst_74 = arith.constant 0.000000e+00 : f32
    %100 = vector.broadcast %cst_74 : f32 to vector<16x1024xf32>
    %101 = arith.cmpf ogt, %99, %100 : vector<16x1024xf32>
    %cst_75 = arith.constant 2.000000e-01 : f32
    %102 = vector.broadcast %cst_75 : f32 to vector<16x1024xf32>
    %103 = arith.mulf %102, %99 : vector<16x1024xf32>
    %104 = arith.select %101, %99, %103 : vector<16x1024xi1>, vector<16x1024xf32>
    %105 = arith.truncf %104 : vector<16x1024xf32> to vector<16x1024xbf16>
    %c0_76 = arith.constant 0 : index
    %c0_77 = arith.constant 0 : index
    %106 = vector.load %arg4[%c0_76, %c0_77] : memref<16x1024xbf16, #tpu.memory_space<vmem>>, vector<16x1024xbf16>
    tpu.vector_store %arg4[%c0_76, %c0_77], %105 {strides = array<i32>} : memref<16x1024xbf16, #tpu.memory_space<vmem>>, vector<16x1024xbf16>,
    return
  }
  func.func @transform_0(%arg0: i32) -> (i32, i32, i32) {
    %c0_i32 = arith.constant 0 : i32
    %c0_i32_0 = arith.constant 0 : i32
    %c0_i32_1 = arith.constant 0 : i32
    return %arg0, %c0_i32, %c0_i32_0 : i32, i32, i32
  }
  func.func @transform_1(%arg0: i32) -> (i32, i32, i32) {
    %c0_i32 = arith.constant 0 : i32
    %c0_i32_0 = arith.constant 0 : i32
    %c0_i32_1 = arith.constant 0 : i32
    %c0_i32_2 = arith.constant 0 : i32
    return %c0_i32, %c0_i32_0, %c0_i32_1 : i32, i32, i32
  }
  func.func @transform_2(%arg0: i32) -> (i32, i32) {
    %c0_i32 = arith.constant 0 : i32
    %c0_i32_0 = arith.constant 0 : i32
    %c0_i32_1 = arith.constant 0 : i32
    return %c0_i32, %c0_i32_0 : i32, i32
  }
  func.func @transform_3(%arg0: i32) -> (i32, i32) {
    %c0_i32 = arith.constant 0 : i32
    %c0_i32_0 = arith.constant 0 : i32
    return %arg0, %c0_i32 : i32, i32
  }
}

module attributes {stable_mosaic.version = 11 : i64} {
  func.func @_conv_block_kernel(%arg0: i32, %arg1: memref<8x16x272xbf16, #tpu.memory_space<vmem>>, %arg2: memref<16x32x16xbf16, #tpu.memory_space<vmem>>, %arg3: memref<32x1xf32, #tpu.memory_space<vmem>>, %arg4: memref<32x256xbf16, #tpu.memory_space<vmem>>) attributes {dimension_semantics = [#tpu.dimension_semantics<parallel>], iteration_bounds = array<i64: 2>, scalar_prefetch = 0 : i64, scratch_operands = 0 : i64, tpu.core_type = #tpu.core_type<tc>, window_params = [{transform_indices = @transform_0, window_bounds = array<i64: 8, 16, 272>}, {pipeline_mode = #tpu.pipeline_mode<synchronous>, transform_indices = @transform_1, window_bounds = array<i64: 16, 32, 16>}, {pipeline_mode = #tpu.pipeline_mode<synchronous>, transform_indices = @transform_2, window_bounds = array<i64: 32, 1>}, {transform_indices = @transform_3, window_bounds = array<i64: 32, 256>}]} {
    %cst = arith.constant 0.000000e+00 : f32
    %0 = vector.broadcast %cst : f32 to vector<32x256xf32>
    %c0 = arith.constant 0 : index
    %c0_0 = arith.constant 0 : index
    %c0_1 = arith.constant 0 : index
    %1 = vector.load %arg1[%c0, %c0_0, %c0_1] : memref<8x16x272xbf16, #tpu.memory_space<vmem>>, vector<1x16x272xbf16>
    %2 = vector.shape_cast %1 : vector<1x16x272xbf16> to vector<16x272xbf16>
    %3 = vector.extract_strided_slice %2 {offsets = [0, 0], sizes = [16, 256], strides = [1, 1]} : vector<16x272xbf16> to vector<16x256xbf16>
    %c0_2 = arith.constant 0 : index
    %c0_3 = arith.constant 0 : index
    %c0_4 = arith.constant 0 : index
    %4 = vector.load %arg2[%c0_2, %c0_3, %c0_4] : memref<16x32x16xbf16, #tpu.memory_space<vmem>>, vector<1x32x16xbf16>
    %5 = vector.shape_cast %4 : vector<1x32x16xbf16> to vector<32x16xbf16>
    %cst_5 = arith.constant dense<0.000000e+00> : vector<32x256xf32>
    %6 = tpu.matmul %5, %3, %cst_5 {dimension_numbers = #tpu.dot_dimension_numbers<[1], [0], [0], [1], [0, 0, 1, 1], [], []>} : vector<32x16xbf16>, vector<16x256xbf16>, vector<32x256xf32> -> vector<32x256xf32>
    %7 = arith.addf %0, %6 : vector<32x256xf32>
    %8 = vector.extract_strided_slice %2 {offsets = [0, 16], sizes = [16, 256], strides = [1, 1]} : vector<16x272xbf16> to vector<16x256xbf16>
    %c8 = arith.constant 8 : index
    %c0_6 = arith.constant 0 : index
    %c0_7 = arith.constant 0 : index
    %9 = vector.load %arg2[%c8, %c0_6, %c0_7] : memref<16x32x16xbf16, #tpu.memory_space<vmem>>, vector<1x32x16xbf16>
    %10 = vector.shape_cast %9 : vector<1x32x16xbf16> to vector<32x16xbf16>
    %cst_8 = arith.constant dense<0.000000e+00> : vector<32x256xf32>
    %11 = tpu.matmul %10, %8, %cst_8 {dimension_numbers = #tpu.dot_dimension_numbers<[1], [0], [0], [1], [0, 0, 1, 1], [], []>} : vector<32x16xbf16>, vector<16x256xbf16>, vector<32x256xf32> -> vector<32x256xf32>
    %12 = arith.addf %7, %11 : vector<32x256xf32>
    %c1 = arith.constant 1 : index
    %c0_9 = arith.constant 0 : index
    %c0_10 = arith.constant 0 : index
    %13 = vector.load %arg1[%c1, %c0_9, %c0_10] : memref<8x16x272xbf16, #tpu.memory_space<vmem>>, vector<1x16x272xbf16>
    %14 = vector.shape_cast %13 : vector<1x16x272xbf16> to vector<16x272xbf16>
    %15 = vector.extract_strided_slice %14 {offsets = [0, 0], sizes = [16, 256], strides = [1, 1]} : vector<16x272xbf16> to vector<16x256xbf16>
    %c2 = arith.constant 2 : index
    %c0_11 = arith.constant 0 : index
    %c0_12 = arith.constant 0 : index
    %16 = vector.load %arg2[%c2, %c0_11, %c0_12] : memref<16x32x16xbf16, #tpu.memory_space<vmem>>, vector<1x32x16xbf16>
    %17 = vector.shape_cast %16 : vector<1x32x16xbf16> to vector<32x16xbf16>
    %cst_13 = arith.constant dense<0.000000e+00> : vector<32x256xf32>
    %18 = tpu.matmul %17, %15, %cst_13 {dimension_numbers = #tpu.dot_dimension_numbers<[1], [0], [0], [1], [0, 0, 1, 1], [], []>} : vector<32x16xbf16>, vector<16x256xbf16>, vector<32x256xf32> -> vector<32x256xf32>
    %19 = arith.addf %12, %18 : vector<32x256xf32>
    %20 = vector.extract_strided_slice %14 {offsets = [0, 16], sizes = [16, 256], strides = [1, 1]} : vector<16x272xbf16> to vector<16x256xbf16>
    %c10 = arith.constant 10 : index
    %c0_14 = arith.constant 0 : index
    %c0_15 = arith.constant 0 : index
    %21 = vector.load %arg2[%c10, %c0_14, %c0_15] : memref<16x32x16xbf16, #tpu.memory_space<vmem>>, vector<1x32x16xbf16>
    %22 = vector.shape_cast %21 : vector<1x32x16xbf16> to vector<32x16xbf16>
    %cst_16 = arith.constant dense<0.000000e+00> : vector<32x256xf32>
    %23 = tpu.matmul %22, %20, %cst_16 {dimension_numbers = #tpu.dot_dimension_numbers<[1], [0], [0], [1], [0, 0, 1, 1], [], []>} : vector<32x16xbf16>, vector<16x256xbf16>, vector<32x256xf32> -> vector<32x256xf32>
    %24 = arith.addf %19, %23 : vector<32x256xf32>
    %c2_17 = arith.constant 2 : index
    %c0_18 = arith.constant 0 : index
    %c0_19 = arith.constant 0 : index
    %25 = vector.load %arg1[%c2_17, %c0_18, %c0_19] : memref<8x16x272xbf16, #tpu.memory_space<vmem>>, vector<1x16x272xbf16>
    %26 = vector.shape_cast %25 : vector<1x16x272xbf16> to vector<16x272xbf16>
    %27 = vector.extract_strided_slice %26 {offsets = [0, 0], sizes = [16, 256], strides = [1, 1]} : vector<16x272xbf16> to vector<16x256xbf16>
    %c1_20 = arith.constant 1 : index
    %c0_21 = arith.constant 0 : index
    %c0_22 = arith.constant 0 : index
    %28 = vector.load %arg2[%c1_20, %c0_21, %c0_22] : memref<16x32x16xbf16, #tpu.memory_space<vmem>>, vector<1x32x16xbf16>
    %29 = vector.shape_cast %28 : vector<1x32x16xbf16> to vector<32x16xbf16>
    %cst_23 = arith.constant dense<0.000000e+00> : vector<32x256xf32>
    %30 = tpu.matmul %29, %27, %cst_23 {dimension_numbers = #tpu.dot_dimension_numbers<[1], [0], [0], [1], [0, 0, 1, 1], [], []>} : vector<32x16xbf16>, vector<16x256xbf16>, vector<32x256xf32> -> vector<32x256xf32>
    %31 = arith.addf %24, %30 : vector<32x256xf32>
    %32 = vector.extract_strided_slice %26 {offsets = [0, 16], sizes = [16, 256], strides = [1, 1]} : vector<16x272xbf16> to vector<16x256xbf16>
    %c9 = arith.constant 9 : index
    %c0_24 = arith.constant 0 : index
    %c0_25 = arith.constant 0 : index
    %33 = vector.load %arg2[%c9, %c0_24, %c0_25] : memref<16x32x16xbf16, #tpu.memory_space<vmem>>, vector<1x32x16xbf16>
    %34 = vector.shape_cast %33 : vector<1x32x16xbf16> to vector<32x16xbf16>
    %cst_26 = arith.constant dense<0.000000e+00> : vector<32x256xf32>
    %35 = tpu.matmul %34, %32, %cst_26 {dimension_numbers = #tpu.dot_dimension_numbers<[1], [0], [0], [1], [0, 0, 1, 1], [], []>} : vector<32x16xbf16>, vector<16x256xbf16>, vector<32x256xf32> -> vector<32x256xf32>
    %36 = arith.addf %31, %35 : vector<32x256xf32>
    %c3 = arith.constant 3 : index
    %c0_27 = arith.constant 0 : index
    %c0_28 = arith.constant 0 : index
    %37 = vector.load %arg1[%c3, %c0_27, %c0_28] : memref<8x16x272xbf16, #tpu.memory_space<vmem>>, vector<1x16x272xbf16>
    %38 = vector.shape_cast %37 : vector<1x16x272xbf16> to vector<16x272xbf16>
    %39 = vector.extract_strided_slice %38 {offsets = [0, 0], sizes = [16, 256], strides = [1, 1]} : vector<16x272xbf16> to vector<16x256xbf16>
    %c3_29 = arith.constant 3 : index
    %c0_30 = arith.constant 0 : index
    %c0_31 = arith.constant 0 : index
    %40 = vector.load %arg2[%c3_29, %c0_30, %c0_31] : memref<16x32x16xbf16, #tpu.memory_space<vmem>>, vector<1x32x16xbf16>
    %41 = vector.shape_cast %40 : vector<1x32x16xbf16> to vector<32x16xbf16>
    %cst_32 = arith.constant dense<0.000000e+00> : vector<32x256xf32>
    %42 = tpu.matmul %41, %39, %cst_32 {dimension_numbers = #tpu.dot_dimension_numbers<[1], [0], [0], [1], [0, 0, 1, 1], [], []>} : vector<32x16xbf16>, vector<16x256xbf16>, vector<32x256xf32> -> vector<32x256xf32>
    %43 = arith.addf %36, %42 : vector<32x256xf32>
    %44 = vector.extract_strided_slice %38 {offsets = [0, 16], sizes = [16, 256], strides = [1, 1]} : vector<16x272xbf16> to vector<16x256xbf16>
    %c11 = arith.constant 11 : index
    %c0_33 = arith.constant 0 : index
    %c0_34 = arith.constant 0 : index
    %45 = vector.load %arg2[%c11, %c0_33, %c0_34] : memref<16x32x16xbf16, #tpu.memory_space<vmem>>, vector<1x32x16xbf16>
    %46 = vector.shape_cast %45 : vector<1x32x16xbf16> to vector<32x16xbf16>
    %cst_35 = arith.constant dense<0.000000e+00> : vector<32x256xf32>
    %47 = tpu.matmul %46, %44, %cst_35 {dimension_numbers = #tpu.dot_dimension_numbers<[1], [0], [0], [1], [0, 0, 1, 1], [], []>} : vector<32x16xbf16>, vector<16x256xbf16>, vector<32x256xf32> -> vector<32x256xf32>
    %48 = arith.addf %43, %47 : vector<32x256xf32>
    %c4 = arith.constant 4 : index
    %c0_36 = arith.constant 0 : index
    %c0_37 = arith.constant 0 : index
    %49 = vector.load %arg1[%c4, %c0_36, %c0_37] : memref<8x16x272xbf16, #tpu.memory_space<vmem>>, vector<1x16x272xbf16>
    %50 = vector.shape_cast %49 : vector<1x16x272xbf16> to vector<16x272xbf16>
    %51 = vector.extract_strided_slice %50 {offsets = [0, 0], sizes = [16, 256], strides = [1, 1]} : vector<16x272xbf16> to vector<16x256xbf16>
    %c4_38 = arith.constant 4 : index
    %c0_39 = arith.constant 0 : index
    %c0_40 = arith.constant 0 : index
    %52 = vector.load %arg2[%c4_38, %c0_39, %c0_40] : memref<16x32x16xbf16, #tpu.memory_space<vmem>>, vector<1x32x16xbf16>
    %53 = vector.shape_cast %52 : vector<1x32x16xbf16> to vector<32x16xbf16>
    %cst_41 = arith.constant dense<0.000000e+00> : vector<32x256xf32>
    %54 = tpu.matmul %53, %51, %cst_41 {dimension_numbers = #tpu.dot_dimension_numbers<[1], [0], [0], [1], [0, 0, 1, 1], [], []>} : vector<32x16xbf16>, vector<16x256xbf16>, vector<32x256xf32> -> vector<32x256xf32>
    %55 = arith.addf %48, %54 : vector<32x256xf32>
    %56 = vector.extract_strided_slice %50 {offsets = [0, 16], sizes = [16, 256], strides = [1, 1]} : vector<16x272xbf16> to vector<16x256xbf16>
    %c12 = arith.constant 12 : index
    %c0_42 = arith.constant 0 : index
    %c0_43 = arith.constant 0 : index
    %57 = vector.load %arg2[%c12, %c0_42, %c0_43] : memref<16x32x16xbf16, #tpu.memory_space<vmem>>, vector<1x32x16xbf16>
    %58 = vector.shape_cast %57 : vector<1x32x16xbf16> to vector<32x16xbf16>
    %cst_44 = arith.constant dense<0.000000e+00> : vector<32x256xf32>
    %59 = tpu.matmul %58, %56, %cst_44 {dimension_numbers = #tpu.dot_dimension_numbers<[1], [0], [0], [1], [0, 0, 1, 1], [], []>} : vector<32x16xbf16>, vector<16x256xbf16>, vector<32x256xf32> -> vector<32x256xf32>
    %60 = arith.addf %55, %59 : vector<32x256xf32>
    %c5 = arith.constant 5 : index
    %c0_45 = arith.constant 0 : index
    %c0_46 = arith.constant 0 : index
    %61 = vector.load %arg1[%c5, %c0_45, %c0_46] : memref<8x16x272xbf16, #tpu.memory_space<vmem>>, vector<1x16x272xbf16>
    %62 = vector.shape_cast %61 : vector<1x16x272xbf16> to vector<16x272xbf16>
    %63 = vector.extract_strided_slice %62 {offsets = [0, 0], sizes = [16, 256], strides = [1, 1]} : vector<16x272xbf16> to vector<16x256xbf16>
    %c6 = arith.constant 6 : index
    %c0_47 = arith.constant 0 : index
    %c0_48 = arith.constant 0 : index
    %64 = vector.load %arg2[%c6, %c0_47, %c0_48] : memref<16x32x16xbf16, #tpu.memory_space<vmem>>, vector<1x32x16xbf16>
    %65 = vector.shape_cast %64 : vector<1x32x16xbf16> to vector<32x16xbf16>
    %cst_49 = arith.constant dense<0.000000e+00> : vector<32x256xf32>
    %66 = tpu.matmul %65, %63, %cst_49 {dimension_numbers = #tpu.dot_dimension_numbers<[1], [0], [0], [1], [0, 0, 1, 1], [], []>} : vector<32x16xbf16>, vector<16x256xbf16>, vector<32x256xf32> -> vector<32x256xf32>
    %67 = arith.addf %60, %66 : vector<32x256xf32>
    %68 = vector.extract_strided_slice %62 {offsets = [0, 16], sizes = [16, 256], strides = [1, 1]} : vector<16x272xbf16> to vector<16x256xbf16>
    %c14 = arith.constant 14 : index
    %c0_50 = arith.constant 0 : index
    %c0_51 = arith.constant 0 : index
    %69 = vector.load %arg2[%c14, %c0_50, %c0_51] : memref<16x32x16xbf16, #tpu.memory_space<vmem>>, vector<1x32x16xbf16>
    %70 = vector.shape_cast %69 : vector<1x32x16xbf16> to vector<32x16xbf16>
    %cst_52 = arith.constant dense<0.000000e+00> : vector<32x256xf32>
    %71 = tpu.matmul %70, %68, %cst_52 {dimension_numbers = #tpu.dot_dimension_numbers<[1], [0], [0], [1], [0, 0, 1, 1], [], []>} : vector<32x16xbf16>, vector<16x256xbf16>, vector<32x256xf32> -> vector<32x256xf32>
    %72 = arith.addf %67, %71 : vector<32x256xf32>
    %c6_53 = arith.constant 6 : index
    %c0_54 = arith.constant 0 : index
    %c0_55 = arith.constant 0 : index
    %73 = vector.load %arg1[%c6_53, %c0_54, %c0_55] : memref<8x16x272xbf16, #tpu.memory_space<vmem>>, vector<1x16x272xbf16>
    %74 = vector.shape_cast %73 : vector<1x16x272xbf16> to vector<16x272xbf16>
    %75 = vector.extract_strided_slice %74 {offsets = [0, 0], sizes = [16, 256], strides = [1, 1]} : vector<16x272xbf16> to vector<16x256xbf16>
    %c5_56 = arith.constant 5 : index
    %c0_57 = arith.constant 0 : index
    %c0_58 = arith.constant 0 : index
    %76 = vector.load %arg2[%c5_56, %c0_57, %c0_58] : memref<16x32x16xbf16, #tpu.memory_space<vmem>>, vector<1x32x16xbf16>
    %77 = vector.shape_cast %76 : vector<1x32x16xbf16> to vector<32x16xbf16>
    %cst_59 = arith.constant dense<0.000000e+00> : vector<32x256xf32>
    %78 = tpu.matmul %77, %75, %cst_59 {dimension_numbers = #tpu.dot_dimension_numbers<[1], [0], [0], [1], [0, 0, 1, 1], [], []>} : vector<32x16xbf16>, vector<16x256xbf16>, vector<32x256xf32> -> vector<32x256xf32>
    %79 = arith.addf %72, %78 : vector<32x256xf32>
    %80 = vector.extract_strided_slice %74 {offsets = [0, 16], sizes = [16, 256], strides = [1, 1]} : vector<16x272xbf16> to vector<16x256xbf16>
    %c13 = arith.constant 13 : index
    %c0_60 = arith.constant 0 : index
    %c0_61 = arith.constant 0 : index
    %81 = vector.load %arg2[%c13, %c0_60, %c0_61] : memref<16x32x16xbf16, #tpu.memory_space<vmem>>, vector<1x32x16xbf16>
    %82 = vector.shape_cast %81 : vector<1x32x16xbf16> to vector<32x16xbf16>
    %cst_62 = arith.constant dense<0.000000e+00> : vector<32x256xf32>
    %83 = tpu.matmul %82, %80, %cst_62 {dimension_numbers = #tpu.dot_dimension_numbers<[1], [0], [0], [1], [0, 0, 1, 1], [], []>} : vector<32x16xbf16>, vector<16x256xbf16>, vector<32x256xf32> -> vector<32x256xf32>
    %84 = arith.addf %79, %83 : vector<32x256xf32>
    %c7 = arith.constant 7 : index
    %c0_63 = arith.constant 0 : index
    %c0_64 = arith.constant 0 : index
    %85 = vector.load %arg1[%c7, %c0_63, %c0_64] : memref<8x16x272xbf16, #tpu.memory_space<vmem>>, vector<1x16x272xbf16>
    %86 = vector.shape_cast %85 : vector<1x16x272xbf16> to vector<16x272xbf16>
    %87 = vector.extract_strided_slice %86 {offsets = [0, 0], sizes = [16, 256], strides = [1, 1]} : vector<16x272xbf16> to vector<16x256xbf16>
    %c7_65 = arith.constant 7 : index
    %c0_66 = arith.constant 0 : index
    %c0_67 = arith.constant 0 : index
    %88 = vector.load %arg2[%c7_65, %c0_66, %c0_67] : memref<16x32x16xbf16, #tpu.memory_space<vmem>>, vector<1x32x16xbf16>
    %89 = vector.shape_cast %88 : vector<1x32x16xbf16> to vector<32x16xbf16>
    %cst_68 = arith.constant dense<0.000000e+00> : vector<32x256xf32>
    %90 = tpu.matmul %89, %87, %cst_68 {dimension_numbers = #tpu.dot_dimension_numbers<[1], [0], [0], [1], [0, 0, 1, 1], [], []>} : vector<32x16xbf16>, vector<16x256xbf16>, vector<32x256xf32> -> vector<32x256xf32>
    %91 = arith.addf %84, %90 : vector<32x256xf32>
    %92 = vector.extract_strided_slice %86 {offsets = [0, 16], sizes = [16, 256], strides = [1, 1]} : vector<16x272xbf16> to vector<16x256xbf16>
    %c15 = arith.constant 15 : index
    %c0_69 = arith.constant 0 : index
    %c0_70 = arith.constant 0 : index
    %93 = vector.load %arg2[%c15, %c0_69, %c0_70] : memref<16x32x16xbf16, #tpu.memory_space<vmem>>, vector<1x32x16xbf16>
    %94 = vector.shape_cast %93 : vector<1x32x16xbf16> to vector<32x16xbf16>
    %cst_71 = arith.constant dense<0.000000e+00> : vector<32x256xf32>
    %95 = tpu.matmul %94, %92, %cst_71 {dimension_numbers = #tpu.dot_dimension_numbers<[1], [0], [0], [1], [0, 0, 1, 1], [], []>} : vector<32x16xbf16>, vector<16x256xbf16>, vector<32x256xf32> -> vector<32x256xf32>
    %96 = arith.addf %91, %95 : vector<32x256xf32>
    %c0_72 = arith.constant 0 : index
    %c0_73 = arith.constant 0 : index
    %97 = vector.load %arg3[%c0_72, %c0_73] : memref<32x1xf32, #tpu.memory_space<vmem>>, vector<32x1xf32>
    %98 = vector.broadcast %97 : vector<32x1xf32> to vector<32x256xf32>
    %99 = arith.addf %96, %98 : vector<32x256xf32>
    %cst_74 = arith.constant dense<0.000000e+00> : vector<32xf32>
    %100 = vector.multi_reduction <add>, %99, %cst_74 [1] : vector<32x256xf32> to vector<32xf32>
    %101 = vector.shape_cast %100 : vector<32xf32> to vector<32x1xf32>
    %cst_75 = arith.constant 2.560000e+02 : f32
    %102 = vector.broadcast %cst_75 : f32 to vector<32x1xf32>
    %103 = arith.divf %101, %102 : vector<32x1xf32>
    %104 = vector.broadcast %103 : vector<32x1xf32> to vector<32x256xf32>
    %105 = arith.subf %99, %104 : vector<32x256xf32>
    %106 = arith.mulf %105, %105 : vector<32x256xf32>
    %cst_76 = arith.constant dense<0.000000e+00> : vector<32xf32>
    %107 = vector.multi_reduction <add>, %106, %cst_76 [1] : vector<32x256xf32> to vector<32xf32>
    %108 = vector.shape_cast %107 : vector<32xf32> to vector<32x1xf32>
    %cst_77 = arith.constant 2.560000e+02 : f32
    %109 = vector.broadcast %cst_77 : f32 to vector<32x1xf32>
    %110 = arith.divf %108, %109 : vector<32x1xf32>
    %111 = vector.broadcast %103 : vector<32x1xf32> to vector<32x256xf32>
    %112 = arith.subf %99, %111 : vector<32x256xf32>
    %cst_78 = arith.constant 9.99999974E-6 : f32
    %113 = vector.broadcast %cst_78 : f32 to vector<32x1xf32>
    %114 = arith.addf %110, %113 : vector<32x1xf32>
    %115 = math.rsqrt %114 : vector<32x1xf32>
    %116 = vector.broadcast %115 : vector<32x1xf32> to vector<32x256xf32>
    %117 = arith.mulf %112, %116 : vector<32x256xf32>
    %cst_79 = arith.constant 0.000000e+00 : f32
    %118 = vector.broadcast %cst_79 : f32 to vector<32x256xf32>
    %119 = arith.cmpf ogt, %117, %118 : vector<32x256xf32>
    %cst_80 = arith.constant 2.000000e-01 : f32
    %120 = vector.broadcast %cst_80 : f32 to vector<32x256xf32>
    %121 = arith.mulf %120, %117 : vector<32x256xf32>
    %122 = arith.select %119, %117, %121 : vector<32x256xi1>, vector<32x256xf32>
    %123 = arith.truncf %122 : vector<32x256xf32> to vector<32x256xbf16>
    %c0_81 = arith.constant 0 : index
    %c0_82 = arith.constant 0 : index
    %124 = vector.load %arg4[%c0_81, %c0_82] : memref<32x256xbf16, #tpu.memory_space<vmem>>, vector<32x256xbf16>
    tpu.vector_store %arg4[%c0_81, %c0_82], %123 {strides = array<i32>} : memref<32x256xbf16, #tpu.memory_space<vmem>>, vector<32x256xbf16>,
    return
  }
  func.func @transform_0(%arg0: i32) -> (i32, i32, i32) {
    %c0_i32 = arith.constant 0 : i32
    %c0_i32_0 = arith.constant 0 : i32
    %c0_i32_1 = arith.constant 0 : i32
    return %arg0, %c0_i32, %c0_i32_0 : i32, i32, i32
  }
  func.func @transform_1(%arg0: i32) -> (i32, i32, i32) {
    %c0_i32 = arith.constant 0 : i32
    %c0_i32_0 = arith.constant 0 : i32
    %c0_i32_1 = arith.constant 0 : i32
    %c0_i32_2 = arith.constant 0 : i32
    return %c0_i32, %c0_i32_0, %c0_i32_1 : i32, i32, i32
  }
  func.func @transform_2(%arg0: i32) -> (i32, i32) {
    %c0_i32 = arith.constant 0 : i32
    %c0_i32_0 = arith.constant 0 : i32
    %c0_i32_1 = arith.constant 0 : i32
    return %c0_i32, %c0_i32_0 : i32, i32
  }
  func.func @transform_3(%arg0: i32) -> (i32, i32) {
    %c0_i32 = arith.constant 0 : i32
    %c0_i32_0 = arith.constant 0 : i32
    return %arg0, %c0_i32 : i32, i32
  }
}

module attributes {stable_mosaic.version = 11 : i64} {
  func.func @_conv_head_kernel(%arg0: i32, %arg1: memref<8x32x72xbf16, #tpu.memory_space<vmem>>, %arg2: memref<16x64x32xbf16, #tpu.memory_space<vmem>>, %arg3: memref<64x1xf32, #tpu.memory_space<vmem>>, %arg4: memref<8x64xf32, #tpu.memory_space<vmem>>, %arg5: memref<8x1xf32, #tpu.memory_space<vmem>>, %arg6: memref<8x64xf32, #tpu.memory_space<vmem>>, %arg7: memref<8x1xf32, #tpu.memory_space<vmem>>, %arg8: memref<1x8x1xf32, #tpu.memory_space<vmem>>, %arg9: memref<1x8x1xf32, #tpu.memory_space<vmem>>) attributes {dimension_semantics = [#tpu.dimension_semantics<parallel>], iteration_bounds = array<i64: 2>, scalar_prefetch = 0 : i64, scratch_operands = 0 : i64, tpu.core_type = #tpu.core_type<tc>, window_params = [{transform_indices = @transform_0, window_bounds = array<i64: 8, 32, 72>}, {pipeline_mode = #tpu.pipeline_mode<synchronous>, transform_indices = @transform_1, window_bounds = array<i64: 16, 64, 32>}, {pipeline_mode = #tpu.pipeline_mode<synchronous>, transform_indices = @transform_2, window_bounds = array<i64: 64, 1>}, {pipeline_mode = #tpu.pipeline_mode<synchronous>, transform_indices = @transform_3, window_bounds = array<i64: 8, 64>}, {pipeline_mode = #tpu.pipeline_mode<synchronous>, transform_indices = @transform_4, window_bounds = array<i64: 8, 1>}, {pipeline_mode = #tpu.pipeline_mode<synchronous>, transform_indices = @transform_5, window_bounds = array<i64: 8, 64>}, {pipeline_mode = #tpu.pipeline_mode<synchronous>, transform_indices = @transform_6, window_bounds = array<i64: 8, 1>}, {transform_indices = @transform_7, window_bounds = array<i64: 1, 8, 1>}, {transform_indices = @transform_8, window_bounds = array<i64: 1, 8, 1>}]} {
    %cst = arith.constant 0.000000e+00 : f32
    %0 = vector.broadcast %cst : f32 to vector<64x64xf32>
    %c0 = arith.constant 0 : index
    %c0_0 = arith.constant 0 : index
    %c0_1 = arith.constant 0 : index
    %1 = vector.load %arg1[%c0, %c0_0, %c0_1] : memref<8x32x72xbf16, #tpu.memory_space<vmem>>, vector<1x32x72xbf16>
    %2 = vector.shape_cast %1 : vector<1x32x72xbf16> to vector<32x72xbf16>
    %3 = vector.extract_strided_slice %2 {offsets = [0, 0], sizes = [32, 64], strides = [1, 1]} : vector<32x72xbf16> to vector<32x64xbf16>
    %c0_2 = arith.constant 0 : index
    %c0_3 = arith.constant 0 : index
    %c0_4 = arith.constant 0 : index
    %4 = vector.load %arg2[%c0_2, %c0_3, %c0_4] : memref<16x64x32xbf16, #tpu.memory_space<vmem>>, vector<1x64x32xbf16>
    %5 = vector.shape_cast %4 : vector<1x64x32xbf16> to vector<64x32xbf16>
    %cst_5 = arith.constant dense<0.000000e+00> : vector<64x64xf32>
    %6 = tpu.matmul %5, %3, %cst_5 {dimension_numbers = #tpu.dot_dimension_numbers<[1], [0], [0], [1], [0, 0, 1, 1], [], []>} : vector<64x32xbf16>, vector<32x64xbf16>, vector<64x64xf32> -> vector<64x64xf32>
    %7 = arith.addf %0, %6 : vector<64x64xf32>
    %8 = vector.extract_strided_slice %2 {offsets = [0, 8], sizes = [32, 64], strides = [1, 1]} : vector<32x72xbf16> to vector<32x64xbf16>
    %c8 = arith.constant 8 : index
    %c0_6 = arith.constant 0 : index
    %c0_7 = arith.constant 0 : index
    %9 = vector.load %arg2[%c8, %c0_6, %c0_7] : memref<16x64x32xbf16, #tpu.memory_space<vmem>>, vector<1x64x32xbf16>
    %10 = vector.shape_cast %9 : vector<1x64x32xbf16> to vector<64x32xbf16>
    %cst_8 = arith.constant dense<0.000000e+00> : vector<64x64xf32>
    %11 = tpu.matmul %10, %8, %cst_8 {dimension_numbers = #tpu.dot_dimension_numbers<[1], [0], [0], [1], [0, 0, 1, 1], [], []>} : vector<64x32xbf16>, vector<32x64xbf16>, vector<64x64xf32> -> vector<64x64xf32>
    %12 = arith.addf %7, %11 : vector<64x64xf32>
    %c1 = arith.constant 1 : index
    %c0_9 = arith.constant 0 : index
    %c0_10 = arith.constant 0 : index
    %13 = vector.load %arg1[%c1, %c0_9, %c0_10] : memref<8x32x72xbf16, #tpu.memory_space<vmem>>, vector<1x32x72xbf16>
    %14 = vector.shape_cast %13 : vector<1x32x72xbf16> to vector<32x72xbf16>
    %15 = vector.extract_strided_slice %14 {offsets = [0, 0], sizes = [32, 64], strides = [1, 1]} : vector<32x72xbf16> to vector<32x64xbf16>
    %c2 = arith.constant 2 : index
    %c0_11 = arith.constant 0 : index
    %c0_12 = arith.constant 0 : index
    %16 = vector.load %arg2[%c2, %c0_11, %c0_12] : memref<16x64x32xbf16, #tpu.memory_space<vmem>>, vector<1x64x32xbf16>
    %17 = vector.shape_cast %16 : vector<1x64x32xbf16> to vector<64x32xbf16>
    %cst_13 = arith.constant dense<0.000000e+00> : vector<64x64xf32>
    %18 = tpu.matmul %17, %15, %cst_13 {dimension_numbers = #tpu.dot_dimension_numbers<[1], [0], [0], [1], [0, 0, 1, 1], [], []>} : vector<64x32xbf16>, vector<32x64xbf16>, vector<64x64xf32> -> vector<64x64xf32>
    %19 = arith.addf %12, %18 : vector<64x64xf32>
    %20 = vector.extract_strided_slice %14 {offsets = [0, 8], sizes = [32, 64], strides = [1, 1]} : vector<32x72xbf16> to vector<32x64xbf16>
    %c10 = arith.constant 10 : index
    %c0_14 = arith.constant 0 : index
    %c0_15 = arith.constant 0 : index
    %21 = vector.load %arg2[%c10, %c0_14, %c0_15] : memref<16x64x32xbf16, #tpu.memory_space<vmem>>, vector<1x64x32xbf16>
    %22 = vector.shape_cast %21 : vector<1x64x32xbf16> to vector<64x32xbf16>
    %cst_16 = arith.constant dense<0.000000e+00> : vector<64x64xf32>
    %23 = tpu.matmul %22, %20, %cst_16 {dimension_numbers = #tpu.dot_dimension_numbers<[1], [0], [0], [1], [0, 0, 1, 1], [], []>} : vector<64x32xbf16>, vector<32x64xbf16>, vector<64x64xf32> -> vector<64x64xf32>
    %24 = arith.addf %19, %23 : vector<64x64xf32>
    %c2_17 = arith.constant 2 : index
    %c0_18 = arith.constant 0 : index
    %c0_19 = arith.constant 0 : index
    %25 = vector.load %arg1[%c2_17, %c0_18, %c0_19] : memref<8x32x72xbf16, #tpu.memory_space<vmem>>, vector<1x32x72xbf16>
    %26 = vector.shape_cast %25 : vector<1x32x72xbf16> to vector<32x72xbf16>
    %27 = vector.extract_strided_slice %26 {offsets = [0, 0], sizes = [32, 64], strides = [1, 1]} : vector<32x72xbf16> to vector<32x64xbf16>
    %c1_20 = arith.constant 1 : index
    %c0_21 = arith.constant 0 : index
    %c0_22 = arith.constant 0 : index
    %28 = vector.load %arg2[%c1_20, %c0_21, %c0_22] : memref<16x64x32xbf16, #tpu.memory_space<vmem>>, vector<1x64x32xbf16>
    %29 = vector.shape_cast %28 : vector<1x64x32xbf16> to vector<64x32xbf16>
    %cst_23 = arith.constant dense<0.000000e+00> : vector<64x64xf32>
    %30 = tpu.matmul %29, %27, %cst_23 {dimension_numbers = #tpu.dot_dimension_numbers<[1], [0], [0], [1], [0, 0, 1, 1], [], []>} : vector<64x32xbf16>, vector<32x64xbf16>, vector<64x64xf32> -> vector<64x64xf32>
    %31 = arith.addf %24, %30 : vector<64x64xf32>
    %32 = vector.extract_strided_slice %26 {offsets = [0, 8], sizes = [32, 64], strides = [1, 1]} : vector<32x72xbf16> to vector<32x64xbf16>
    %c9 = arith.constant 9 : index
    %c0_24 = arith.constant 0 : index
    %c0_25 = arith.constant 0 : index
    %33 = vector.load %arg2[%c9, %c0_24, %c0_25] : memref<16x64x32xbf16, #tpu.memory_space<vmem>>, vector<1x64x32xbf16>
    %34 = vector.shape_cast %33 : vector<1x64x32xbf16> to vector<64x32xbf16>
    %cst_26 = arith.constant dense<0.000000e+00> : vector<64x64xf32>
    %35 = tpu.matmul %34, %32, %cst_26 {dimension_numbers = #tpu.dot_dimension_numbers<[1], [0], [0], [1], [0, 0, 1, 1], [], []>} : vector<64x32xbf16>, vector<32x64xbf16>, vector<64x64xf32> -> vector<64x64xf32>
    %36 = arith.addf %31, %35 : vector<64x64xf32>
    %c3 = arith.constant 3 : index
    %c0_27 = arith.constant 0 : index
    %c0_28 = arith.constant 0 : index
    %37 = vector.load %arg1[%c3, %c0_27, %c0_28] : memref<8x32x72xbf16, #tpu.memory_space<vmem>>, vector<1x32x72xbf16>
    %38 = vector.shape_cast %37 : vector<1x32x72xbf16> to vector<32x72xbf16>
    %39 = vector.extract_strided_slice %38 {offsets = [0, 0], sizes = [32, 64], strides = [1, 1]} : vector<32x72xbf16> to vector<32x64xbf16>
    %c3_29 = arith.constant 3 : index
    %c0_30 = arith.constant 0 : index
    %c0_31 = arith.constant 0 : index
    %40 = vector.load %arg2[%c3_29, %c0_30, %c0_31] : memref<16x64x32xbf16, #tpu.memory_space<vmem>>, vector<1x64x32xbf16>
    %41 = vector.shape_cast %40 : vector<1x64x32xbf16> to vector<64x32xbf16>
    %cst_32 = arith.constant dense<0.000000e+00> : vector<64x64xf32>
    %42 = tpu.matmul %41, %39, %cst_32 {dimension_numbers = #tpu.dot_dimension_numbers<[1], [0], [0], [1], [0, 0, 1, 1], [], []>} : vector<64x32xbf16>, vector<32x64xbf16>, vector<64x64xf32> -> vector<64x64xf32>
    %43 = arith.addf %36, %42 : vector<64x64xf32>
    %44 = vector.extract_strided_slice %38 {offsets = [0, 8], sizes = [32, 64], strides = [1, 1]} : vector<32x72xbf16> to vector<32x64xbf16>
    %c11 = arith.constant 11 : index
    %c0_33 = arith.constant 0 : index
    %c0_34 = arith.constant 0 : index
    %45 = vector.load %arg2[%c11, %c0_33, %c0_34] : memref<16x64x32xbf16, #tpu.memory_space<vmem>>, vector<1x64x32xbf16>
    %46 = vector.shape_cast %45 : vector<1x64x32xbf16> to vector<64x32xbf16>
    %cst_35 = arith.constant dense<0.000000e+00> : vector<64x64xf32>
    %47 = tpu.matmul %46, %44, %cst_35 {dimension_numbers = #tpu.dot_dimension_numbers<[1], [0], [0], [1], [0, 0, 1, 1], [], []>} : vector<64x32xbf16>, vector<32x64xbf16>, vector<64x64xf32> -> vector<64x64xf32>
    %48 = arith.addf %43, %47 : vector<64x64xf32>
    %c4 = arith.constant 4 : index
    %c0_36 = arith.constant 0 : index
    %c0_37 = arith.constant 0 : index
    %49 = vector.load %arg1[%c4, %c0_36, %c0_37] : memref<8x32x72xbf16, #tpu.memory_space<vmem>>, vector<1x32x72xbf16>
    %50 = vector.shape_cast %49 : vector<1x32x72xbf16> to vector<32x72xbf16>
    %51 = vector.extract_strided_slice %50 {offsets = [0, 0], sizes = [32, 64], strides = [1, 1]} : vector<32x72xbf16> to vector<32x64xbf16>
    %c4_38 = arith.constant 4 : index
    %c0_39 = arith.constant 0 : index
    %c0_40 = arith.constant 0 : index
    %52 = vector.load %arg2[%c4_38, %c0_39, %c0_40] : memref<16x64x32xbf16, #tpu.memory_space<vmem>>, vector<1x64x32xbf16>
    %53 = vector.shape_cast %52 : vector<1x64x32xbf16> to vector<64x32xbf16>
    %cst_41 = arith.constant dense<0.000000e+00> : vector<64x64xf32>
    %54 = tpu.matmul %53, %51, %cst_41 {dimension_numbers = #tpu.dot_dimension_numbers<[1], [0], [0], [1], [0, 0, 1, 1], [], []>} : vector<64x32xbf16>, vector<32x64xbf16>, vector<64x64xf32> -> vector<64x64xf32>
    %55 = arith.addf %48, %54 : vector<64x64xf32>
    %56 = vector.extract_strided_slice %50 {offsets = [0, 8], sizes = [32, 64], strides = [1, 1]} : vector<32x72xbf16> to vector<32x64xbf16>
    %c12 = arith.constant 12 : index
    %c0_42 = arith.constant 0 : index
    %c0_43 = arith.constant 0 : index
    %57 = vector.load %arg2[%c12, %c0_42, %c0_43] : memref<16x64x32xbf16, #tpu.memory_space<vmem>>, vector<1x64x32xbf16>
    %58 = vector.shape_cast %57 : vector<1x64x32xbf16> to vector<64x32xbf16>
    %cst_44 = arith.constant dense<0.000000e+00> : vector<64x64xf32>
    %59 = tpu.matmul %58, %56, %cst_44 {dimension_numbers = #tpu.dot_dimension_numbers<[1], [0], [0], [1], [0, 0, 1, 1], [], []>} : vector<64x32xbf16>, vector<32x64xbf16>, vector<64x64xf32> -> vector<64x64xf32>
    %60 = arith.addf %55, %59 : vector<64x64xf32>
    %c5 = arith.constant 5 : index
    %c0_45 = arith.constant 0 : index
    %c0_46 = arith.constant 0 : index
    %61 = vector.load %arg1[%c5, %c0_45, %c0_46] : memref<8x32x72xbf16, #tpu.memory_space<vmem>>, vector<1x32x72xbf16>
    %62 = vector.shape_cast %61 : vector<1x32x72xbf16> to vector<32x72xbf16>
    %63 = vector.extract_strided_slice %62 {offsets = [0, 0], sizes = [32, 64], strides = [1, 1]} : vector<32x72xbf16> to vector<32x64xbf16>
    %c6 = arith.constant 6 : index
    %c0_47 = arith.constant 0 : index
    %c0_48 = arith.constant 0 : index
    %64 = vector.load %arg2[%c6, %c0_47, %c0_48] : memref<16x64x32xbf16, #tpu.memory_space<vmem>>, vector<1x64x32xbf16>
    %65 = vector.shape_cast %64 : vector<1x64x32xbf16> to vector<64x32xbf16>
    %cst_49 = arith.constant dense<0.000000e+00> : vector<64x64xf32>
    %66 = tpu.matmul %65, %63, %cst_49 {dimension_numbers = #tpu.dot_dimension_numbers<[1], [0], [0], [1], [0, 0, 1, 1], [], []>} : vector<64x32xbf16>, vector<32x64xbf16>, vector<64x64xf32> -> vector<64x64xf32>
    %67 = arith.addf %60, %66 : vector<64x64xf32>
    %68 = vector.extract_strided_slice %62 {offsets = [0, 8], sizes = [32, 64], strides = [1, 1]} : vector<32x72xbf16> to vector<32x64xbf16>
    %c14 = arith.constant 14 : index
    %c0_50 = arith.constant 0 : index
    %c0_51 = arith.constant 0 : index
    %69 = vector.load %arg2[%c14, %c0_50, %c0_51] : memref<16x64x32xbf16, #tpu.memory_space<vmem>>, vector<1x64x32xbf16>
    %70 = vector.shape_cast %69 : vector<1x64x32xbf16> to vector<64x32xbf16>
    %cst_52 = arith.constant dense<0.000000e+00> : vector<64x64xf32>
    %71 = tpu.matmul %70, %68, %cst_52 {dimension_numbers = #tpu.dot_dimension_numbers<[1], [0], [0], [1], [0, 0, 1, 1], [], []>} : vector<64x32xbf16>, vector<32x64xbf16>, vector<64x64xf32> -> vector<64x64xf32>
    %72 = arith.addf %67, %71 : vector<64x64xf32>
    %c6_53 = arith.constant 6 : index
    %c0_54 = arith.constant 0 : index
    %c0_55 = arith.constant 0 : index
    %73 = vector.load %arg1[%c6_53, %c0_54, %c0_55] : memref<8x32x72xbf16, #tpu.memory_space<vmem>>, vector<1x32x72xbf16>
    %74 = vector.shape_cast %73 : vector<1x32x72xbf16> to vector<32x72xbf16>
    %75 = vector.extract_strided_slice %74 {offsets = [0, 0], sizes = [32, 64], strides = [1, 1]} : vector<32x72xbf16> to vector<32x64xbf16>
    %c5_56 = arith.constant 5 : index
    %c0_57 = arith.constant 0 : index
    %c0_58 = arith.constant 0 : index
    %76 = vector.load %arg2[%c5_56, %c0_57, %c0_58] : memref<16x64x32xbf16, #tpu.memory_space<vmem>>, vector<1x64x32xbf16>
    %77 = vector.shape_cast %76 : vector<1x64x32xbf16> to vector<64x32xbf16>
    %cst_59 = arith.constant dense<0.000000e+00> : vector<64x64xf32>
    %78 = tpu.matmul %77, %75, %cst_59 {dimension_numbers = #tpu.dot_dimension_numbers<[1], [0], [0], [1], [0, 0, 1, 1], [], []>} : vector<64x32xbf16>, vector<32x64xbf16>, vector<64x64xf32> -> vector<64x64xf32>
    %79 = arith.addf %72, %78 : vector<64x64xf32>
    %80 = vector.extract_strided_slice %74 {offsets = [0, 8], sizes = [32, 64], strides = [1, 1]} : vector<32x72xbf16> to vector<32x64xbf16>
    %c13 = arith.constant 13 : index
    %c0_60 = arith.constant 0 : index
    %c0_61 = arith.constant 0 : index
    %81 = vector.load %arg2[%c13, %c0_60, %c0_61] : memref<16x64x32xbf16, #tpu.memory_space<vmem>>, vector<1x64x32xbf16>
    %82 = vector.shape_cast %81 : vector<1x64x32xbf16> to vector<64x32xbf16>
    %cst_62 = arith.constant dense<0.000000e+00> : vector<64x64xf32>
    %83 = tpu.matmul %82, %80, %cst_62 {dimension_numbers = #tpu.dot_dimension_numbers<[1], [0], [0], [1], [0, 0, 1, 1], [], []>} : vector<64x32xbf16>, vector<32x64xbf16>, vector<64x64xf32> -> vector<64x64xf32>
    %84 = arith.addf %79, %83 : vector<64x64xf32>
    %c7 = arith.constant 7 : index
    %c0_63 = arith.constant 0 : index
    %c0_64 = arith.constant 0 : index
    %85 = vector.load %arg1[%c7, %c0_63, %c0_64] : memref<8x32x72xbf16, #tpu.memory_space<vmem>>, vector<1x32x72xbf16>
    %86 = vector.shape_cast %85 : vector<1x32x72xbf16> to vector<32x72xbf16>
    %87 = vector.extract_strided_slice %86 {offsets = [0, 0], sizes = [32, 64], strides = [1, 1]} : vector<32x72xbf16> to vector<32x64xbf16>
    %c7_65 = arith.constant 7 : index
    %c0_66 = arith.constant 0 : index
    %c0_67 = arith.constant 0 : index
    %88 = vector.load %arg2[%c7_65, %c0_66, %c0_67] : memref<16x64x32xbf16, #tpu.memory_space<vmem>>, vector<1x64x32xbf16>
    %89 = vector.shape_cast %88 : vector<1x64x32xbf16> to vector<64x32xbf16>
    %cst_68 = arith.constant dense<0.000000e+00> : vector<64x64xf32>
    %90 = tpu.matmul %89, %87, %cst_68 {dimension_numbers = #tpu.dot_dimension_numbers<[1], [0], [0], [1], [0, 0, 1, 1], [], []>} : vector<64x32xbf16>, vector<32x64xbf16>, vector<64x64xf32> -> vector<64x64xf32>
    %91 = arith.addf %84, %90 : vector<64x64xf32>
    %92 = vector.extract_strided_slice %86 {offsets = [0, 8], sizes = [32, 64], strides = [1, 1]} : vector<32x72xbf16> to vector<32x64xbf16>
    %c15 = arith.constant 15 : index
    %c0_69 = arith.constant 0 : index
    %c0_70 = arith.constant 0 : index
    %93 = vector.load %arg2[%c15, %c0_69, %c0_70] : memref<16x64x32xbf16, #tpu.memory_space<vmem>>, vector<1x64x32xbf16>
    %94 = vector.shape_cast %93 : vector<1x64x32xbf16> to vector<64x32xbf16>
    %cst_71 = arith.constant dense<0.000000e+00> : vector<64x64xf32>
    %95 = tpu.matmul %94, %92, %cst_71 {dimension_numbers = #tpu.dot_dimension_numbers<[1], [0], [0], [1], [0, 0, 1, 1], [], []>} : vector<64x32xbf16>, vector<32x64xbf16>, vector<64x64xf32> -> vector<64x64xf32>
    %96 = arith.addf %91, %95 : vector<64x64xf32>
    %c0_72 = arith.constant 0 : index
    %c0_73 = arith.constant 0 : index
    %97 = vector.load %arg3[%c0_72, %c0_73] : memref<64x1xf32, #tpu.memory_space<vmem>>, vector<64x1xf32>
    %98 = vector.broadcast %97 : vector<64x1xf32> to vector<64x64xf32>
    %99 = arith.addf %96, %98 : vector<64x64xf32>
    %cst_74 = arith.constant dense<0.000000e+00> : vector<64xf32>
    %100 = vector.multi_reduction <add>, %99, %cst_74 [1] : vector<64x64xf32> to vector<64xf32>
    %101 = vector.shape_cast %100 : vector<64xf32> to vector<64x1xf32>
    %cst_75 = arith.constant 6.400000e+01 : f32
    %102 = vector.broadcast %cst_75 : f32 to vector<64x1xf32>
    %103 = arith.divf %101, %102 : vector<64x1xf32>
    %104 = vector.broadcast %103 : vector<64x1xf32> to vector<64x64xf32>
    %105 = arith.subf %99, %104 : vector<64x64xf32>
    %106 = arith.mulf %105, %105 : vector<64x64xf32>
    %cst_76 = arith.constant dense<0.000000e+00> : vector<64xf32>
    %107 = vector.multi_reduction <add>, %106, %cst_76 [1] : vector<64x64xf32> to vector<64xf32>
    %108 = vector.shape_cast %107 : vector<64xf32> to vector<64x1xf32>
    %cst_77 = arith.constant 6.400000e+01 : f32
    %109 = vector.broadcast %cst_77 : f32 to vector<64x1xf32>
    %110 = arith.divf %108, %109 : vector<64x1xf32>
    %111 = vector.broadcast %103 : vector<64x1xf32> to vector<64x64xf32>
    %112 = arith.subf %99, %111 : vector<64x64xf32>
    %cst_78 = arith.constant 9.99999974E-6 : f32
    %113 = vector.broadcast %cst_78 : f32 to vector<64x1xf32>
    %114 = arith.addf %110, %113 : vector<64x1xf32>
    %115 = math.rsqrt %114 : vector<64x1xf32>
    %116 = vector.broadcast %115 : vector<64x1xf32> to vector<64x64xf32>
    %117 = arith.mulf %112, %116 : vector<64x64xf32>
    %cst_79 = arith.constant 0.000000e+00 : f32
    %118 = vector.broadcast %cst_79 : f32 to vector<64x64xf32>
    %119 = arith.cmpf ogt, %117, %118 : vector<64x64xf32>
    %cst_80 = arith.constant 2.000000e-01 : f32
    %120 = vector.broadcast %cst_80 : f32 to vector<64x64xf32>
    %121 = arith.mulf %120, %117 : vector<64x64xf32>
    %122 = arith.select %119, %117, %121 : vector<64x64xi1>, vector<64x64xf32>
    %cst_81 = arith.constant dense<0.000000e+00> : vector<64xf32>
    %123 = vector.multi_reduction <add>, %122, %cst_81 [1] : vector<64x64xf32> to vector<64xf32>
    %124 = vector.shape_cast %123 : vector<64xf32> to vector<64x1xf32>
    %cst_82 = arith.constant 6.400000e+01 : f32
    %125 = vector.broadcast %cst_82 : f32 to vector<64x1xf32>
    %126 = arith.divf %124, %125 : vector<64x1xf32>
    %c0_83 = arith.constant 0 : index
    %c0_84 = arith.constant 0 : index
    %127 = vector.load %arg4[%c0_83, %c0_84] : memref<8x64xf32, #tpu.memory_space<vmem>>, vector<8x64xf32>
    %cst_85 = arith.constant dense<0.000000e+00> : vector<8x1xf32>
    %128 = tpu.matmul %127, %126, %cst_85 {dimension_numbers = #tpu.dot_dimension_numbers<[1], [0], [0], [1], [0, 0, 1, 1], [], []>} : vector<8x64xf32>, vector<64x1xf32>, vector<8x1xf32> -> vector<8x1xf32>
    %c0_86 = arith.constant 0 : index
    %c0_87 = arith.constant 0 : index
    %129 = vector.load %arg5[%c0_86, %c0_87] : memref<8x1xf32, #tpu.memory_space<vmem>>, vector<8x1xf32>
    %130 = arith.addf %128, %129 : vector<8x1xf32>
    %c0_88 = arith.constant 0 : index
    %c0_89 = arith.constant 0 : index
    %c0_90 = arith.constant 0 : index
    %131 = vector.load %arg8[%c0_88, %c0_89, %c0_90] : memref<1x8x1xf32, #tpu.memory_space<vmem>>, vector<1x8x1xf32>
    %132 = vector.shape_cast %131 : vector<1x8x1xf32> to vector<8x1xf32>
    %133 = vector.shape_cast %130 : vector<8x1xf32> to vector<1x8x1xf32>
    tpu.vector_store %arg8[%c0_88, %c0_89, %c0_90], %133 {strides = array<i32>} : memref<1x8x1xf32, #tpu.memory_space<vmem>>, vector<1x8x1xf32>,
    %c0_91 = arith.constant 0 : index
    %c0_92 = arith.constant 0 : index
    %134 = vector.load %arg6[%c0_91, %c0_92] : memref<8x64xf32, #tpu.memory_space<vmem>>, vector<8x64xf32>
    %cst_93 = arith.constant dense<0.000000e+00> : vector<8x1xf32>
    %135 = tpu.matmul %134, %126, %cst_93 {dimension_numbers = #tpu.dot_dimension_numbers<[1], [0], [0], [1], [0, 0, 1, 1], [], []>} : vector<8x64xf32>, vector<64x1xf32>, vector<8x1xf32> -> vector<8x1xf32>
    %c0_94 = arith.constant 0 : index
    %c0_95 = arith.constant 0 : index
    %136 = vector.load %arg7[%c0_94, %c0_95] : memref<8x1xf32, #tpu.memory_space<vmem>>, vector<8x1xf32>
    %137 = arith.addf %135, %136 : vector<8x1xf32>
    %c0_96 = arith.constant 0 : index
    %c0_97 = arith.constant 0 : index
    %c0_98 = arith.constant 0 : index
    %138 = vector.load %arg9[%c0_96, %c0_97, %c0_98] : memref<1x8x1xf32, #tpu.memory_space<vmem>>, vector<1x8x1xf32>
    %139 = vector.shape_cast %138 : vector<1x8x1xf32> to vector<8x1xf32>
    %140 = vector.shape_cast %137 : vector<8x1xf32> to vector<1x8x1xf32>
    tpu.vector_store %arg9[%c0_96, %c0_97, %c0_98], %140 {strides = array<i32>} : memref<1x8x1xf32, #tpu.memory_space<vmem>>, vector<1x8x1xf32>,
    return
  }
  func.func @transform_0(%arg0: i32) -> (i32, i32, i32) {
    %c0_i32 = arith.constant 0 : i32
    %c0_i32_0 = arith.constant 0 : i32
    %c0_i32_1 = arith.constant 0 : i32
    return %arg0, %c0_i32, %c0_i32_0 : i32, i32, i32
  }
  func.func @transform_1(%arg0: i32) -> (i32, i32, i32) {
    %c0_i32 = arith.constant 0 : i32
    %c0_i32_0 = arith.constant 0 : i32
    %c0_i32_1 = arith.constant 0 : i32
    %c0_i32_2 = arith.constant 0 : i32
    return %c0_i32, %c0_i32_0, %c0_i32_1 : i32, i32, i32
  }
  func.func @transform_2(%arg0: i32) -> (i32, i32) {
    %c0_i32 = arith.constant 0 : i32
    %c0_i32_0 = arith.constant 0 : i32
    %c0_i32_1 = arith.constant 0 : i32
    return %c0_i32, %c0_i32_0 : i32, i32
  }
  func.func @transform_3(%arg0: i32) -> (i32, i32) {
    %c0_i32 = arith.constant 0 : i32
    %c0_i32_0 = arith.constant 0 : i32
    %c0_i32_1 = arith.constant 0 : i32
    return %c0_i32, %c0_i32_0 : i32, i32
  }
  func.func @transform_4(%arg0: i32) -> (i32, i32) {
    %c0_i32 = arith.constant 0 : i32
    %c0_i32_0 = arith.constant 0 : i32
    %c0_i32_1 = arith.constant 0 : i32
    return %c0_i32, %c0_i32_0 : i32, i32
  }
  func.func @transform_5(%arg0: i32) -> (i32, i32) {
    %c0_i32 = arith.constant 0 : i32
    %c0_i32_0 = arith.constant 0 : i32
    %c0_i32_1 = arith.constant 0 : i32
    return %c0_i32, %c0_i32_0 : i32, i32
  }
  func.func @transform_6(%arg0: i32) -> (i32, i32) {
    %c0_i32 = arith.constant 0 : i32
    %c0_i32_0 = arith.constant 0 : i32
    %c0_i32_1 = arith.constant 0 : i32
    return %c0_i32, %c0_i32_0 : i32, i32
  }
  func.func @transform_7(%arg0: i32) -> (i32, i32, i32) {
    %c0_i32 = arith.constant 0 : i32
    %c0_i32_0 = arith.constant 0 : i32
    %c0_i32_1 = arith.constant 0 : i32
    return %arg0, %c0_i32, %c0_i32_0 : i32, i32, i32
  }
  func.func @transform_8(%arg0: i32) -> (i32, i32, i32) {
    %c0_i32 = arith.constant 0 : i32
    %c0_i32_0 = arith.constant 0 : i32
    %c0_i32_1 = arith.constant 0 : i32
    return %arg0, %c0_i32, %c0_i32_0 : i32, i32, i32
  }
}

</mosaic_0001>

<bundles_post_ra>
// kernel: e_nlayers_forward.3
= control target key start
LH: loop header
LB: loop body
LE: loop exit
PB: predicated region body
PF: predicated region fallthrough
CT: control target
= control target key end

     0   :  { %s5048_s12 = smov 0   ;;  %s5929_s0 = inlined_call_operand.vmem [shape: bf16[16,4,1056], index: 0, kind: input, shape index: {}]   ;;  %s5930_s1 = inlined_call_operand.vmem [shape: bf16[16,16,4], index: 1, kind: input, shape index: {}]   ;;  %s5931_s2 = inlined_call_operand.vmem [shape: f32[16,1], index: 2, kind: input, shape index: {}]   ;;  %s5932_s3 = inlined_call_operand.vmem [shape: bf16[32,1024], index: 3, kind: output, shape index: {}]  }
   0x1 LB: > { %s4499_s13 = sadd.s32 4294967295, %s5023_s12   ;;  %p4503_p0 = scmp.ge.s32.totalorder %s5023_s12, 1  ;;  %s5023_s12 = sphi %s5048_s12, %s13_s12  }
   0x2   : > { %p139_p1 = scmp.lt.s32.totalorder %s5023_s12, 3 }
   0x4   : > { %p140_p2 = pnand %p4503_p0, %p139_p1 }
   0x6   : > { %143 = sbr.rel (%p140_p2) target bundleno = 628 (0x274), region = 32 }
   0xd   : > { %s4504_s14 = sshll.u32 %s4499_s13, 3  ;;  %v200_v0 = vlaneseq  ;;  %v5025_v1 = vmov 1983009808   ;;  %s5026_s19 = smov 96   ;;  %v5933_v17 = vmov 0   ;;  %vm255_vm0 = vcmask 785408  }
   0xe   : > { %p166_p3 = scmp.lt.s32.totalorder %s4504_s14, 15  ;;  %v198_v2 = vunpack.c.l.s4 %v5025_v1  ;;  %325 = vmatprep.mubr.bf16.mxu0 %v5933_v17  ;;  %368 = vmatprep.mubr.bf16.mxu1 %v5933_v17  ;;  %vm268_vm1 = vcmask 1041408   ;;  %vm264_vm2 = vcmask 31744   ;;  %s4506_s4 = sshll.u32 %s4499_s13, 1 }
   0xf   : > { %v201_v3 = vshrl.u32 %v200_v0, 7  ;;  %4984 = vset.pattern.permute.xlu1 %v5933_v17  ;;  %4983 = vset.pattern.permute.xlu0 %v5933_v17  ;;  %p173_p4 = scmp.lt.s32.totalorder %s4506_s4, 3 }
  0x10   : > { %s5964_s14 = smov (!%p166_p3, %s4504_s14), 15  ;;  %v199_v4 = vunpack.c.0.s8 %v198_v2 }
  0x11   : > { %s4971_s15 = smul.u32 18, %s5964_s14  ;;  %s5966_s4 = smov (!%p173_p4, %s4506_s4), 3 }
  0x12   : > { %v5058_v5 = vsub.s32 %v199_v4, %v201_v3  ;;  %s4722_s5 = sshll.u32 %s5966_s4, 5 }
  0x13   : > { %s5063_s18 = scalar_lea.vmem %s5929_s0, %s4971_s15  ;;  %s5904_s7 = scalar_lea.vmem %s5932_s3, %s4722_s5 }
  0x14   : > { %v180_v6 = vld [vmem:[%s5063_s18] sm:$0xff]  ;;  %v181_v7 = vld [vmem:[%s5063_s18 + $0x8] sm:$0xff]  ;;  %v4530_v19 = vld [vmem:[%s5063_s18 + $0x12] sm:$0xff] }
  0x15   : > { %v5068_v8 = vrot.slane %v180_v6, %v5058_v5  ;;  %v196_v9 = vcombine.high %v180_v6, %v180_v6  ;;  %v5076_v11 = vrot.slane %v181_v7, %v5058_v5  ;;  %v213_v13 = vcombine.high %v181_v7, %v181_v7  ;;  %v4512_v20 = vld.sshfl [vmem:[%s5063_s18 + $0x10] sm:$0x3 pattern:$0x76325410]  ;;  %v4531_v25 = vld [vmem:[%s5063_s18 + $0x1a] sm:$0xff]  ;;  %v4556_v32 = vld [vmem:[%s5063_s18 + $0x24] sm:$0xff] }
  0x16   : > { %v5118_v21 = vrot.slane %v4530_v19, %v5058_v5  ;;  %v683_v22 = vcombine.high %v4530_v19, %v4530_v19  ;;  %v5140_v27 = vrot.slane %v4531_v25, %v5058_v5  ;;  %v700_v28 = vcombine.high %v4531_v25, %v4531_v25  ;;  %v4547_v33 = vld.sshfl [vmem:[%s5063_s18 + $0x22] sm:$0x3 pattern:$0x76325410]  ;;  %v4557_v38 = vld [vmem:[%s5063_s18 + $0x2c] sm:$0xff]  ;;  %v4582_v45 = vld [vmem:[%s5063_s18 + $0x36] sm:$0xff] }
  0x17   : > { %237 = vrot.lane.b32.xlu0 %v5068_v8, %s5026_s19  ;;  %v5073_v10 = vrot.slane %v196_v9, %v5058_v5  ;;  %v5088_v14 = vcombine.high %v5068_v8, %v5068_v8  ;;  %v5094_v15 = vcombine.high %v5076_v11, %v5076_v11  ;;  %v5097_v16 = vrot.slane %v213_v13, %v5058_v5  ;;  %v4573_v46 = vld.sshfl [vmem:[%s5063_s18 + $0x34] sm:$0x3 pattern:$0x76325410]  ;;  %v4583_v51 = vld [vmem:[%s5063_s18 + $0x3e] sm:$0xff]  ;;  %v4608_v58 = vld [vmem:[%s5063_s18 + $0x48] sm:$0xff] }
  0x18   : > { %v5123_v23 = vcombine.high %v5118_v21, %v5118_v21  ;;  %v5128_v24 = vrot.slane %v683_v22, %v5058_v5  ;;  %v5146_v29 = vcombine.high %v5140_v27, %v5140_v27  ;;  %v5151_v30 = vrot.slane %v700_v28, %v5058_v5  ;;  %v4599_v59 = vld.sshfl [vmem:[%s5063_s18 + $0x46] sm:$0x3 pattern:$0x76325410]  ;;  %v4609_v0 = vld [vmem:[%s5063_s18 + $0x50] sm:$0xff]  ;;  %v4634_v9 = vld [vmem:[%s5063_s18 + $0x5a] sm:$0xff] }
  0x19   : > { %241 = vrot.lane.b32.xlu1 %v5073_v10, %s5026_s19  ;;  %v5082_v12 = vcombine.high %v5073_v10, %v5073_v10  ;;  %v5109_v18 = vcombine.high %v5097_v16, %v5097_v16  ;;  %v5166_v34 = vrot.slane %v4556_v32, %v5058_v5  ;;  %v1203_v35 = vcombine.high %v4556_v32, %v4556_v32  ;;  %v4625_v13 = vld.sshfl [vmem:[%s5063_s18 + $0x58] sm:$0x3 pattern:$0x76325410]  ;;  %v4635_v28 = vld [vmem:[%s5063_s18 + $0x62] sm:$0xff] }
  0x1a   : > { %v5135_v26 = vcombine.high %v5128_v24, %v5128_v24  ;;  %v5157_v31 = vcombine.high %v5151_v30, %v5151_v30  ;;  %v5188_v40 = vrot.slane %v4557_v38, %v5058_v5  ;;  %v1220_v41 = vcombine.high %v4557_v38, %v4557_v38 }
  0x1b   : > { %245 = vrot.lane.b32.xlu0 %v5076_v11, %s5026_s19  ;;  %v5171_v36 = vcombine.high %v5166_v34, %v5166_v34  ;;  %v5176_v37 = vrot.slane %v1203_v35, %v5058_v5  ;;  %v5214_v47 = vrot.slane %v4582_v45, %v5058_v5  ;;  %v1723_v48 = vcombine.high %v4582_v45, %v4582_v45 }
  0x1c   : > { %v5194_v42 = vcombine.high %v5188_v40, %v5188_v40  ;;  %v5199_v43 = vrot.slane %v1220_v41, %v5058_v5  ;;  %v5236_v53 = vrot.slane %v4583_v51, %v5058_v5  ;;  %v1740_v54 = vcombine.high %v4583_v51, %v4583_v51 }
  0x1d   : > { %243 = vrot.lane.b32.xlu1 %v5082_v12, %s5026_s19  ;;  %v5183_v39 = vcombine.high %v5176_v37, %v5176_v37  ;;  %v5219_v49 = vcombine.high %v5214_v47, %v5214_v47  ;;  %v5224_v50 = vrot.slane %v1723_v48, %v5058_v5  ;;  %v5262_v60 = vrot.slane %v4608_v58, %v5058_v5  ;;  %v4651_v48 = vld.sshfl [vmem:[%s5063_s18 + $0x6a] sm:$0x3 pattern:$0x76325410] }
  0x1e   : > { %v5205_v44 = vcombine.high %v5199_v43, %v5199_v43  ;;  %v5242_v55 = vcombine.high %v5236_v53, %v5236_v53  ;;  %v5247_v56 = vrot.slane %v1740_v54, %v5058_v5  ;;  %v2243_v61 = vcombine.high %v4608_v58, %v4608_v58 }
  0x1f   : > { %239 = vrot.lane.b32.xlu0 %v5088_v14, %s5026_s19  ;;  %v5231_v52 = vcombine.high %v5224_v50, %v5224_v50  ;;  %v5267_v62 = vcombine.high %v5262_v60, %v5262_v60  ;;  %v5284_v2 = vrot.slane %v4609_v0, %v5058_v5  ;;  %v2260_v3 = vcombine.high %v4609_v0, %v4609_v0 }
  0x20   : > { %v5253_v57 = vcombine.high %v5247_v56, %v5247_v56  ;;  %v5272_v63 = vrot.slane %v2243_v61, %v5058_v5  ;;  %v5310_v19 = vrot.slane %v4634_v9, %v5058_v5  ;;  %v2780_v35 = vcombine.high %v4635_v28, %v4635_v28  ;;  %v4661_v61 = vld [vmem:[%s5063_s18 + $0x74] sm:$0xff] }
  0x21   : > { %247 = vrot.lane.b32.xlu1 %v5094_v15, %s5026_s19  ;;  %v5290_v4 = vcombine.high %v5284_v2, %v5284_v2  ;;  %v5295_v6 = vrot.slane %v2260_v3, %v5058_v5  ;;  %v5380_v3 = vrot.slane %v4661_v61, %v5058_v5 }
  0x22   : > { %v5279_v1 = vcombine.high %v5272_v63, %v5272_v63  ;;  %v5315_v22 = vcombine.high %v5310_v19, %v5310_v19  ;;  %v5343_v41 = vrot.slane %v2780_v35, %v5058_v5 }
  0x23   : > { %249 = vrot.lane.b32.xlu0 %v5097_v16, %s5026_s19  ;;  %v5301_v7 = vcombine.high %v5295_v6, %v5295_v6  ;;  %5949 = vst [vmem:[#allocation7_spill] sm:$0xff] %v5380_v3 }
  0x24   : > { %5944 = vst [vmem:[#allocation2_spill] sm:$0xff] %v5343_v41  ;;  %v5349_v45 = vcombine.high %v5343_v41, %v5343_v41 }
  0x25   : > { %251 = vrot.lane.b32.xlu1 %v5109_v18, %s5026_s19 }
  0x27   : > { %253 = vrot.lane.b32.xlu0 %v4512_v20, %s5026_s19  ;;  %v2763_v20 = vcombine.high %v4634_v9, %v4634_v9  ;;  %v3300_v9 = vcombine.high %v4661_v61, %v4661_v61 }
  0x29   : > { %948 = vrot.lane.b32.xlu1 %v5118_v21, %s5026_s19  ;;  %v5320_v25 = vrot.slane %v2763_v20, %v5058_v5  ;;  %v5386_v20 = vcombine.high %v5380_v3, %v5380_v3  ;;  %v5391_v35 = vrot.slane %v3300_v9, %v5058_v5 }
  0x2b   : > { %950 = vrot.lane.b32.xlu0 %v5123_v23, %s5026_s19  ;;  %v5327_v32 = vcombine.high %v5320_v25, %v5320_v25  ;;  %5950 = vst [vmem:[#allocation8_spill] sm:$0xff] %v5386_v20  ;;  %5951 = vst [vmem:[#allocation9_spill] sm:$0xff] %v5391_v35 }
  0x2d   : > { %952 = vrot.lane.b32.xlu1 %v5128_v24, %s5026_s19 }
  0x2f   : > { %954 = vrot.lane.b32.xlu0 %v5135_v26, %s5026_s19 }
  0x31   : > { %956 = vrot.lane.b32.xlu1 %v5140_v27, %s5026_s19 }
  0x33   : > { %958 = vrot.lane.b32.xlu0 %v5146_v29, %s5026_s19 }
  0x35   : > { %960 = vrot.lane.b32.xlu1 %v5151_v30, %s5026_s19 }
  0x37   : > { %962 = vrot.lane.b32.xlu0 %v5157_v31, %s5026_s19 }
  0x39   : > { %964 = vrot.lane.b32.xlu1 %v4547_v33, %s5026_s19  ;;  %v5332_v33 = vrot.slane %v4635_v28, %v5058_v5 }
  0x3b   : > { %1468 = vrot.lane.b32.xlu0 %v5166_v34, %s5026_s19  ;;  %v5338_v38 = vcombine.high %v5332_v33, %v5332_v33 }
  0x3d   : > { %1470 = vrot.lane.b32.xlu1 %v5171_v36, %s5026_s19 }
  0x3f   : > { %1472 = vrot.lane.b32.xlu0 %v5176_v37, %s5026_s19 }
  0x41   : > { %1474 = vrot.lane.b32.xlu1 %v5183_v39, %s5026_s19 }
  0x43   : > { %1476 = vrot.lane.b32.xlu0 %v5188_v40, %s5026_s19 }
  0x45   : > { %1478 = vrot.lane.b32.xlu1 %v5194_v42, %s5026_s19 }
  0x47   : > { %1480 = vrot.lane.b32.xlu0 %v5199_v43, %s5026_s19 }
  0x49   : > { %1482 = vrot.lane.b32.xlu1 %v5205_v44, %s5026_s19 }
  0x4b   : > { %1484 = vrot.lane.b32.xlu0 %v4573_v46, %s5026_s19  ;;  %v4660_v46 = vld [vmem:[%s5063_s18 + $0x6c] sm:$0xff] }
  0x4c   : > { %v5358_v51 = vrot.slane %v4660_v46, %v5058_v5  ;;  %v3283_v54 = vcombine.high %v4660_v46, %v4660_v46 }
  0x4d   : > { %1988 = vrot.lane.b32.xlu1 %v5214_v47, %s5026_s19 }
  0x4e   : > { %5945 = vst [vmem:[#allocation3_spill] sm:$0xff] %v5358_v51  ;;  %v5363_v58 = vcombine.high %v5358_v51, %v5358_v51 }
  0x4f   : > { %1990 = vrot.lane.b32.xlu0 %v5219_v49, %s5026_s19 }
  0x50   : > { %5946 = vst [vmem:[#allocation4_spill] sm:$0xff] %v5363_v58 }
  0x51   : > { %1992 = vrot.lane.b32.xlu1 %v5224_v50, %s5026_s19 }
  0x53   : > { %1994 = vrot.lane.b32.xlu0 %v5231_v52, %s5026_s19 }
  0x55   : > { %1996 = vrot.lane.b32.xlu1 %v5236_v53, %s5026_s19 }
  0x57   : > { %1998 = vrot.lane.b32.xlu0 %v5242_v55, %s5026_s19 }
  0x59   : > { %2000 = vrot.lane.b32.xlu1 %v5247_v56, %s5026_s19 }
  0x5b   : > { %2002 = vrot.lane.b32.xlu0 %v5253_v57, %s5026_s19 }
  0x5d   : > { %2004 = vrot.lane.b32.xlu1 %v4599_v59, %s5026_s19  ;;  %v5368_v59 = vrot.slane %v3283_v54, %v5058_v5  ;;  %v4686_v54 = vld [vmem:[%s5063_s18 + $0x7e] sm:$0xff] }
  0x5f   : > { %2508 = vrot.lane.b32.xlu0 %v5262_v60, %s5026_s19  ;;  %5947 = vst [vmem:[#allocation5_spill] sm:$0xff] %v5368_v59  ;;  %v5375_v0 = vcombine.high %v5368_v59, %v5368_v59 }
  0x61   : > { %2510 = vrot.lane.b32.xlu1 %v5267_v62, %s5026_s19  ;;  %5948 = vst [vmem:[#allocation6_spill] sm:$0xff] %v5375_v0 }
  0x63   : > { %2512 = vrot.lane.b32.xlu0 %v5272_v63, %s5026_s19 }
  0x65   : > { %2514 = vrot.lane.b32.xlu1 %v5279_v1, %s5026_s19 }
  0x67   : > { %2516 = vrot.lane.b32.xlu0 %v5284_v2, %s5026_s19 }
  0x69   : > { %2518 = vrot.lane.b32.xlu1 %v5290_v4, %s5026_s19 }
  0x6b   : > { %2520 = vrot.lane.b32.xlu0 %v5295_v6, %s5026_s19 }
  0x6d   : > { %2522 = vrot.lane.b32.xlu1 %v5301_v7, %s5026_s19 }
  0x6f   : > { %2524 = vrot.lane.b32.xlu0 %v4625_v13, %s5026_s19 }
  0x71   : > { %3028 = vrot.lane.b32.xlu1 %v5310_v19, %s5026_s19 }
  0x73   : > { %3030 = vrot.lane.b32.xlu0 %v5315_v22, %s5026_s19 }
  0x75   : > { %3032 = vrot.lane.b32.xlu1 %v5320_v25, %s5026_s19 }
  0x77   : > { %3034 = vrot.lane.b32.xlu0 %v5327_v32, %s5026_s19 }
  0x79   : > { %3036 = vrot.lane.b32.xlu1 %v5332_v33, %s5026_s19 }
  0x7b   : > { %3038 = vrot.lane.b32.xlu0 %v5338_v38, %s5026_s19 }
  0x7d   : > { %3040 = vrot.lane.b32.xlu1 %v5343_v41, %s5026_s19 }
  0x7f   : > { %3042 = vrot.lane.b32.xlu0 %v5349_v45, %s5026_s19 }
  0x81   : > { %3044 = vrot.lane.b32.xlu1 %v4651_v48, %s5026_s19  ;;  %v5397_v48 = vcombine.high %v5391_v35, %v5391_v35 }
  0x83   : > { %3548 = vrot.lane.b32.xlu0 %v5358_v51, %s5026_s19  ;;  %5952 = vst [vmem:[#allocation10_spill] sm:$0xff] %v5397_v48  ;;  %v4993_v51 = vld [vmem:[%s5930_s1 + $0x40] sm:$0xff]  }
  0x85   : > { %3550 = vrot.lane.b32.xlu1 %v5363_v58, %s5026_s19  ;;  %v3803_v58 = vcombine.high %v4686_v54, %v4686_v54 }
  0x87   : > { %3552 = vrot.lane.b32.xlu0 %v5368_v59, %s5026_s19 }
  0x89   : > { %v238_v13 = vpop.permute.xlu0 %237  ;;  %3554 = vrot.lane.b32.xlu1 %v5375_v0, %s5026_s19  ;;  %v5413_v0 = vrot.slane %v4686_v54, %v5058_v5 }
  0x8b   : > { %v242_v28 = vpop.permute.xlu1 %241  ;;  %3556 = vrot.lane.b32.xlu0 %v5380_v3, %s5026_s19  ;;  %v4677_v3 = vld.sshfl [vmem:[%s5063_s18 + $0x7c] sm:$0x3 pattern:$0x76325410] }
  0x8d   : > { %v246_v46 = vpop.permute.xlu0 %245  ;;  %3558 = vrot.lane.b32.xlu1 %v5386_v20, %s5026_s19 }
  0x8f   : > { %v244_v61 = vpop.permute.xlu1 %243  ;;  %3560 = vrot.lane.b32.xlu0 %v5391_v35, %s5026_s19 }
  0x90   : > { %v259_v17 = vsel %vm255_vm0, %v244_v61, %v246_v46  ;;  %v258_v9 = vsel %vm255_vm0, %v242_v28, %v244_v61 }
  0x91   : > { %v240_v59 = vpop.permute.xlu0 %239  ;;  %4515 = vmatprep.subr.msk.bf16.mxu1 %vm268_vm1, %v259_v17  ;;  %v276_v20 = vsel %vm268_vm1, %v258_v9, 0  ;;  %3562 = vrot.lane.b32.xlu1 %v5397_v48, %s5026_s19 }
  0x92   : > { %337 = vmatpush1.bf16.msra.mxu1 %v276_v20  ;;  %v257_v35 = vsel %vm255_vm0, %v240_v59, %v242_v28  ;;  %v256_v61 = vsel %vm255_vm0, %v238_v13, %v240_v59  ;;  %v5426_v59 = vcombine.high %v5413_v0, %v5413_v0  ;;  %v5953_v20 = vmov 0  }
  0x93   : > { %4513 = vmatprep.subr.msk.bf16.mxu0 %vm268_vm1, %v257_v35  ;;  %v248_v17 = vpop.permute.xlu1 %247  ;;  %v270_v9 = vsel %vm268_vm1, %v256_v61, 0  ;;  %3564 = vrot.lane.b32.xlu0 %v4677_v3, %s5026_s19  ;;  %v5431_v28 = vrot.slane %v3803_v58, %v5058_v5 }
  0x94   : > { %v260_v48 = vsel %vm255_vm0, %v246_v46, %v248_v17  ;;  %294 = vmatpush1.bf16.msra.mxu0 %v270_v9  ;;  %v4687_v46 = vld [vmem:[%s5063_s18 + $0x86] sm:$0xff]  ;;  %v474_v9 = vsel %vm268_vm1, %v5068_v8, 0 }
  0x95   : > { %v250_v41 = vpop.permute.xlu0 %249  ;;  %4516 = vmatmul.mubr.msk.bf16.vlgmr.msra.gmra.mrb[0].mxu1 %vm264_vm2, %v4993_v51  ;;  %4068 = vrot.lane.b32.xlu1 %v5413_v0, %s5026_s19  ;;  %v282_v3 = vsel %vm268_vm1, %v260_v48, 0  ;;  %v5445_v58 = vcombine.high %v5431_v28, %v5431_v28  ;;  %v4995_v8 = vld [vmem:[%s5930_s1] sm:$0xff]  }
  0x96   : > { %v261_v13 = vsel %vm255_vm0, %v248_v17, %v250_v41  ;;  %454 = vmatprep.mubr.bf16.mxu1 %v5953_v20 }
  0x97   : > { %4514 = vmatmul.mubr.msk.bf16.vlgmr.msra.gmra.mrb[0].mxu0 %vm264_vm2, %v4993_v51  ;;  %4517 = vmatprep.subr.msk.bf16.mxu0 %vm268_vm1, %v261_v13  ;;  %v252_v35 = vpop.permute.xlu1 %251  ;;  %v480_v13 = vsel %vm268_vm1, %v5073_v10, 0  ;;  %v486_v10 = vsel %vm268_vm1, %v5076_v11, 0 }
  0x98   : > { %v262_v54 = vsel %vm255_vm0, %v250_v41, %v252_v35  ;;  %380 = vmatpush1.bf16.msra.mxu0 %v282_v3  ;;  %411 = vmatprep.mubr.bf16.mxu0 %v5953_v20  ;;  %v5451_v41 = vrot.slane %v4687_v46, %v5058_v5 }
  0x99   : > { %v254_v61 = vpop.permute.xlu0 %253  ;;  %4522 = vmatprep.subr.msk.bf16.mxu0 %vm268_vm1, %v5088_v14  ;;  %4070 = vrot.lane.b32.xlu0 %v5426_v59, %s5026_s19  ;;  %v288_v17 = vsel %vm268_vm1, %v262_v54, 0  ;;  %v3820_v14 = vcombine.high %v4687_v46, %v4687_v46  ;;  %v727_v46 = vsel %vm268_vm1, %v5128_v24, 0  ;;  %v733_v24 = vsel %vm268_vm1, %v5140_v27, 0 }
  0x9a   : > { %v263_v48 = vsel %vm255_vm0, %v252_v35, %v254_v61  ;;  %4072 = vrot.lane.b32.xlu1 %v5431_v28, %s5026_s19  ;;  %v5469_v3 = vcombine.high %v5451_v41, %v5451_v41  ;;  %v721_v35 = vsel %vm268_vm1, %v5118_v21, 0  ;;  %v4997_v21 = vld [vmem:[%s5930_s1 + $0x10] sm:$0xff]   ;;  %v739_v54 = vsel %vm268_vm1, %v5151_v30, 0 }
  0x9b   : > { %4519 = vmatprep.subr.msk.bf16.mxu1 %vm268_vm1, %v263_v48 }
  0x9c   : > { %423 = vmatpush1.bf16.msra.mxu1 %v288_v17 }
  0x9d   : > { %4524 = vmatprep.subr.msk.bf16.mxu1 %vm268_vm1, %v5082_v12  ;;  %4074 = vrot.lane.b32.xlu0 %v5445_v58, %s5026_s19  ;;  %v5472_v12 = vrot.slane %v3820_v14, %v5058_v5  ;;  %v949_v5 = vpop.permute.xlu1 %948  ;;  %v951_v11 = vpop.permute.xlu0 %950 }
  0x9e   : > { %4076 = vrot.lane.b32.xlu1 %v5451_v41, %s5026_s19  ;;  %v966_v30 = vsel %vm255_vm0, %v949_v5, %v951_v11 }
  0x9f   : > { %4518 = vmatmul.mubr.msk.bf16.vlgmr.msra.gmra.mrb[4].mxu0 %vm264_vm2, %v4993_v51  ;;  %4520 = vmatmul.mubr.msk.bf16.vlgmr.msra.gmra.mrb[4].mxu1 %vm264_vm2, %v4993_v51  ;;  %v4703_v51 = vld.sshfl [vmem:[%s5063_s18 + $0x8e] sm:$0x3 pattern:$0x76325410] }
  0xa0   : > { %498 = vmatpush1.bf16.msra.mxu0 %v474_v9  ;;  %541 = vmatpush1.bf16.msra.mxu1 %v480_v13  ;;  %v978_v13 = vsel %vm268_vm1, %v966_v30, 0 }
  0xa1   : > { %529 = vmatprep.mubr.bf16.mxu0 %v5953_v20  ;;  %572 = vmatprep.mubr.bf16.mxu1 %v5953_v20 }
  0xa2   : > { %4526 = vmatprep.subr.msk.bf16.mxu0 %vm268_vm1, %v5094_v15  ;;  %4528 = vmatprep.subr.msk.bf16.mxu1 %vm268_vm1, %v5109_v18  ;;  %v492_v15 = vsel %vm268_vm1, %v5097_v16, 0  ;;  %v5495_v18 = vcombine.high %v5472_v12, %v5472_v12  ;;  %v953_v16 = vpop.permute.xlu1 %952 }
  0xa3   : > { %4078 = vrot.lane.b32.xlu0 %v5469_v3, %s5026_s19  ;;  %4080 = vrot.lane.b32.xlu1 %v5472_v12, %s5026_s19 }
  0xa7   : > { %4523 = vmatmul.mubr.msk.bf16.vlgmr.msra.gmra.mrb[0].mxu0 %vm264_vm2, %v4995_v8  ;;  %4525 = vmatmul.mubr.msk.bf16.vlgmr.msra.gmra.mrb[0].mxu1 %vm264_vm2, %v4995_v8 }
  0xa8   : > { %584 = vmatpush1.bf16.msra.mxu0 %v486_v10  ;;  %627 = vmatpush1.bf16.msra.mxu1 %v492_v15  ;;  %v4999_v15 = vld [vmem:[%s5930_s1 + $0x50] sm:$0xff]  }
  0xa9   : > { %615 = vmatprep.mubr.bf16.mxu0 %v5953_v20  ;;  %658 = vmatprep.mubr.bf16.mxu1 %v5953_v20 }
  0xaa   : > { %4536 = vmatprep.subr.msk.bf16.mxu0 %vm268_vm1, %v5123_v23  ;;  %4538 = vmatprep.subr.msk.bf16.mxu1 %vm268_vm1, %v5135_v26  ;;  %v955_v23 = vpop.permute.xlu0 %954  ;;  %v957_v26 = vpop.permute.xlu1 %956 }
  0xab   : > { %4082 = vrot.lane.b32.xlu0 %v5495_v18, %s5026_s19  ;;  %4084 = vrot.lane.b32.xlu1 %v4703_v51, %s5026_s19  ;;  %v968_v27 = vsel %vm255_vm0, %v953_v16, %v955_v23 }
  0xac   : > { %v984_v9 = vsel %vm268_vm1, %v968_v27, 0 }
  0xae   : > { %v959_v61 = vpop.permute.xlu0 %958  ;;  %v961_v48 = vpop.permute.xlu1 %960 }
  0xaf   : > { %4527 = vmatmul.mubr.msk.bf16.vlgmr.msra.gmra.mrb[4].mxu0 %vm264_vm2, %v4995_v8  ;;  %4529 = vmatmul.mubr.msk.bf16.vlgmr.msra.gmra.mrb[4].mxu1 %vm264_vm2, %v4995_v8  ;;  %v971_v8 = vsel %vm255_vm0, %v959_v61, %v961_v48  ;;  %v970_v51 = vsel %vm255_vm0, %v957_v26, %v959_v61 }
  0xb0   : > { %745 = vmatpush1.bf16.msra.mxu0 %v721_v35  ;;  %788 = vmatpush1.bf16.msra.mxu1 %v727_v46  ;;  %v990_v35 = vsel %vm268_vm1, %v970_v51, 0 }
  0xb1   : > { %776 = vmatprep.mubr.bf16.mxu0 %v5953_v20  ;;  %819 = vmatprep.mubr.bf16.mxu1 %v5953_v20 }
  0xb2   : > { %4540 = vmatprep.subr.msk.bf16.mxu0 %vm268_vm1, %v5146_v29  ;;  %4542 = vmatprep.subr.msk.bf16.mxu1 %vm268_vm1, %v5157_v31  ;;  %v967_v29 = vsel %vm255_vm0, %v951_v11, %v953_v16  ;;  %v969_v31 = vsel %vm255_vm0, %v955_v23, %v957_v26  ;;  %v963_v17 = vpop.permute.xlu0 %962  ;;  %v965_v14 = vpop.permute.xlu1 %964  ;;  %v1241_v26 = vsel %vm268_vm1, %v5166_v34, 0  ;;  %v5001_v34 = vld [vmem:[%s5930_s1 + $0x8] sm:$0xff]  }
  0xb3   : > { %v973_v10 = vsel %vm255_vm0, %v963_v17, %v965_v14  ;;  %v972_v5 = vsel %vm255_vm0, %v961_v48, %v963_v17 }
  0xb4   : > { %v996_v16 = vsel %vm268_vm1, %v972_v5, 0 }
  0xb6   : > { %v1469_v11 = vpop.permute.xlu0 %1468  ;;  %v1471_v23 = vpop.permute.xlu1 %1470 }
  0xb7   : > { %4537 = vmatmul.mubr.msk.bf16.vlgmr.msra.gmra.mrb[0].mxu0 %vm264_vm2, %v4997_v21  ;;  %4539 = vmatmul.mubr.msk.bf16.vlgmr.msra.gmra.mrb[0].mxu1 %vm264_vm2, %v4997_v21 }
  0xb8   : > { %831 = vmatpush1.bf16.msra.mxu0 %v733_v24  ;;  %874 = vmatpush1.bf16.msra.mxu1 %v739_v54 }
  0xb9   : > { %862 = vmatprep.mubr.bf16.mxu0 %v5953_v20  ;;  %905 = vmatprep.mubr.bf16.mxu1 %v5953_v20 }
  0xba   : > { %4548 = vmatprep.subr.msk.bf16.mxu0 %vm268_vm1, %v967_v29  ;;  %4550 = vmatprep.subr.msk.bf16.mxu1 %vm268_vm1, %v969_v31  ;;  %v1473_v46 = vpop.permute.xlu0 %1472  ;;  %v1475_v54 = vpop.permute.xlu1 %1474 }
  0xbe   : > { %v1477_v24 = vpop.permute.xlu0 %1476  ;;  %v1479_v61 = vpop.permute.xlu1 %1478 }
  0xbf   : > { %4541 = vmatmul.mubr.msk.bf16.vlgmr.msra.gmra.mrb[4].mxu0 %vm264_vm2, %v4997_v21  ;;  %4543 = vmatmul.mubr.msk.bf16.vlgmr.msra.gmra.mrb[4].mxu1 %vm264_vm2, %v4997_v21  ;;  %v1247_v21 = vsel %vm268_vm1, %v5176_v37, 0  ;;  %v1259_v37 = vsel %vm268_vm1, %v5199_v43, 0  ;;  %v1486_v43 = vsel %vm255_vm0, %v1469_v11, %v1471_v23  ;;  %v1761_v11 = vsel %vm268_vm1, %v5214_v47, 0  ;;  %v5005_v47 = vld [vmem:[%s5930_s1 + $0x18] sm:$0xff]  }
  0xc0   : > { %1002 = vmatpush1.bf16.msra.mxu0 %v978_v13  ;;  %1045 = vmatpush1.bf16.msra.mxu1 %v984_v9  ;;  %v1498_v27 = vsel %vm268_vm1, %v1486_v43, 0  ;;  %v5003_v9 = vld [vmem:[%s5930_s1 + $0x48] sm:$0xff]   ;;  %v1490_v13 = vsel %vm255_vm0, %v1477_v24, %v1479_v61 }
  0xc1   : > { %1033 = vmatprep.mubr.bf16.mxu0 %v5953_v20  ;;  %1076 = vmatprep.mubr.bf16.mxu1 %v5953_v20  ;;  %v1510_v5 = vsel %vm268_vm1, %v1490_v13, 0 }
  0xc2   : > { %4552 = vmatprep.subr.msk.bf16.mxu0 %vm268_vm1, %v971_v8  ;;  %4554 = vmatprep.subr.msk.bf16.mxu1 %vm268_vm1, %v973_v10  ;;  %v1483_v29 = vpop.permute.xlu1 %1482 }
  0xc6   : > { %v1989_v8 = vpop.permute.xlu1 %1988 }
  0xc7   : > { %4549 = vmatmul.mubr.msk.bf16.vlgmr.msra.gmra.mrb[0].mxu0 %vm264_vm2, %v4999_v15  ;;  %4551 = vmatmul.mubr.msk.bf16.vlgmr.msra.gmra.mrb[0].mxu1 %vm264_vm2, %v4999_v15 }
  0xc8   : > { %1088 = vmatpush1.bf16.msra.mxu0 %v990_v35  ;;  %1131 = vmatpush1.bf16.msra.mxu1 %v996_v16  ;;  %v1767_v16 = vsel %vm268_vm1, %v5224_v50, 0  ;;  %v1779_v50 = vsel %vm268_vm1, %v5247_v56, 0 }
  0xc9   : > { %1119 = vmatprep.mubr.bf16.mxu0 %v5953_v20  ;;  %1162 = vmatprep.mubr.bf16.mxu1 %v5953_v20 }
  0xca   : > { %4562 = vmatprep.subr.msk.bf16.mxu0 %vm268_vm1, %v5171_v36  ;;  %4564 = vmatprep.subr.msk.bf16.mxu1 %vm268_vm1, %v5183_v39  ;;  %v1253_v36 = vsel %vm268_vm1, %v5188_v40, 0  ;;  %v1481_v39 = vpop.permute.xlu0 %1480  ;;  %v1488_v40 = vsel %vm255_vm0, %v1473_v46, %v1475_v54  ;;  %v1993_v51 = vpop.permute.xlu1 %1992 }
  0xcb   : > { %v1504_v31 = vsel %vm268_vm1, %v1488_v40, 0  ;;  %v1491_v30 = vsel %vm255_vm0, %v1479_v61, %v1481_v39  ;;  %v1492_v14 = vsel %vm255_vm0, %v1481_v39, %v1483_v29  ;;  %v5007_v39 = vld [vmem:[%s5930_s1 + $0x58] sm:$0xff]  }
  0xcc   : > { %v1516_v10 = vsel %vm268_vm1, %v1492_v14, 0 }
  0xce   : > { %v1485_v48 = vpop.permute.xlu0 %1484 }
  0xcf   : > { %4553 = vmatmul.mubr.msk.bf16.vlgmr.msra.gmra.mrb[4].mxu0 %vm264_vm2, %v4999_v15  ;;  %4555 = vmatmul.mubr.msk.bf16.vlgmr.msra.gmra.mrb[4].mxu1 %vm264_vm2, %v4999_v15  ;;  %v1493_v17 = vsel %vm255_vm0, %v1483_v29, %v1485_v48  ;;  %v2281_v29 = vsel %vm268_vm1, %v5262_v60, 0  ;;  %v5009_v60 = vld [vmem:[%s5930_s1 + $0x20] sm:$0xff]  }
  0xd0   : > { %1265 = vmatpush1.bf16.msra.mxu0 %v1241_v26  ;;  %1308 = vmatpush1.bf16.msra.mxu1 %v1247_v21 }
  0xd1   : > { %1296 = vmatprep.mubr.bf16.mxu0 %v5953_v20  ;;  %1339 = vmatprep.mubr.bf16.mxu1 %v5953_v20 }
  0xd2   : > { %4566 = vmatprep.subr.msk.bf16.mxu0 %vm268_vm1, %v5194_v42  ;;  %4568 = vmatprep.subr.msk.bf16.mxu1 %vm268_vm1, %v5205_v44  ;;  %v1487_v42 = vsel %vm255_vm0, %v1471_v23, %v1473_v46  ;;  %v1489_v44 = vsel %vm255_vm0, %v1475_v54, %v1477_v24  ;;  %v1991_v15 = vpop.permute.xlu0 %1990  ;;  %v1997_v46 = vpop.permute.xlu1 %1996 }
  0xd3   : > { %v2006_v56 = vsel %vm255_vm0, %v1989_v8, %v1991_v15 }
  0xd4   : > { %v2018_v54 = vsel %vm268_vm1, %v2006_v56, 0 }
  0xd6   : > { %v1995_v35 = vpop.permute.xlu0 %1994  ;;  %v2001_v23 = vpop.permute.xlu1 %2000 }
  0xd7   : > { %4563 = vmatmul.mubr.msk.bf16.vlgmr.msra.gmra.mrb[0].mxu0 %vm264_vm2, %v5001_v34  ;;  %4565 = vmatmul.mubr.msk.bf16.vlgmr.msra.gmra.mrb[0].mxu1 %vm264_vm2, %v5001_v34 }
  0xd8   : > { %1351 = vmatpush1.bf16.msra.mxu0 %v1253_v36  ;;  %1394 = vmatpush1.bf16.msra.mxu1 %v1259_v37 }
  0xd9   : > { %1382 = vmatprep.mubr.bf16.mxu0 %v5953_v20  ;;  %1425 = vmatprep.mubr.bf16.mxu1 %v5953_v20 }
  0xda   : > { %4574 = vmatprep.subr.msk.bf16.mxu0 %vm268_vm1, %v1487_v42  ;;  %4576 = vmatprep.subr.msk.bf16.mxu1 %vm268_vm1, %v1489_v44  ;;  %v2005_v21 = vpop.permute.xlu1 %2004 }
  0xde   : > { %v2511_v48 = vpop.permute.xlu1 %2510 }
  0xdf   : > { %4567 = vmatmul.mubr.msk.bf16.vlgmr.msra.gmra.mrb[4].mxu0 %vm264_vm2, %v5001_v34  ;;  %4569 = vmatmul.mubr.msk.bf16.vlgmr.msra.gmra.mrb[4].mxu1 %vm264_vm2, %v5001_v34 }
  0xe0   : > { %1522 = vmatpush1.bf16.msra.mxu0 %v1498_v27  ;;  %1565 = vmatpush1.bf16.msra.mxu1 %v1504_v31  ;;  %v2287_v31 = vsel %vm268_vm1, %v5272_v63, 0  ;;  %v2293_v63 = vsel %vm268_vm1, %v5284_v2, 0 }
  0xe1   : > { %1553 = vmatprep.mubr.bf16.mxu0 %v5953_v20  ;;  %1596 = vmatprep.mubr.bf16.mxu1 %v5953_v20 }
  0xe2   : > { %4578 = vmatprep.subr.msk.bf16.mxu0 %vm268_vm1, %v1491_v30  ;;  %4580 = vmatprep.subr.msk.bf16.mxu1 %vm268_vm1, %v1493_v17  ;;  %v2515_v30 = vpop.permute.xlu1 %2514  ;;  %v2299_v17 = vsel %vm268_vm1, %v5295_v6, 0 }
  0xe7   : > { %4575 = vmatmul.mubr.msk.bf16.vlgmr.msra.gmra.mrb[0].mxu0 %vm264_vm2, %v5003_v9  ;;  %4577 = vmatmul.mubr.msk.bf16.vlgmr.msra.gmra.mrb[0].mxu1 %vm264_vm2, %v5003_v9 }
  0xe8   : > { %1608 = vmatpush1.bf16.msra.mxu0 %v1510_v5  ;;  %1651 = vmatpush1.bf16.msra.mxu1 %v1516_v10 }
  0xe9   : > { %1639 = vmatprep.mubr.bf16.mxu0 %v5953_v20  ;;  %1682 = vmatprep.mubr.bf16.mxu1 %v5953_v20 }
  0xea   : > { %4588 = vmatprep.subr.msk.bf16.mxu0 %vm268_vm1, %v5219_v49  ;;  %4590 = vmatprep.subr.msk.bf16.mxu1 %vm268_vm1, %v5231_v52  ;;  %v1773_v49 = vsel %vm268_vm1, %v5236_v53, 0  ;;  %v1999_v52 = vpop.permute.xlu0 %1998  ;;  %v2008_v53 = vsel %vm255_vm0, %v1993_v51, %v1995_v35 }
  0xeb   : > { %v2024_v24 = vsel %vm268_vm1, %v2008_v53, 0  ;;  %v2011_v34 = vsel %vm255_vm0, %v1999_v52, %v2001_v23  ;;  %v2010_v61 = vsel %vm255_vm0, %v1997_v46, %v1999_v52 }
  0xec   : > { %v2030_v40 = vsel %vm268_vm1, %v2010_v61, 0 }
  0xee   : > { %v2003_v26 = vpop.permute.xlu0 %2002 }
  0xef   : > { %4579 = vmatmul.mubr.msk.bf16.vlgmr.msra.gmra.mrb[4].mxu0 %vm264_vm2, %v5003_v9  ;;  %4581 = vmatmul.mubr.msk.bf16.vlgmr.msra.gmra.mrb[4].mxu1 %vm264_vm2, %v5003_v9  ;;  %v2013_v36 = vsel %vm255_vm0, %v2003_v26, %v2005_v21  ;;  %v2012_v37 = vsel %vm255_vm0, %v2001_v23, %v2003_v26  ;;  %v2519_v9 = vpop.permute.xlu1 %2518  ;;  %v2801_v23 = vsel %vm268_vm1, %v5310_v19, 0  ;;  %v5011_v19 = vld [vmem:[%s5930_s1 + $0x30] sm:$0xff]  }
  0xf0   : > { %1785 = vmatpush1.bf16.msra.mxu0 %v1761_v11  ;;  %1828 = vmatpush1.bf16.msra.mxu1 %v1767_v16  ;;  %v2036_v44 = vsel %vm268_vm1, %v2012_v37, 0  ;;  %v5010_v16 = vld [vmem:[%s5930_s1 + $0x60] sm:$0xff]  }
  0xf1   : > { %1816 = vmatprep.mubr.bf16.mxu0 %v5953_v20  ;;  %1859 = vmatprep.mubr.bf16.mxu1 %v5953_v20 }
  0xf2   : > { %4592 = vmatprep.subr.msk.bf16.mxu0 %vm268_vm1, %v5242_v55  ;;  %4594 = vmatprep.subr.msk.bf16.mxu1 %vm268_vm1, %v5253_v57  ;;  %v2007_v55 = vsel %vm255_vm0, %v1991_v15, %v1993_v51  ;;  %v2009_v57 = vsel %vm255_vm0, %v1995_v35, %v1997_v46  ;;  %v2509_v42 = vpop.permute.xlu0 %2508 }
  0xf3   : > { %v2526_v6 = vsel %vm255_vm0, %v2509_v42, %v2511_v48  ;;  %v2523_v8 = vpop.permute.xlu1 %2522  ;;  %v5012_v42 = vld [vmem:[%s5930_s1 + $0x70] sm:$0xff]  }
  0xf4   : > { %v2538_v5 = vsel %vm268_vm1, %v2526_v6, 0 }
  0xf6   : > { %v2513_v43 = vpop.permute.xlu0 %2512 }
  0xf7   : > { %4589 = vmatmul.mubr.msk.bf16.vlgmr.msra.gmra.mrb[0].mxu0 %vm264_vm2, %v5005_v47  ;;  %4591 = vmatmul.mubr.msk.bf16.vlgmr.msra.gmra.mrb[0].mxu1 %vm264_vm2, %v5005_v47  ;;  %v2528_v2 = vsel %vm255_vm0, %v2513_v43, %v2515_v30  ;;  %v3029_v46 = vpop.permute.xlu1 %3028 }
  0xf8   : > { %1871 = vmatpush1.bf16.msra.mxu0 %v1773_v49  ;;  %1914 = vmatpush1.bf16.msra.mxu1 %v1779_v50  ;;  %v2544_v10 = vsel %vm268_vm1, %v2528_v2, 0  ;;  %v5961_v2 = vld [vmem:[#allocation7_spill] sm:$0xff] }
  0xf9   : > { %1902 = vmatprep.mubr.bf16.mxu0 %v5953_v20  ;;  %1945 = vmatprep.mubr.bf16.mxu1 %v5953_v20  ;;  %v3333_v6 = vsel %vm268_vm1, %v5961_v2, 0 }
  0xfa   : > { %4600 = vmatprep.subr.msk.bf16.mxu0 %vm268_vm1, %v2007_v55  ;;  %4602 = vmatprep.subr.msk.bf16.mxu1 %vm268_vm1, %v2009_v57  ;;  %v2517_v27 = vpop.permute.xlu0 %2516  ;;  %v2807_v55 = vsel %vm268_vm1, %v5320_v25, 0  ;;  %v5954_v25 = vld [vmem:[#allocation2_spill] sm:$0xff] }
  0xfb   : > { %v2530_v35 = vsel %vm255_vm0, %v2517_v27, %v2519_v9  ;;  %v3033_v52 = vpop.permute.xlu1 %3032 }
  0xfc   : > { %v2550_v49 = vsel %vm268_vm1, %v2530_v35, 0 }
  0xfe   : > { %v2521_v14 = vpop.permute.xlu0 %2520 }
  0xff   : > { %4593 = vmatmul.mubr.msk.bf16.vlgmr.msra.gmra.mrb[4].mxu0 %vm264_vm2, %v5005_v47  ;;  %4595 = vmatmul.mubr.msk.bf16.vlgmr.msra.gmra.mrb[4].mxu1 %vm264_vm2, %v5005_v47  ;;  %v2531_v15 = vsel %vm255_vm0, %v2519_v9, %v2521_v14  ;;  %v2532_v11 = vsel %vm255_vm0, %v2521_v14, %v2523_v8  ;;  %v3037_v53 = vpop.permute.xlu1 %3036  ;;  %v5959_v9 = vld [vmem:[#allocation8_spill] sm:$0xff] }
 0x100   : > { %2042 = vmatpush1.bf16.msra.mxu0 %v2018_v54  ;;  %2085 = vmatpush1.bf16.msra.mxu1 %v2024_v24  ;;  %v2556_v47 = vsel %vm268_vm1, %v2532_v11, 0 }
 0x101   : > { %2073 = vmatprep.mubr.bf16.mxu0 %v5953_v20  ;;  %2116 = vmatprep.mubr.bf16.mxu1 %v5953_v20 }
 0x102   : > { %4604 = vmatprep.subr.msk.bf16.mxu0 %vm268_vm1, %v2011_v34  ;;  %4606 = vmatprep.subr.msk.bf16.mxu1 %vm268_vm1, %v2013_v36  ;;  %v2525_v13 = vpop.permute.xlu0 %2524 }
 0x103   : > { %v2533_v51 = vsel %vm255_vm0, %v2523_v8, %v2525_v13  ;;  %v3041_v26 = vpop.permute.xlu1 %3040  ;;  %v5962_v13 = vld [vmem:[#allocation9_spill] sm:$0xff] }
 0x104   : > { %v3339_v8 = vsel %vm268_vm1, %v5962_v13, 0 }
 0x106   : > { %v3031_v50 = vpop.permute.xlu0 %3030 }
 0x107   : > { %4601 = vmatmul.mubr.msk.bf16.vlgmr.msra.gmra.mrb[0].mxu0 %vm264_vm2, %v5007_v39  ;;  %4603 = vmatmul.mubr.msk.bf16.vlgmr.msra.gmra.mrb[0].mxu1 %vm264_vm2, %v5007_v39  ;;  %v3046_v21 = vsel %vm255_vm0, %v3029_v46, %v3031_v50  ;;  %v3045_v54 = vpop.permute.xlu1 %3044 }
 0x108   : > { %2128 = vmatpush1.bf16.msra.mxu0 %v2030_v40  ;;  %2171 = vmatpush1.bf16.msra.mxu1 %v2036_v44  ;;  %v3058_v36 = vsel %vm268_vm1, %v3046_v21, 0 }
 0x109   : > { %2159 = vmatprep.mubr.bf16.mxu0 %v5953_v20  ;;  %2202 = vmatprep.mubr.bf16.mxu1 %v5953_v20 }
 0x10a   : > { %4614 = vmatprep.subr.msk.bf16.mxu0 %vm268_vm1, %v5267_v62  ;;  %4616 = vmatprep.subr.msk.bf16.mxu1 %vm268_vm1, %v5279_v1  ;;  %v4309_v62 = vld [vmem:[%s5931_s2] sm:$0xff]  ;;  %v4310_v1 = vld [vmem:[%s5931_s2 + $0x8] sm:$0xff]  ;;  %v3035_v57 = vpop.permute.xlu0 %3034 }
 0x10b   : > { %4313 = vperm.xlu0 %4983, %v4309_v62   ;;  %4318 = vperm.xlu1 %4984, %v4310_v1   ;;  %v5957_v62 = vld [vmem:[#allocation3_spill] sm:$0xff] }
 0x10c   : > { %v3321_v1 = vsel %vm268_vm1, %v5957_v62, 0 }
 0x10e   : > { %v3039_v56 = vpop.permute.xlu0 %3038 }
 0x10f   : > { %4605 = vmatmul.mubr.msk.bf16.vlgmr.msra.gmra.mrb[4].mxu0 %vm264_vm2, %v5007_v39  ;;  %4607 = vmatmul.mubr.msk.bf16.vlgmr.msra.gmra.mrb[4].mxu1 %vm264_vm2, %v5007_v39  ;;  %v3051_v37 = vsel %vm255_vm0, %v3039_v56, %v3041_v26  ;;  %v3050_v44 = vsel %vm255_vm0, %v3037_v53, %v3039_v56  ;;  %v3841_v56 = vsel %vm268_vm1, %v5413_v0, 0  ;;  %v5015_v0 = vld [vmem:[%s5930_s1 + $0x38] sm:$0xff]  }
 0x110   : > { %2305 = vmatpush1.bf16.msra.mxu0 %v2281_v29  ;;  %2348 = vmatpush1.bf16.msra.mxu1 %v2287_v31  ;;  %v5955_v29 = vld [vmem:[#allocation4_spill] sm:$0xff]  ;;  %v5956_v31 = vld [vmem:[#allocation6_spill] sm:$0xff] }
 0x111   : > { %2336 = vmatprep.mubr.bf16.mxu0 %v5953_v20  ;;  %2379 = vmatprep.mubr.bf16.mxu1 %v5953_v20 }
 0x112   : > { %4618 = vmatprep.subr.msk.bf16.mxu0 %vm268_vm1, %v5290_v4  ;;  %4620 = vmatprep.subr.msk.bf16.mxu1 %vm268_vm1, %v5301_v7  ;;  %v2527_v4 = vsel %vm255_vm0, %v2511_v48, %v2513_v43  ;;  %v2529_v7 = vsel %vm255_vm0, %v2515_v30, %v2517_v27  ;;  %v3043_v24 = vpop.permute.xlu0 %3042  ;;  %v3070_v48 = vsel %vm268_vm1, %v3050_v44, 0  ;;  %v3551_v30 = vpop.permute.xlu1 %3550 }
 0x113   : > { %v3053_v39 = vsel %vm255_vm0, %v3043_v24, %v3045_v54  ;;  %v3052_v61 = vsel %vm255_vm0, %v3041_v26, %v3043_v24  ;;  %v3847_v26 = vsel %vm268_vm1, %v5431_v28, 0  ;;  %v3859_v28 = vsel %vm268_vm1, %v5472_v12, 0 }
 0x114   : > { %v3076_v43 = vsel %vm268_vm1, %v3052_v61, 0  ;;  %v5016_v61 = vld [vmem:[%s5930_s1 + $0x78] sm:$0xff]  }
 0x116   : > { %v3549_v40 = vpop.permute.xlu0 %3548  ;;  %v3555_v14 = vpop.permute.xlu1 %3554 }
 0x117   : > { %4615 = vmatmul.mubr.msk.bf16.vlgmr.msra.gmra.mrb[0].mxu0 %vm264_vm2, %v5009_v60  ;;  %4617 = vmatmul.mubr.msk.bf16.vlgmr.msra.gmra.mrb[0].mxu1 %vm264_vm2, %v5009_v60 }
 0x118   : > { %2391 = vmatpush1.bf16.msra.mxu0 %v2293_v63  ;;  %2434 = vmatpush1.bf16.msra.mxu1 %v2299_v17 }
 0x119   : > { %2422 = vmatprep.mubr.bf16.mxu0 %v5953_v20  ;;  %2465 = vmatprep.mubr.bf16.mxu1 %v5953_v20 }
 0x11a   : > { %4626 = vmatprep.subr.msk.bf16.mxu0 %vm268_vm1, %v2527_v4  ;;  %4628 = vmatprep.subr.msk.bf16.mxu1 %vm268_vm1, %v2529_v7  ;;  %v3553_v27 = vpop.permute.xlu0 %3552  ;;  %v5960_v4 = vld [vmem:[#allocation10_spill] sm:$0xff]  ;;  %v5013_v7 = vld [vmem:[%s5930_s1 + $0x28] sm:$0xff]  }
 0x11b   : > { %v3568_v11 = vsel %vm255_vm0, %v3553_v27, %v3555_v14 }
 0x11e   : > { %v3557_v17 = vpop.permute.xlu0 %3556 }
 0x11f   : > { %4619 = vmatmul.mubr.msk.bf16.vlgmr.msra.gmra.mrb[4].mxu0 %vm264_vm2, %v5009_v60  ;;  %4621 = vmatmul.mubr.msk.bf16.vlgmr.msra.gmra.mrb[4].mxu1 %vm264_vm2, %v5009_v60  ;;  %v5958_v60 = vld [vmem:[#allocation5_spill] sm:$0xff] }
 0x120   : > { %2562 = vmatpush1.bf16.msra.mxu0 %v2538_v5  ;;  %2605 = vmatpush1.bf16.msra.mxu1 %v2544_v10  ;;  %v3327_v63 = vsel %vm268_vm1, %v5958_v60, 0  ;;  %v3559_v5 = vpop.permute.xlu1 %3558 }
 0x121   : > { %2593 = vmatprep.mubr.bf16.mxu0 %v5953_v20  ;;  %2636 = vmatprep.mubr.bf16.mxu1 %v5953_v20 }
 0x122   : > { %4630 = vmatprep.subr.msk.bf16.mxu0 %vm268_vm1, %v2531_v15  ;;  %4632 = vmatprep.subr.msk.bf16.mxu1 %vm268_vm1, %v2533_v51  ;;  %v3561_v10 = vpop.permute.xlu0 %3560  ;;  %v3567_v15 = vsel %vm255_vm0, %v3551_v30, %v3553_v27  ;;  %v3569_v51 = vsel %vm255_vm0, %v3555_v14, %v3557_v17 }
 0x124   : > { %v3563_v46 = vpop.permute.xlu1 %3562 }
 0x126   : > { %v3565_v35 = vpop.permute.xlu0 %3564 }
 0x127   : > { %4627 = vmatmul.mubr.msk.bf16.vlgmr.msra.gmra.mrb[0].mxu0 %vm264_vm2, %v5010_v16  ;;  %4629 = vmatmul.mubr.msk.bf16.vlgmr.msra.gmra.mrb[0].mxu1 %vm264_vm2, %v5010_v16 }
 0x128   : > { %2648 = vmatpush1.bf16.msra.mxu0 %v2550_v49  ;;  %2691 = vmatpush1.bf16.msra.mxu1 %v2556_v47  ;;  %v3584_v47 = vsel %vm268_vm1, %v3568_v11, 0 }
 0x129   : > { %2679 = vmatprep.mubr.bf16.mxu0 %v5953_v20  ;;  %2722 = vmatprep.mubr.bf16.mxu1 %v5953_v20 }
 0x12a   : > { %4640 = vmatprep.subr.msk.bf16.mxu0 %vm268_vm1, %v5315_v22  ;;  %4642 = vmatprep.subr.msk.bf16.mxu1 %vm268_vm1, %v5327_v32  ;;  %v2813_v22 = vsel %vm268_vm1, %v5332_v33, 0  ;;  %v2819_v32 = vsel %vm268_vm1, %v5954_v25, 0  ;;  %v3048_v33 = vsel %vm255_vm0, %v3033_v52, %v3035_v57  ;;  %v4071_v25 = vpop.permute.xlu0 %4070 }
 0x12b   : > { %v3064_v34 = vsel %vm268_vm1, %v3048_v33, 0 }
 0x12f   : > { %4631 = vmatmul.mubr.msk.bf16.vlgmr.msra.gmra.mrb[4].mxu0 %vm264_vm2, %v5010_v16  ;;  %4633 = vmatmul.mubr.msk.bf16.vlgmr.msra.gmra.mrb[4].mxu1 %vm264_vm2, %v5010_v16  ;;  %v3566_v16 = vsel %vm255_vm0, %v3549_v40, %v3551_v30 }
 0x130   : > { %2825 = vmatpush1.bf16.msra.mxu0 %v2801_v23  ;;  %2868 = vmatpush1.bf16.msra.mxu1 %v2807_v55  ;;  %v3578_v49 = vsel %vm268_vm1, %v3566_v16, 0  ;;  %v3572_v23 = vsel %vm255_vm0, %v3561_v10, %v3563_v46  ;;  %v5014_v55 = vld [vmem:[%s5930_s1 + $0x68] sm:$0xff]  }
 0x131   : > { %2856 = vmatprep.mubr.bf16.mxu0 %v5953_v20  ;;  %2899 = vmatprep.mubr.bf16.mxu1 %v5953_v20 }
 0x132   : > { %4644 = vmatprep.subr.msk.bf16.mxu0 %vm268_vm1, %v5338_v38  ;;  %4646 = vmatprep.subr.msk.bf16.mxu1 %vm268_vm1, %v5349_v45  ;;  %v3047_v38 = vsel %vm255_vm0, %v3031_v50, %v3033_v52  ;;  %v3049_v45 = vsel %vm255_vm0, %v3035_v57, %v3037_v53  ;;  %v3571_v50 = vsel %vm255_vm0, %v3559_v5, %v3561_v10  ;;  %v4069_v53 = vpop.permute.xlu1 %4068 }
 0x133   : > { %v3573_v52 = vsel %vm255_vm0, %v3563_v46, %v3565_v35  ;;  %v3570_v57 = vsel %vm255_vm0, %v3557_v17, %v3559_v5  ;;  %v4086_v12 = vsel %vm255_vm0, %v4069_v53, %v4071_v25 }
 0x137   : > { %4641 = vmatmul.mubr.msk.bf16.vlgmr.msra.gmra.mrb[0].mxu0 %vm264_vm2, %v5011_v19  ;;  %4643 = vmatmul.mubr.msk.bf16.vlgmr.msra.gmra.mrb[0].mxu1 %vm264_vm2, %v5011_v19 }
 0x138   : > { %2911 = vmatpush1.bf16.msra.mxu0 %v2813_v22  ;;  %2954 = vmatpush1.bf16.msra.mxu1 %v2819_v32  ;;  %v3590_v22 = vsel %vm268_vm1, %v3570_v57, 0  ;;  %v4073_v32 = vpop.permute.xlu1 %4072 }
 0x139   : > { %2942 = vmatprep.mubr.bf16.mxu0 %v5953_v20  ;;  %2985 = vmatprep.mubr.bf16.mxu1 %v5953_v20 }
 0x13a   : > { %4652 = vmatprep.subr.msk.bf16.mxu0 %vm268_vm1, %v3047_v38  ;;  %4654 = vmatprep.subr.msk.bf16.mxu1 %vm268_vm1, %v3049_v45  ;;  %v4075_v38 = vpop.permute.xlu0 %4074 }
 0x13c   : > { %v4077_v45 = vpop.permute.xlu1 %4076 }
 0x13f   : > { %4645 = vmatmul.mubr.msk.bf16.vlgmr.msra.gmra.mrb[4].mxu0 %vm264_vm2, %v5011_v19  ;;  %4647 = vmatmul.mubr.msk.bf16.vlgmr.msra.gmra.mrb[4].mxu1 %vm264_vm2, %v5011_v19  ;;  %v3596_v19 = vsel %vm268_vm1, %v3572_v23, 0 }
 0x140   : > { %3082 = vmatpush1.bf16.msra.mxu0 %v3058_v36  ;;  %3125 = vmatpush1.bf16.msra.mxu1 %v3064_v34  ;;  %v4081_v33 = vpop.permute.xlu1 %4080  ;;  %v4098_v34 = vsel %vm268_vm1, %v4086_v12, 0 }
 0x141   : > { %3113 = vmatprep.mubr.bf16.mxu0 %v5953_v20  ;;  %3156 = vmatprep.mubr.bf16.mxu1 %v5953_v20 }
 0x142   : > { %4656 = vmatprep.subr.msk.bf16.mxu0 %vm268_vm1, %v3051_v37  ;;  %4658 = vmatprep.subr.msk.bf16.mxu1 %vm268_vm1, %v3053_v39 }
 0x144   : > { %v4085_v24 = vpop.permute.xlu1 %4084 }
 0x147   : > { %4653 = vmatmul.mubr.msk.bf16.vlgmr.msra.gmra.mrb[0].mxu0 %vm264_vm2, %v5012_v42  ;;  %4655 = vmatmul.mubr.msk.bf16.vlgmr.msra.gmra.mrb[0].mxu1 %vm264_vm2, %v5012_v42 }
 0x148   : > { %3168 = vmatpush1.bf16.msra.mxu0 %v3070_v48  ;;  %3211 = vmatpush1.bf16.msra.mxu1 %v3076_v43 }
 0x149   : > { %3199 = vmatprep.mubr.bf16.mxu0 %v5953_v20  ;;  %3242 = vmatprep.mubr.bf16.mxu1 %v5953_v20 }
 0x14a   : > { %4666 = vmatprep.subr.msk.bf16.mxu0 %vm268_vm1, %v5955_v29  ;;  %4668 = vmatprep.subr.msk.bf16.mxu1 %vm268_vm1, %v5956_v31 }
 0x14f   : > { %4657 = vmatmul.mubr.msk.bf16.vlgmr.msra.gmra.mrb[4].mxu0 %vm264_vm2, %v5012_v42  ;;  %4659 = vmatmul.mubr.msk.bf16.vlgmr.msra.gmra.mrb[4].mxu1 %vm264_vm2, %v5012_v42 }
 0x150   : > { %3345 = vmatpush1.bf16.msra.mxu0 %v3321_v1  ;;  %3388 = vmatpush1.bf16.msra.mxu1 %v3327_v63 }
 0x151   : > { %3376 = vmatprep.mubr.bf16.mxu0 %v5953_v20  ;;  %3419 = vmatprep.mubr.bf16.mxu1 %v5953_v20 }
 0x152   : > { %4670 = vmatprep.subr.msk.bf16.mxu0 %vm268_vm1, %v5959_v9  ;;  %4672 = vmatprep.subr.msk.bf16.mxu1 %vm268_vm1, %v5960_v4 }
 0x157   : > { %4667 = vmatmul.mubr.msk.bf16.vlgmr.msra.gmra.mrb[0].mxu0 %vm264_vm2, %v5013_v7  ;;  %4669 = vmatmul.mubr.msk.bf16.vlgmr.msra.gmra.mrb[0].mxu1 %vm264_vm2, %v5013_v7 }
 0x158   : > { %3431 = vmatpush1.bf16.msra.mxu0 %v3333_v6  ;;  %3474 = vmatpush1.bf16.msra.mxu1 %v3339_v8 }
 0x159   : > { %3462 = vmatprep.mubr.bf16.mxu0 %v5953_v20  ;;  %3505 = vmatprep.mubr.bf16.mxu1 %v5953_v20 }
 0x15a   : > { %4678 = vmatprep.subr.msk.bf16.mxu0 %vm268_vm1, %v3567_v15  ;;  %4680 = vmatprep.subr.msk.bf16.mxu1 %vm268_vm1, %v3569_v51 }
 0x15f   : > { %4671 = vmatmul.mubr.msk.bf16.vlgmr.msra.gmra.mrb[4].mxu0 %vm264_vm2, %v5013_v7  ;;  %4673 = vmatmul.mubr.msk.bf16.vlgmr.msra.gmra.mrb[4].mxu1 %vm264_vm2, %v5013_v7 }
 0x160   : > { %3602 = vmatpush1.bf16.msra.mxu0 %v3578_v49  ;;  %3645 = vmatpush1.bf16.msra.mxu1 %v3584_v47 }
 0x161   : > { %3633 = vmatprep.mubr.bf16.mxu0 %v5953_v20  ;;  %3676 = vmatprep.mubr.bf16.mxu1 %v5953_v20 }
 0x162   : > { %4682 = vmatprep.subr.msk.bf16.mxu0 %vm268_vm1, %v3571_v50  ;;  %4684 = vmatprep.subr.msk.bf16.mxu1 %vm268_vm1, %v3573_v52 }
 0x167   : > { %4679 = vmatmul.mubr.msk.bf16.vlgmr.msra.gmra.mrb[0].mxu0 %vm264_vm2, %v5014_v55  ;;  %4681 = vmatmul.mubr.msk.bf16.vlgmr.msra.gmra.mrb[0].mxu1 %vm264_vm2, %v5014_v55 }
 0x168   : > { %3688 = vmatpush1.bf16.msra.mxu0 %v3590_v22  ;;  %3731 = vmatpush1.bf16.msra.mxu1 %v3596_v19 }
 0x169   : > { %3719 = vmatprep.mubr.bf16.mxu0 %v5953_v20  ;;  %3762 = vmatprep.mubr.bf16.mxu1 %v5953_v20 }
 0x16a   : > { %4692 = vmatprep.subr.msk.bf16.mxu0 %vm268_vm1, %v5426_v59  ;;  %4694 = vmatprep.subr.msk.bf16.mxu1 %vm268_vm1, %v5445_v58  ;;  %v3853_v59 = vsel %vm268_vm1, %v5451_v41, 0  ;;  %v4079_v58 = vpop.permute.xlu0 %4078  ;;  %v4088_v41 = vsel %vm255_vm0, %v4073_v32, %v4075_v38 }
 0x16b   : > { %v4104_v54 = vsel %vm268_vm1, %v4088_v41, 0  ;;  %v4091_v36 = vsel %vm255_vm0, %v4079_v58, %v4081_v33  ;;  %v4090_v42 = vsel %vm255_vm0, %v4077_v45, %v4079_v58 }
 0x16c   : > { %v4110_v40 = vsel %vm268_vm1, %v4090_v42, 0 }
 0x16e   : > { %v4083_v21 = vpop.permute.xlu0 %4082 }
 0x16f   : > { %4683 = vmatmul.mubr.msk.bf16.vlgmr.msra.gmra.mrb[4].mxu0 %vm264_vm2, %v5014_v55  ;;  %4685 = vmatmul.mubr.msk.bf16.vlgmr.msra.gmra.mrb[4].mxu1 %vm264_vm2, %v5014_v55  ;;  %v4093_v37 = vsel %vm255_vm0, %v4083_v21, %v4085_v24  ;;  %v4092_v39 = vsel %vm255_vm0, %v4081_v33, %v4083_v21 }
 0x170   : > { %3865 = vmatpush1.bf16.msra.mxu0 %v3841_v56  ;;  %3908 = vmatpush1.bf16.msra.mxu1 %v3847_v26  ;;  %v4116_v44 = vsel %vm268_vm1, %v4092_v39, 0 }
 0x171   : > { %3896 = vmatprep.mubr.bf16.mxu0 %v5953_v20  ;;  %3939 = vmatprep.mubr.bf16.mxu1 %v5953_v20 }
 0x172   : > { %4696 = vmatprep.subr.msk.bf16.mxu0 %vm268_vm1, %v5469_v3  ;;  %4698 = vmatprep.subr.msk.bf16.mxu1 %vm268_vm1, %v5495_v18  ;;  %v4087_v3 = vsel %vm255_vm0, %v4071_v25, %v4073_v32  ;;  %v4089_v18 = vsel %vm255_vm0, %v4075_v38, %v4077_v45 }
 0x177   : > { %4693 = vmatmul.mubr.msk.bf16.vlgmr.msra.gmra.mrb[0].mxu0 %vm264_vm2, %v5015_v0  ;;  %4695 = vmatmul.mubr.msk.bf16.vlgmr.msra.gmra.mrb[0].mxu1 %vm264_vm2, %v5015_v0 }
 0x178   : > { %3951 = vmatpush1.bf16.msra.mxu0 %v3853_v59  ;;  %3994 = vmatpush1.bf16.msra.mxu1 %v3859_v28 }
 0x179   : > { %3982 = vmatprep.mubr.bf16.mxu0 %v5953_v20  ;;  %4025 = vmatprep.mubr.bf16.mxu1 %v5953_v20 }
 0x17a   : > { %4704 = vmatprep.subr.msk.bf16.mxu0 %vm268_vm1, %v4087_v3  ;;  %4706 = vmatprep.subr.msk.bf16.mxu1 %vm268_vm1, %v4089_v18 }
 0x17f   : > { %4697 = vmatmul.mubr.msk.bf16.vlgmr.msra.gmra.mrb[4].mxu0 %vm264_vm2, %v5015_v0  ;;  %4699 = vmatmul.mubr.msk.bf16.vlgmr.msra.gmra.mrb[4].mxu1 %vm264_vm2, %v5015_v0 }
 0x180   : > { %4122 = vmatpush1.bf16.msra.mxu0 %v4098_v34  ;;  %4165 = vmatpush1.bf16.msra.mxu1 %v4104_v54 }
 0x181   : > { %4153 = vmatprep.mubr.bf16.mxu0 %v5953_v20  ;;  %4196 = vmatprep.mubr.bf16.mxu1 %v5953_v20 }
 0x182   : > { %4708 = vmatprep.subr.msk.bf16.mxu0 %vm268_vm1, %v4091_v36  ;;  %4710 = vmatprep.subr.msk.bf16.mxu1 %vm268_vm1, %v4093_v37 }
 0x187   : > { %4705 = vmatmul.mubr.msk.bf16.vlgmr.msra.gmra.mrb[0].mxu0 %vm264_vm2, %v5016_v61  ;;  %4707 = vmatmul.mubr.msk.bf16.vlgmr.msra.gmra.mrb[0].mxu1 %vm264_vm2, %v5016_v61 }
 0x188   : > { %4208 = vmatpush1.bf16.msra.mxu0 %v4110_v40  ;;  %4251 = vmatpush1.bf16.msra.mxu1 %v4116_v44 }
 0x189   : > { %4239 = vmatprep.mubr.bf16.mxu0 %v5953_v20  ;;  %4282 = vmatprep.mubr.bf16.mxu1 %v5953_v20 }
 0x18a   : > { %v5891_v43 = vpop.permute.xlu0 %4313  ;;  %v5893_v48 = vpop.permute.xlu1 %4318 }
 0x18f   : > { %4709 = vmatmul.mubr.msk.bf16.vlgmr.msra.gmra.mrb[4].mxu0 %vm264_vm2, %v5016_v61  ;;  %4711 = vmatmul.mubr.msk.bf16.vlgmr.msra.gmra.mrb[4].mxu1 %vm264_vm2, %v5016_v61 }
 0x25a   : > { %v4155_v29 = vpop.f32.mrb[0].mxu0  ;;  %v4198_v31 = vpop.f32.mrb[0].mxu1 }
 0x25b   : > { %v4321_v27 = vadd.f32 %v5891_v43, %v4155_v29  ;;  %v4323_v30 = vadd.f32 %v5891_v43, %v4198_v31  ;;  %v4157_v62 = vpop.f32.mrb[1].mxu0  ;;  %v4200_v20 = vpop.f32.mrb[1].mxu1 }
 0x25c   : > { %v4322_v1 = vadd.f32 %v5891_v43, %v4157_v62  ;;  %v4324_v60 = vadd.f32 %v5891_v43, %v4200_v20  ;;  %v4159_v63 = vpop.f32.mrb[2].mxu0  ;;  %v4202_v17 = vpop.f32.mrb[2].mxu1 }
 0x25d   : > { %vm4337_vm3 = vcmp.gt.f32.partialorder %v4321_v27, 0.0  ;;  %v4353_v14 = vmul.f32 0.2, %v4321_v27  ;;  %vm4339_vm4 = vcmp.gt.f32.partialorder %v4323_v30, 0.0  ;;  %v4355_v9 = vmul.f32 0.2, %v4323_v30 }
 0x25e   : > { %vm4338_vm5 = vcmp.gt.f32.partialorder %v4322_v1, 0.0  ;;  %v4354_v4 = vmul.f32 0.2, %v4322_v1  ;;  %vm4340_vm6 = vcmp.gt.f32.partialorder %v4324_v60, 0.0  ;;  %v4356_v7 = vmul.f32 0.2, %v4324_v60 }
 0x25f   : > { %v4369_v2 = vsel %vm4337_vm3, %v4321_v27, %v4353_v14  ;;  %v4371_v6 = vsel %vm4339_vm4, %v4323_v30, %v4355_v9  ;;  %v4161_v13 = vpop.f32.mrb[3].mxu0  ;;  %v4329_v8 = vadd.f32 %v5893_v48, %v4159_v63  ;;  %v4204_v10 = vpop.f32.mrb[3].mxu1  ;;  %v4331_v5 = vadd.f32 %v5893_v48, %v4202_v17 }
 0x260   : > { %v4370_v15 = vsel %vm4338_vm5, %v4322_v1, %v4354_v4  ;;  %v4372_v51 = vsel %vm4340_vm6, %v4324_v60, %v4356_v7  ;;  %v4330_v11 = vadd.f32 %v5893_v48, %v4161_v13  ;;  %v4332_v16 = vadd.f32 %v5893_v48, %v4204_v10 }
 0x261   : > { %v4723_v35 = vpack.c.bf16 %v4370_v15, %v4369_v2  ;;  %v4724_v46 = vpack.c.bf16 %v4372_v51, %v4371_v6  ;;  %vm4345_vm7 = vcmp.gt.f32.partialorder %v4329_v8, 0.0  ;;  %v4361_v47 = vmul.f32 0.2, %v4329_v8 }
 0x262   : > { %vm4346_vm8 = vcmp.gt.f32.partialorder %v4330_v11, 0.0  ;;  %v4362_v49 = vmul.f32 0.2, %v4330_v11  ;;  %vm4347_vm9 = vcmp.gt.f32.partialorder %v4331_v5, 0.0  ;;  %vm4348_vm10 = vcmp.gt.f32.partialorder %v4332_v16, 0.0  ;;  %v4241_v50 = vpop.f32.mrb[4].mxu0 }
 0x263   : > { %4433 = vst [vmem:[%s5904_s7] sm:$0xff] %v4723_v35  ;;  %4434 = vst [vmem:[%s5904_s7 + $0x8] sm:$0xff] %v4724_v46  ;;  %v4377_v52 = vsel %vm4345_vm7, %v4329_v8, %v4361_v47  ;;  %v4363_v23 = vmul.f32 0.2, %v4331_v5  ;;  %v4364_v55 = vmul.f32 0.2, %v4332_v16  ;;  %v4325_v57 = vadd.f32 %v5891_v43, %v4241_v50  ;;  %v4284_v53 = vpop.f32.mrb[4].mxu1 }
 0x264   : > { %v4243_v19 = vpop.f32.mrb[5].mxu0  ;;  %v4378_v22 = vsel %vm4346_vm8, %v4330_v11, %v4362_v49  ;;  %v4327_v25 = vadd.f32 %v5891_v43, %v4284_v53  ;;  %v4286_v56 = vpop.f32.mrb[5].mxu1 }
 0x265   : > { %v4326_v32 = vadd.f32 %v5891_v43, %v4243_v19  ;;  %v4245_v26 = vpop.f32.mrb[6].mxu0  ;;  %v4727_v38 = vpack.c.bf16 %v4378_v22, %v4377_v52  ;;  %v4379_v45 = vsel %vm4347_vm9, %v4331_v5, %v4363_v23  ;;  %v4380_v0 = vsel %vm4348_vm10, %v4332_v16, %v4364_v55  ;;  %v4288_v59 = vpop.f32.mrb[6].mxu1 }
 0x266   : > { %vm4341_vm11 = vcmp.gt.f32.partialorder %v4325_v57, 0.0  ;;  %v4247_v28 = vpop.f32.mrb[7].mxu0  ;;  %v4728_v58 = vpack.c.bf16 %v4380_v0, %v4379_v45  ;;  %v4357_v33 = vmul.f32 0.2, %v4325_v57  ;;  %vm4343_vm12 = vcmp.gt.f32.partialorder %v4327_v25, 0.0  ;;  %v4290_v18 = vpop.f32.mrb[7].mxu1 }
 0x267   : > { %v4359_v3 = vmul.f32 0.2, %v4327_v25  ;;  %4437 = vst [vmem:[%s5904_s7 + $0x20] sm:$0xff] %v4727_v38  ;;  %vm4342_vm13 = vcmp.gt.f32.partialorder %v4326_v32, 0.0  ;;  %v4358_v41 = vmul.f32 0.2, %v4326_v32  ;;  %v4328_v12 = vadd.f32 %v5891_v43, %v4286_v56 }
 0x268   : > { %v4333_v21 = vadd.f32 %v5893_v48, %v4245_v26  ;;  %4438 = vst [vmem:[%s5904_s7 + $0x28] sm:$0xff] %v4728_v58  ;;  %v4373_v24 = vsel %vm4341_vm11, %v4325_v57, %v4357_v33  ;;  %v4335_v34 = vadd.f32 %v5893_v48, %v4288_v59  ;;  %v4334_v36 = vadd.f32 %v5893_v48, %v4247_v28 }
 0x269   : > { %v4375_v54 = vsel %vm4343_vm12, %v4327_v25, %v4359_v3  ;;  %v4374_v37 = vsel %vm4342_vm13, %v4326_v32, %v4358_v41  ;;  %vm4344_vm14 = vcmp.gt.f32.partialorder %v4328_v12, 0.0  ;;  %v4360_v39 = vmul.f32 0.2, %v4328_v12 }
 0x26a   : > { %vm4349_vm15 = vcmp.gt.f32.partialorder %v4333_v21, 0.0  ;;  %v4725_v61 = vpack.c.bf16 %v4374_v37, %v4373_v24  ;;  %v4365_v42 = vmul.f32 0.2, %v4333_v21  ;;  %vm4351_vm0 = vcmp.gt.f32.partialorder %v4335_v34, 0.0 }
 0x26b   : > { %v4367_v44 = vmul.f32 0.2, %v4335_v34  ;;  %v4376_v40 = vsel %vm4344_vm14, %v4328_v12, %v4360_v39  ;;  %vm4350_vm1 = vcmp.gt.f32.partialorder %v4334_v36, 0.0  ;;  %v4366_v43 = vmul.f32 0.2, %v4334_v36 }
 0x26c   : > { %v4336_v29 = vadd.f32 %v5893_v48, %v4290_v18  ;;  %4435 = vst [vmem:[%s5904_s7 + $0x10] sm:$0xff] %v4725_v61  ;;  %v4726_v31 = vpack.c.bf16 %v4376_v40, %v4375_v54  ;;  %v4381_v27 = vsel %vm4349_vm15, %v4333_v21, %v4365_v42 }
 0x26d   : > { %v4383_v30 = vsel %vm4351_vm0, %v4335_v34, %v4367_v44  ;;  %v4382_v62 = vsel %vm4350_vm1, %v4334_v36, %v4366_v43 }
 0x26e   : > { %vm4352_vm2 = vcmp.gt.f32.partialorder %v4336_v29, 0.0  ;;  %v4368_v20 = vmul.f32 0.2, %v4336_v29  ;;  %4436 = vst [vmem:[%s5904_s7 + $0x18] sm:$0xff] %v4726_v31  ;;  %v4729_v1 = vpack.c.bf16 %v4382_v62, %v4381_v27 }
 0x270   : > { %v4384_v60 = vsel %vm4352_vm2, %v4336_v29, %v4368_v20  ;;  %4439 = vst [vmem:[%s5904_s7 + $0x30] sm:$0xff] %v4729_v1 }
 0x271   : > { %v4730_v63 = vpack.c.bf16 %v4384_v60, %v4383_v30 }
 0x273   : > { %4440 = vst [vmem:[%s5904_s7 + $0x38] sm:$0xff] %v4730_v63 }
 0x274 PF: > { %s13_s12 = sadd.s32 1, %s5023_s12  }
 0x275   : > { %p10_p5 = scmp.ge.s32.totalorder %s13_s12, 4  }
 0x277   :  { %12 = sbr.rel (!%p10_p5) target bundleno = 1 (0x1), region = 84 }

// kernel: e_nlayers_forward.4
= control target key start
LH: loop header
LB: loop body
LE: loop exit
PB: predicated region body
PF: predicated region fallthrough
CT: control target
= control target key end

     0   :  { %s2355_s12 = smov 0   ;;  %s2674_s0 = inlined_call_operand.vmem [shape: bf16[16,16,272], index: 0, kind: input, shape index: {}]   ;;  %s2675_s1 = inlined_call_operand.vmem [shape: bf16[16,32,16], index: 1, kind: input, shape index: {}]   ;;  %s2676_s2 = inlined_call_operand.vmem [shape: f32[32,1], index: 2, kind: input, shape index: {}]   ;;  %s2677_s3 = inlined_call_operand.vmem [shape: bf16[64,256], index: 3, kind: output, shape index: {}]  }
   0x1 LB: > { %s1923_s13 = sadd.s32 4294967295, %s2331_s12   ;;  %p1927_p0 = scmp.ge.s32.totalorder %s2331_s12, 1  ;;  %s2331_s12 = sphi %s2355_s12, %s13_s12  }
   0x2   : > { %p139_p1 = scmp.lt.s32.totalorder %s2331_s12, 3 }
   0x4   : > { %p140_p2 = pnand %p1927_p0, %p139_p1 }
   0x5   : > { %s1928_s14 = sshll.u32 (!%p140_p2), %s1923_s13, 3  ;;  %v2333_v0 = vmov (!%p140_p2), 0   ;;  %s2334_s19 = smov (!%p140_p2), 112   ;;  %v2285_v6 = vld [vmem:[%s2675_s1 + $0x40] sm:$0xff] (!%p140_p2)   ;;  %vm227_vm0 = vcmask (!%p140_p2), 130048   ;;  %v2286_v10 = vld [vmem:[%s2675_s1 + $0x48] sm:$0xff] (!%p140_p2)  }
   0x6   : > { %143 = sbr.rel (%p140_p2) target bundleno = 800 (0x320), region = 32  ;;  %p166_p3 = scmp.lt.s32.totalorder (!%p140_p2), %s1928_s14, 15  ;;  %1008 = vmatprep.mubr.bf16.mxu0 (!%p140_p2), %v2333_v0  ;;  %266 = vmatprep.mubr.bf16.mxu1 (!%p140_p2), %v2333_v0  ;;  %v1716_v29 = vld [vmem:[%s2676_s2] sm:$0xff] (!%p140_p2)  ;;  %v1717_v30 = vld [vmem:[%s2676_s2 + $0x8] sm:$0xff] (!%p140_p2)  ;;  %vm222_vm1 = vcmask (!%p140_p2), 916480   ;;  %v1719_v32 = vld [vmem:[%s2676_s2 + $0x18] sm:$0xff] (!%p140_p2) }
   0x7   : > { %2251 = vset.pattern.permute.xlu0 (!%p140_p2), %v2333_v0  ;;  %2252 = vset.pattern.permute.xlu1 (!%p140_p2), %v2333_v0  ;;  %v1718_v35 = vld [vmem:[%s2676_s2 + $0x10] sm:$0xff] (!%p140_p2)  ;;  %v2287_v37 = vld [vmem:[%s2675_s1 + $0x80] sm:$0xff] (!%p140_p2)   ;;  %v2289_v45 = vld [vmem:[%s2675_s1 + $0x88] sm:$0xff] (!%p140_p2)   ;;  %s1930_s17 = sshll.u32 (!%p140_p2), %s1923_s13, 2 }
   0x8   : > { %v2288_v42 = vld [vmem:[%s2675_s1 + $0xc0] sm:$0xff] (!%p140_p2)   ;;  %v2290_v48 = vld [vmem:[%s2675_s1 + $0xc8] sm:$0xff] (!%p140_p2)   ;;  %p173_p4 = scmp.lt.s32.totalorder (!%p140_p2), %s1930_s17, 7 }
   0x9   : > { %v2291_v50 = vld [vmem:[%s2675_s1] sm:$0xff] (!%p140_p2)   ;;  %v2293_v55 = vld [vmem:[%s2675_s1 + $0x8] sm:$0xff] (!%p140_p2)  }
   0xa   : > { %v2292_v53 = vld [vmem:[%s2675_s1 + $0x60] sm:$0xff] (!%p140_p2)   ;;  %v2294_v57 = vld [vmem:[%s2675_s1 + $0x68] sm:$0xff] (!%p140_p2)  }
   0xb   : > { %v2295_v59 = vld [vmem:[%s2675_s1 + $0x20] sm:$0xff] (!%p140_p2)  }
   0xc   : > { %v2296_v62 = vld [vmem:[%s2675_s1 + $0xe0] sm:$0xff] (!%p140_p2)  }
   0xd   : > { %s2679_s14 = smov (!%p166_p3, %s1928_s14), 15  ;;  %s2681_s17 = smov (!%p173_p4, %s1930_s17), 7 }
   0xe   : > { %s2240_s15 = smul.u32 24, %s2679_s14 }
  0x10   : > { %s2372_s18 = scalar_lea.vmem %s2674_s0, %s2240_s15 }
  0x11   : > { %v2375_v1 = vld [vmem:[%s2372_s18 + $0x4] ss:$12 sps:$4 sm:$0xff]   ;;  %v2378_v2 = vld [vmem:[%s2372_s18] ss:$12 sps:$4 sm:$0xff]   ;;  %v2256_v3 = vld [vmem:[%s2372_s18 + $0x8] ss:$12 sps:$4 sm:$0xff]  }
  0x12   : > { %218 = vrot.lane.b32.xlu0 %v2375_v1, %s2334_s19  ;;  %216 = vrot.lane.b32.xlu1 %v2378_v2, %s2334_s19  ;;  %v2257_v4 = vld [vmem:[%s2372_s18 + $0x64] ss:$12 sps:$4 sm:$0xff]   ;;  %v2260_v5 = vld [vmem:[%s2372_s18 + $0x60] ss:$12 sps:$4 sm:$0xff]  }
  0x13   : > { %976 = vmatprep.subr.bf16.mxu0 %v2257_v4  ;;  %v2259_v7 = vld [vmem:[%s2372_s18 + $0x68] ss:$12 sps:$4 sm:$0xff]   ;;  %v2265_v9 = vld [vmem:[%s2372_s18 + $0x20] ss:$12 sps:$4 sm:$0xff]   ;;  %v2415_v13 = vld [vmem:[%s2372_s18 + $0x18] ss:$12 sps:$4 sm:$0xff]  }
  0x14   : > { %977 = vmatpush1.bf16.msra.mxu0 %v2260_v5  ;;  %v2396_v8 = vld [vmem:[%s2372_s18 + $0x1c] ss:$12 sps:$4 sm:$0xff]   ;;  %v2267_v12 = vld [vmem:[%s2372_s18 + $0x80] ss:$12 sps:$4 sm:$0xff]   ;;  %v2268_v14 = vld [vmem:[%s2372_s18 + $0x78] ss:$12 sps:$4 sm:$0xff]  }
  0x15   : > { %v2407_v11 = vld [vmem:[%s2372_s18 + $0x7c] ss:$12 sps:$4 sm:$0xff]   ;;  %v2421_v15 = vld [vmem:[%s2372_s18 + $0x34] ss:$12 sps:$4 sm:$0xff]   ;;  %v2273_v16 = vld [vmem:[%s2372_s18 + $0x38] ss:$12 sps:$4 sm:$0xff]  }
  0x16   : > { %220 = vrot.lane.b32.xlu0 %v2256_v3, %s2334_s19  ;;  %1059 = vrot.lane.b32.xlu1 %v2257_v4, %s2334_s19  ;;  %v2428_v17 = vld [vmem:[%s2372_s18 + $0x94] ss:$12 sps:$4 sm:$0xff]   ;;  %v2275_v18 = vld [vmem:[%s2372_s18 + $0x98] ss:$12 sps:$4 sm:$0xff]  }
  0x17   : > { %2029 = vmatmul.mubr.msk.bf16.vlgmr.msra.gmra.mrb[0].mxu0 %vm227_vm0, %v2285_v6  ;;  %v2435_v19 = vld [vmem:[%s2372_s18 + $0x30] ss:$12 sps:$4 sm:$0xff]   ;;  %v2444_v21 = vld [vmem:[%s2372_s18 + $0x4c] ss:$12 sps:$4 sm:$0xff]   ;;  %v2461_v25 = vld [vmem:[%s2372_s18 + $0x48] ss:$12 sps:$4 sm:$0xff]  }
  0x18   : > { %1018 = vmatprep.mubr.bf16.mxu0 %v2333_v0  ;;  %v2441_v20 = vld [vmem:[%s2372_s18 + $0x90] ss:$12 sps:$4 sm:$0xff]   ;;  %v2454_v23 = vld [vmem:[%s2372_s18 + $0xac] ss:$12 sps:$4 sm:$0xff]   ;;  %v2465_v26 = vld [vmem:[%s2372_s18 + $0xa8] ss:$12 sps:$4 sm:$0xff]  }
  0x19   : > { %v2281_v22 = vld [vmem:[%s2372_s18 + $0x50] ss:$12 sps:$4 sm:$0xff]   ;;  %v2297_v3 = vld [vmem:[%s2675_s1 + $0x28] sm:$0xff]  }
  0x1a   : > { %1061 = vrot.lane.b32.xlu0 %v2259_v7, %s2334_s19  ;;  %1057 = vrot.lane.b32.xlu1 %v2260_v5, %s2334_s19  ;;  %v2283_v24 = vld [vmem:[%s2372_s18 + $0xb0] ss:$12 sps:$4 sm:$0xff]   ;;  %v2298_v4 = vld [vmem:[%s2675_s1 + $0xe8] sm:$0xff]   ;;  %s2115_s18 = sshll.u32 %s2681_s17, 3 }
  0x1b   : > { %v2299_v5 = vld [vmem:[%s2675_s1 + $0xa0] sm:$0xff]   ;;  %s2665_s20 = scalar_lea.vmem %s2677_s3, %s2115_s18 }
  0x1e   : > { %477 = vrot.lane.b32.xlu0 %v2396_v8, %s2334_s19  ;;  %479 = vrot.lane.b32.xlu1 %v2265_v9, %s2334_s19 }
  0x1f   : > { %2030 = vmatmul.mubr.msk.bf16.gmra.mrb[4].mxu0 %vm227_vm0, %v2286_v10  ;;  %v2301_v10 = vld [vmem:[%s2675_s1 + $0xa8] sm:$0xff]  }
  0x20   : > { %1105 = vmatprep.mubr.bf16.mxu0 %v2333_v0 }
  0x22   : > { %1253 = vrot.lane.b32.xlu0 %v2407_v11, %s2334_s19  ;;  %1255 = vrot.lane.b32.xlu1 %v2267_v12, %s2334_s19  ;;  %v2302_v12 = vld [vmem:[%s2675_s1 + $0x58] sm:$0xff]  }
  0x26   : > { %475 = vrot.lane.b32.xlu0 %v2415_v13, %s2334_s19  ;;  %1251 = vrot.lane.b32.xlu1 %v2268_v14, %s2334_s19 }
  0x2a   : > { %671 = vrot.lane.b32.xlu0 %v2421_v15, %s2334_s19  ;;  %673 = vrot.lane.b32.xlu1 %v2273_v16, %s2334_s19 }
  0x2e   : > { %1447 = vrot.lane.b32.xlu0 %v2428_v17, %s2334_s19  ;;  %1449 = vrot.lane.b32.xlu1 %v2275_v18, %s2334_s19 }
  0x32   : > { %669 = vrot.lane.b32.xlu0 %v2435_v19, %s2334_s19  ;;  %1445 = vrot.lane.b32.xlu1 %v2441_v20, %s2334_s19 }
  0x36   : > { %865 = vrot.lane.b32.xlu0 %v2444_v21, %s2334_s19  ;;  %867 = vrot.lane.b32.xlu1 %v2281_v22, %s2334_s19  ;;  %v2305_v22 = vld [vmem:[%s2675_s1 + $0x18] sm:$0xff]  }
  0x3a   : > { %1641 = vrot.lane.b32.xlu0 %v2454_v23, %s2334_s19  ;;  %1643 = vrot.lane.b32.xlu1 %v2283_v24, %s2334_s19 }
  0x3e   : > { %863 = vrot.lane.b32.xlu0 %v2461_v25, %s2334_s19  ;;  %1639 = vrot.lane.b32.xlu1 %v2465_v26, %s2334_s19 }
  0x42   : > { %1722 = vperm.xlu0 %2251, %v1716_v29   ;;  %1727 = vperm.xlu1 %2252, %v1717_v30   ;;  %v2309_v29 = vld [vmem:[%s2675_s1 + $0x98] sm:$0xff]  }
  0x46   : > { %1737 = vperm.xlu0 %2251, %v1719_v32   ;;  %1732 = vperm.xlu1 %2252, %v1718_v35   ;;  %v2314_v35 = vld [vmem:[%s2675_s1 + $0xf8] sm:$0xff]  }
  0x84   : > { %v219_v27 = vpop.permute.xlu0 %218  ;;  %v217_v28 = vpop.permute.xlu1 %216 }
  0x85   : > { %v223_v36 = vsel %vm222_vm1, %v217_v28, %v219_v27 }
  0x88   : > { %v221_v31 = vpop.permute.xlu0 %220  ;;  %v1060_v33 = vpop.permute.xlu1 %1059 }
  0x89   : > { %v224_v34 = vsel %vm222_vm1, %v219_v27, %v221_v31  ;;  %v2308_v27 = vld [vmem:[%s2675_s1 + $0x70] sm:$0xff]  }
  0x8a   : > { %234 = vmatprep.subr.bf16.mxu1 %v224_v34  ;;  %v2311_v31 = vld [vmem:[%s2675_s1 + $0x30] sm:$0xff]   ;;  %v2313_v34 = vld [vmem:[%s2675_s1 + $0x38] sm:$0xff]  }
  0x8b   : > { %235 = vmatpush1.bf16.msra.mxu1 %v223_v36  ;;  %v2315_v36 = vld [vmem:[%s2675_s1 + $0xb0] sm:$0xff]  }
  0x8c   : > { %v1062_v38 = vpop.permute.xlu0 %1061  ;;  %305 = vmatprep.subr.bf16.mxu1 %v2375_v1  ;;  %v1058_v39 = vpop.permute.xlu1 %1057 }
  0x8d   : > { %v1064_v40 = vsel %vm222_vm1, %v1060_v33, %v1062_v38  ;;  %v1063_v41 = vsel %vm222_vm1, %v1058_v39, %v1060_v33  ;;  %v2312_v33 = vld [vmem:[%s2675_s1 + $0xf0] sm:$0xff]  }
  0x8e   : > { %1942 = vmatmul.mubr.msk.bf16.vlgmr.msra.gmra.mrb[0].mxu1 %vm227_vm0, %v2287_v37  ;;  %1073 = vmatprep.subr.bf16.mxu0 %v1064_v40  ;;  %v2316_v37 = vld [vmem:[%s2675_s1 + $0xb8] sm:$0xff]  }
  0x8f   : > { %306 = vmatpush1.bf16.msra.mxu1 %v2378_v2  ;;  %1074 = vmatpush1.bf16.msra.mxu0 %v1063_v41 }
  0x90   : > { %276 = vmatprep.mubr.bf16.mxu1 %v2333_v0  ;;  %v478_v43 = vpop.permute.xlu0 %477  ;;  %394 = vmatprep.subr.bf16.mxu1 %v2396_v8  ;;  %v480_v44 = vpop.permute.xlu1 %479  ;;  %v2300_v8 = vld [vmem:[%s2675_s1 + $0x50] sm:$0xff]  }
  0x91   : > { %1170 = vmatprep.subr.bf16.mxu0 %v2407_v11  ;;  %v482_v51 = vsel %vm222_vm1, %v478_v43, %v480_v44 }
  0x92   : > { %2038 = vmatmul.mubr.msk.bf16.vlgmr.msra.gmra.mrb[0].mxu0 %vm227_vm0, %v2288_v42 }
  0x93   : > { %1115 = vmatprep.mubr.bf16.mxu0 %v2333_v0  ;;  %1171 = vmatpush1.bf16.msra.mxu0 %v2268_v14  ;;  %v2303_v14 = vld [vmem:[%s2675_s1 + $0x10] sm:$0xff]  }
  0x94   : > { %v1254_v46 = vpop.permute.xlu0 %1253  ;;  %v1256_v47 = vpop.permute.xlu1 %1255 }
  0x95   : > { %v1258_v49 = vsel %vm222_vm1, %v1254_v46, %v1256_v47 }
  0x96   : > { %1943 = vmatmul.mubr.msk.bf16.gmra.mrb[4].mxu1 %vm227_vm0, %v2289_v45  ;;  %1267 = vmatprep.subr.bf16.mxu0 %v1258_v49 }
  0x97   : > { %337 = vmatprep.mubr.bf16.mxu1 %v2333_v0 }
  0x98   : > { %v1252_v52 = vpop.permute.xlu1 %1251  ;;  %v476_v56 = vpop.permute.xlu0 %475 }
  0x99   : > { %v1257_v54 = vsel %vm222_vm1, %v1252_v52, %v1254_v46  ;;  %v481_v61 = vsel %vm222_vm1, %v476_v56, %v478_v43 }
  0x9a   : > { %2039 = vmatmul.mubr.msk.bf16.gmra.mrb[4].mxu0 %vm227_vm0, %v2290_v48 }
  0x9b   : > { %1202 = vmatprep.mubr.bf16.mxu0 %v2333_v0 }
  0x9c   : > { %v672_v58 = vpop.permute.xlu0 %671  ;;  %v674_v60 = vpop.permute.xlu1 %673 }
  0x9d   : > { %v676_v6 = vsel %vm222_vm1, %v672_v58, %v674_v60 }
  0x9e   : > { %1946 = vmatmul.mubr.msk.bf16.vlgmr.msra.gmra.mrb[0].mxu1 %vm227_vm0, %v2291_v50 }
  0x9f   : > { %395 = vmatpush1.bf16.msra.mxu1 %v2415_v13  ;;  %347 = vmatprep.mubr.bf16.mxu1 %v2333_v0 }
  0xa0   : > { %491 = vmatprep.subr.bf16.mxu1 %v482_v51  ;;  %v1448_v63 = vpop.permute.xlu0 %1447  ;;  %v1450_v1 = vpop.permute.xlu1 %1449 }
  0xa1   : > { %v1452_v2 = vsel %vm222_vm1, %v1448_v63, %v1450_v1 }
  0xa2   : > { %2052 = vmatmul.mubr.msk.bf16.vlgmr.msra.gmra.mrb[0].mxu0 %vm227_vm0, %v2292_v53 }
  0xa3   : > { %1212 = vmatprep.mubr.bf16.mxu0 %v2333_v0  ;;  %1268 = vmatpush1.bf16.msra.mxu0 %v1257_v54 }
  0xa4   : > { %1364 = vmatprep.subr.bf16.mxu0 %v2428_v17  ;;  %v1446_v7 = vpop.permute.xlu1 %1445  ;;  %v670_v11 = vpop.permute.xlu0 %669  ;;  %v2304_v17 = vld [vmem:[%s2675_s1 + $0xd0] sm:$0xff]  }
  0xa5   : > { %v1451_v9 = vsel %vm222_vm1, %v1446_v7, %v1448_v63  ;;  %v675_v16 = vsel %vm222_vm1, %v670_v11, %v672_v58 }
  0xa6   : > { %1947 = vmatmul.mubr.msk.bf16.gmra.mrb[4].mxu1 %vm227_vm0, %v2293_v55 }
  0xa7   : > { %426 = vmatprep.mubr.bf16.mxu1 %v2333_v0 }
  0xa8   : > { %v866_v13 = vpop.permute.xlu0 %865 }
  0xaa   : > { %2053 = vmatmul.mubr.msk.bf16.gmra.mrb[4].mxu0 %vm227_vm0, %v2294_v57 }
  0xab   : > { %1299 = vmatprep.mubr.bf16.mxu0 %v2333_v0 }
  0xac   : > { %v1642_v18 = vpop.permute.xlu0 %1641 }
  0xae   : > { %1960 = vmatmul.mubr.msk.bf16.vlgmr.msra.gmra.mrb[0].mxu1 %vm227_vm0, %v2295_v59 }
  0xaf   : > { %492 = vmatpush1.bf16.msra.mxu1 %v481_v61  ;;  %436 = vmatprep.mubr.bf16.mxu1 %v2333_v0 }
  0xb0   : > { %588 = vmatprep.subr.bf16.mxu1 %v2421_v15  ;;  %v868_v15 = vpop.permute.xlu1 %867  ;;  %v864_v30 = vpop.permute.xlu0 %863 }
  0xb1   : > { %v870_v24 = vsel %vm222_vm1, %v866_v13, %v868_v15  ;;  %v869_v32 = vsel %vm222_vm1, %v864_v30, %v866_v13 }
  0xb2   : > { %2061 = vmatmul.mubr.msk.bf16.vlgmr.msra.gmra.mrb[0].mxu0 %vm227_vm0, %v2296_v62 }
  0xb3   : > { %1309 = vmatprep.mubr.bf16.mxu0 %v2333_v0  ;;  %1365 = vmatpush1.bf16.msra.mxu0 %v2441_v20 }
  0xb4   : > { %1461 = vmatprep.subr.bf16.mxu0 %v1452_v2 }
  0xb6   : > { %1961 = vmatmul.mubr.msk.bf16.gmra.mrb[4].mxu1 %vm227_vm0, %v2297_v3 }
  0xb7   : > { %523 = vmatprep.mubr.bf16.mxu1 %v2333_v0 }
  0xba   : > { %2062 = vmatmul.mubr.msk.bf16.gmra.mrb[4].mxu0 %vm227_vm0, %v2298_v4 }
  0xbb   : > { %1396 = vmatprep.mubr.bf16.mxu0 %v2333_v0 }
  0xbe   : > { %1969 = vmatmul.mubr.msk.bf16.vlgmr.msra.gmra.mrb[0].mxu1 %vm227_vm0, %v2299_v5 }
  0xbf   : > { %589 = vmatpush1.bf16.msra.mxu1 %v2435_v19  ;;  %533 = vmatprep.mubr.bf16.mxu1 %v2333_v0  ;;  %v1644_v19 = vpop.permute.xlu1 %1643 }
  0xc0   : > { %685 = vmatprep.subr.bf16.mxu1 %v676_v6  ;;  %v1646_v20 = vsel %vm222_vm1, %v1642_v18, %v1644_v19 }
  0xc1   : > { %v1723_v47 = vpop.permute.xlu0 %1722 }
  0xc2   : > { %2075 = vmatmul.mubr.msk.bf16.vlgmr.msra.gmra.mrb[0].mxu0 %vm227_vm0, %v2300_v8 }
  0xc3   : > { %1406 = vmatprep.mubr.bf16.mxu0 %v2333_v0  ;;  %1462 = vmatpush1.bf16.msra.mxu0 %v1451_v9 }
  0xc4   : > { %1558 = vmatprep.subr.bf16.mxu0 %v2454_v23  ;;  %v2307_v23 = vld [vmem:[%s2675_s1 + $0x90] sm:$0xff]  }
  0xc5   : > { %v1738_v7 = vpop.permute.xlu0 %1737 }
  0xc6   : > { %1970 = vmatmul.mubr.msk.bf16.gmra.mrb[4].mxu1 %vm227_vm0, %v2301_v10 }
  0xc7   : > { %620 = vmatprep.mubr.bf16.mxu1 %v2333_v0 }
  0xca   : > { %2076 = vmatmul.mubr.msk.bf16.gmra.mrb[4].mxu0 %vm227_vm0, %v2302_v12 }
  0xcb   : > { %1493 = vmatprep.mubr.bf16.mxu0 %v2333_v0 }
  0xce   : > { %1983 = vmatmul.mubr.msk.bf16.vlgmr.msra.gmra.mrb[0].mxu1 %vm227_vm0, %v2303_v14 }
  0xcf   : > { %686 = vmatpush1.bf16.msra.mxu1 %v675_v16  ;;  %630 = vmatprep.mubr.bf16.mxu1 %v2333_v0 }
  0xd0   : > { %782 = vmatprep.subr.bf16.mxu1 %v2444_v21  ;;  %v2306_v21 = vld [vmem:[%s2675_s1 + $0xd8] sm:$0xff]  }
  0xd2   : > { %2084 = vmatmul.mubr.msk.bf16.vlgmr.msra.gmra.mrb[0].mxu0 %vm227_vm0, %v2304_v17 }
  0xd3   : > { %1503 = vmatprep.mubr.bf16.mxu0 %v2333_v0  ;;  %1559 = vmatpush1.bf16.msra.mxu0 %v2465_v26  ;;  %v1640_v26 = vpop.permute.xlu1 %1639 }
  0xd4   : > { %1655 = vmatprep.subr.bf16.mxu0 %v1646_v20  ;;  %v1645_v28 = vsel %vm222_vm1, %v1640_v26, %v1642_v18 }
  0xd6   : > { %1984 = vmatmul.mubr.msk.bf16.gmra.mrb[4].mxu1 %vm227_vm0, %v2305_v22 }
  0xd7   : > { %717 = vmatprep.mubr.bf16.mxu1 %v2333_v0  ;;  %v1728_v51 = vpop.permute.xlu1 %1727 }
  0xda   : > { %2085 = vmatmul.mubr.msk.bf16.gmra.mrb[4].mxu0 %vm227_vm0, %v2306_v21 }
  0xdb   : > { %1590 = vmatprep.mubr.bf16.mxu0 %v2333_v0  ;;  %v1733_v2 = vpop.permute.xlu1 %1732 }
  0xde   : > { %1992 = vmatmul.mubr.msk.bf16.vlgmr.msra.gmra.mrb[0].mxu1 %vm227_vm0, %v2307_v23 }
  0xdf   : > { %783 = vmatpush1.bf16.msra.mxu1 %v2461_v25  ;;  %727 = vmatprep.mubr.bf16.mxu1 %v2333_v0  ;;  %v2310_v25 = vld [vmem:[%s2675_s1 + $0x78] sm:$0xff]  }
  0xe0   : > { %879 = vmatprep.subr.bf16.mxu1 %v870_v24 }
  0xe2   : > { %2098 = vmatmul.mubr.msk.bf16.vlgmr.msra.gmra.mrb[0].mxu0 %vm227_vm0, %v2308_v27 }
  0xe3   : > { %1600 = vmatprep.mubr.bf16.mxu0 %v2333_v0  ;;  %1656 = vmatpush1.bf16.msra.mxu0 %v1645_v28 }
  0xe6   : > { %1993 = vmatmul.mubr.msk.bf16.gmra.mrb[4].mxu1 %vm227_vm0, %v2309_v29 }
  0xe7   : > { %814 = vmatprep.mubr.bf16.mxu1 %v2333_v0 }
  0xea   : > { %2099 = vmatmul.mubr.msk.bf16.gmra.mrb[4].mxu0 %vm227_vm0, %v2310_v25 }
  0xeb   : > { %1687 = vmatprep.mubr.bf16.mxu0 %v2333_v0 }
  0xee   : > { %2006 = vmatmul.mubr.msk.bf16.vlgmr.msra.gmra.mrb[0].mxu1 %vm227_vm0, %v2311_v31 }
  0xef   : > { %880 = vmatpush1.bf16.msra.mxu1 %v869_v32  ;;  %824 = vmatprep.mubr.bf16.mxu1 %v2333_v0 }
  0xf2   : > { %2107 = vmatmul.mubr.msk.bf16.vlgmr.msra.gmra.mrb[0].mxu0 %vm227_vm0, %v2312_v33 }
  0xf3   : > { %1697 = vmatprep.mubr.bf16.mxu0 %v2333_v0 }
  0xf6   : > { %2007 = vmatmul.mubr.msk.bf16.gmra.mrb[4].mxu1 %vm227_vm0, %v2313_v34 }
  0xf7   : > { %911 = vmatprep.mubr.bf16.mxu1 %v2333_v0 }
  0xfa   : > { %2108 = vmatmul.mubr.msk.bf16.gmra.mrb[4].mxu0 %vm227_vm0, %v2314_v35 }
  0xfe   : > { %2015 = vmatmul.mubr.msk.bf16.vlgmr.msra.gmra.mrb[0].mxu1 %vm227_vm0, %v2315_v36 }
  0xff   : > { %921 = vmatprep.mubr.bf16.mxu1 %v2333_v0 }
 0x106   : > { %2016 = vmatmul.mubr.msk.bf16.gmra.mrb[4].mxu1 %vm227_vm0, %v2316_v37 }
 0x1c5   : > { %v1689_v38 = vpop.f32.mrb[0].mxu0 }
 0x1c6   : > { %v1691_v39 = vpop.f32.mrb[1].mxu0 }
 0x1c7   : > { %v1693_v40 = vpop.f32.mrb[2].mxu0 }
 0x1c8   : > { %v1695_v41 = vpop.f32.mrb[3].mxu0 }
 0x1cd   : > { %v1699_v42 = vpop.f32.mrb[4].mxu0 }
 0x1ce   : > { %v1701_v43 = vpop.f32.mrb[5].mxu0 }
 0x1cf   : > { %v1703_v44 = vpop.f32.mrb[6].mxu0 }
 0x1d0   : > { %v1705_v45 = vpop.f32.mrb[7].mxu0 }
 0x1d1   : > { %v913_v46 = vpop.f32.mrb[0].mxu1 }
 0x1d2   : > { %v2120_v48 = vadd.f32 %v1689_v38, %v913_v46  ;;  %v915_v49 = vpop.f32.mrb[1].mxu1 }
 0x1d3   : > { %v2121_v50 = vadd.f32 %v1691_v39, %v915_v49  ;;  %v917_v0 = vpop.f32.mrb[2].mxu1 }
 0x1d4   : > { %v1740_v52 = vadd.f32 %v2120_v48, %v1723_v47  ;;  %v2122_v53 = vadd.f32 %v1693_v40, %v917_v0  ;;  %v919_v54 = vpop.f32.mrb[3].mxu1 }
 0x1d5   : > { %v1741_v55 = vadd.f32 %v2121_v50, %v1723_v47  ;;  %v2123_v56 = vadd.f32 %v1695_v41, %v919_v54 }
 0x1d6   : > { %v1742_v57 = vadd.f32 %v2122_v53, %v1728_v51 }
 0x1d7   : > { %v1743_v58 = vadd.f32 %v2123_v56, %v1728_v51  ;;  %v1748_v59 = vadd.f32 %v1741_v55, %v1740_v52 }
 0x1d9   : > { %v923_v60 = vpop.f32.mrb[4].mxu1  ;;  %1749 = vadd.xlane.f32.xlu1 %v1748_v59  ;;  %v1751_v61 = vadd.f32 %v1743_v58, %v1742_v57 }
 0x1da   : > { %v2124_v62 = vadd.f32 %v1699_v42, %v923_v60  ;;  %v925_v63 = vpop.f32.mrb[5].mxu1 }
 0x1db   : > { %v2125_v1 = vadd.f32 %v1701_v43, %v925_v63  ;;  %v927_v3 = vpop.f32.mrb[6].mxu1  ;;  %1752 = vadd.xlane.f32.xlu0 %v1751_v61 }
 0x1dc   : > { %v1744_v4 = vadd.f32 %v2124_v62, %v1733_v2  ;;  %v2126_v5 = vadd.f32 %v1703_v44, %v927_v3  ;;  %v929_v6 = vpop.f32.mrb[7].mxu1 }
 0x1dd   : > { %v1745_v8 = vadd.f32 %v2125_v1, %v1733_v2  ;;  %v2127_v9 = vadd.f32 %v1705_v45, %v929_v6 }
 0x1de   : > { %v1746_v10 = vadd.f32 %v2126_v5, %v1738_v7 }
 0x1df   : > { %v1747_v11 = vadd.f32 %v2127_v9, %v1738_v7  ;;  %v1754_v12 = vadd.f32 %v1745_v8, %v1744_v4 }
 0x1e1   : > { %1755 = vadd.xlane.f32.xlu0 %v1754_v12  ;;  %v1757_v13 = vadd.f32 %v1747_v11, %v1746_v10 }
 0x1e3   : > { %1758 = vadd.xlane.f32.xlu1 %v1757_v13 }
 0x266   : > { %v1750_v14 = vpop.xlane.xlu1 %1749 }
 0x267   : > { %v1761_v15 = vmul.f32 0.00390625, %v1750_v14 }
 0x268   : > { %v1753_v16 = vpop.xlane.xlu0 %1752 }
 0x269   : > { %v1765_v17 = vsub.f32 %v1740_v52, %v1761_v15  ;;  %v1766_v18 = vsub.f32 %v1741_v55, %v1761_v15  ;;  %v1762_v19 = vmul.f32 0.00390625, %v1753_v16 }
 0x26b   : > { %v1767_v20 = vsub.f32 %v1742_v57, %v1762_v19  ;;  %v1768_v22 = vsub.f32 %v1743_v58, %v1762_v19  ;;  %v1773_v21 = vmul.f32 %v1765_v17, %v1765_v17  ;;  %v1774_v23 = vmul.f32 %v1766_v18, %v1766_v18 }
 0x26d   : > { %v1781_v24 = vadd.f32 %v1774_v23, %v1773_v21  ;;  %v1775_v26 = vmul.f32 %v1767_v20, %v1767_v20  ;;  %v1776_v27 = vmul.f32 %v1768_v22, %v1768_v22 }
 0x26e   : > { %v1756_v28 = vpop.xlane.xlu0 %1755 }
 0x26f   : > { %v1763_v29 = vmul.f32 0.00390625, %v1756_v28  ;;  %1782 = vadd.xlane.f32.xlu0 %v1781_v24  ;;  %v1784_v25 = vadd.f32 %v1776_v27, %v1775_v26 }
 0x270   : > { %v1759_v30 = vpop.xlane.xlu1 %1758 }
 0x271   : > { %v1769_v31 = vsub.f32 %v1744_v4, %v1763_v29  ;;  %v1770_v32 = vsub.f32 %v1745_v8, %v1763_v29  ;;  %v1764_v33 = vmul.f32 0.00390625, %v1759_v30  ;;  %1785 = vadd.xlane.f32.xlu1 %v1784_v25 }
 0x273   : > { %v1771_v34 = vsub.f32 %v1746_v10, %v1764_v33  ;;  %v1772_v35 = vsub.f32 %v1747_v11, %v1764_v33  ;;  %v1777_v36 = vmul.f32 %v1769_v31, %v1769_v31  ;;  %v1778_v37 = vmul.f32 %v1770_v32, %v1770_v32 }
 0x275   : > { %v1787_v38 = vadd.f32 %v1778_v37, %v1777_v36  ;;  %v1779_v39 = vmul.f32 %v1771_v34, %v1771_v34  ;;  %v1780_v40 = vmul.f32 %v1772_v35, %v1772_v35 }
 0x277   : > { %1788 = vadd.xlane.f32.xlu0 %v1787_v38  ;;  %v1790_v41 = vadd.f32 %v1780_v40, %v1779_v39 }
 0x279   : > { %1791 = vadd.xlane.f32.xlu1 %v1790_v41 }
 0x2fc   : > { %v1783_v42 = vpop.xlane.xlu0 %1782 }
 0x2fd   : > { %v1793_v43 = vmul.f32 0.00390625, %v1783_v42 }
 0x2fe   : > { %v1786_v44 = vpop.xlane.xlu1 %1785 }
 0x2ff   : > { %v1797_v45 = vadd.f32 1e-05, %v1793_v43  ;;  %v1794_v46 = vmul.f32 0.00390625, %v1786_v44 }
 0x301   : > { %2317 = vrsqrt.f32 %v1797_v45  ;;  %v1798_v47 = vadd.f32 1e-05, %v1794_v46 }
 0x303   : > { %2319 = vrsqrt.f32 %v1798_v47 }
 0x304   : > { %v1789_v48 = vpop.xlane.xlu0 %1788 }
 0x305   : > { %v1795_v49 = vmul.f32 0.00390625, %v1789_v48 }
 0x306   : > { %v1792_v50 = vpop.xlane.xlu1 %1791 }
 0x307   : > { %v1799_v0 = vadd.f32 1e-05, %v1795_v49  ;;  %v1796_v51 = vmul.f32 0.00390625, %v1792_v50 }
 0x309   : > { %2321 = vrsqrt.f32 %v1799_v0  ;;  %v1800_v52 = vadd.f32 1e-05, %v1796_v51 }
 0x30b   : > { %v2318_v53 = vpop.eup %2317  ;;  %2323 = vrsqrt.f32 %v1800_v52 }
 0x30c   : > { %v1805_v54 = vmul.f32 %v2318_v53, %v1765_v17  ;;  %v1806_v55 = vmul.f32 %v2318_v53, %v1766_v18 }
 0x30d   : > { %v2320_v56 = vpop.eup %2319 }
 0x30e   : > { %vm1813_vm2 = vcmp.gt.f32.partialorder %v1805_v54, 0.0  ;;  %vm1814_vm3 = vcmp.gt.f32.partialorder %v1806_v55, 0.0  ;;  %v1821_v57 = vmul.f32 0.2, %v1805_v54  ;;  %v1822_v58 = vmul.f32 0.2, %v1806_v55 }
 0x30f   : > { %v1807_v59 = vmul.f32 %v2320_v56, %v1767_v20  ;;  %v1808_v60 = vmul.f32 %v2320_v56, %v1768_v22 }
 0x310   : > { %v1829_v61 = vsel %vm1813_vm2, %v1805_v54, %v1821_v57  ;;  %v1830_v62 = vsel %vm1814_vm3, %v1806_v55, %v1822_v58 }
 0x311   : > { %v2116_v63 = vpack.c.bf16 %v1830_v62, %v1829_v61  ;;  %vm1815_vm4 = vcmp.gt.f32.partialorder %v1807_v59, 0.0  ;;  %vm1816_vm5 = vcmp.gt.f32.partialorder %v1808_v60, 0.0  ;;  %v1823_v1 = vmul.f32 0.2, %v1807_v59 }
 0x312   : > { %v1824_v2 = vmul.f32 0.2, %v1808_v60 }
 0x313   : > { %v2322_v3 = vpop.eup %2321  ;;  %1861 = vst [vmem:[%s2665_s20] sm:$0xff] %v2116_v63  ;;  %v1831_v4 = vsel %vm1815_vm4, %v1807_v59, %v1823_v1 }
 0x314   : > { %v1832_v5 = vsel %vm1816_vm5, %v1808_v60, %v1824_v2  ;;  %v1809_v6 = vmul.f32 %v2322_v3, %v1769_v31  ;;  %v1810_v7 = vmul.f32 %v2322_v3, %v1770_v32 }
 0x315   : > { %v2324_v8 = vpop.eup %2323  ;;  %v2117_v9 = vpack.c.bf16 %v1832_v5, %v1831_v4 }
 0x316   : > { %vm1817_vm6 = vcmp.gt.f32.partialorder %v1809_v6, 0.0  ;;  %vm1818_vm7 = vcmp.gt.f32.partialorder %v1810_v7, 0.0  ;;  %v1825_v10 = vmul.f32 0.2, %v1809_v6  ;;  %v1826_v11 = vmul.f32 0.2, %v1810_v7 }
 0x317   : > { %1862 = vst [vmem:[%s2665_s20 + $0x8] sm:$0xff] %v2117_v9  ;;  %v1811_v12 = vmul.f32 %v2324_v8, %v1771_v34  ;;  %v1812_v13 = vmul.f32 %v2324_v8, %v1772_v35 }
 0x318   : > { %v1833_v14 = vsel %vm1817_vm6, %v1809_v6, %v1825_v10  ;;  %v1834_v15 = vsel %vm1818_vm7, %v1810_v7, %v1826_v11 }
 0x319   : > { %v2118_v16 = vpack.c.bf16 %v1834_v15, %v1833_v14  ;;  %vm1819_vm8 = vcmp.gt.f32.partialorder %v1811_v12, 0.0  ;;  %vm1820_vm9 = vcmp.gt.f32.partialorder %v1812_v13, 0.0  ;;  %v1827_v17 = vmul.f32 0.2, %v1811_v12 }
 0x31a   : > { %v1828_v18 = vmul.f32 0.2, %v1812_v13 }
 0x31b   : > { %1863 = vst [vmem:[%s2665_s20 + $0x10] sm:$0xff] %v2118_v16  ;;  %v1835_v19 = vsel %vm1819_vm8, %v1811_v12, %v1827_v17 }
 0x31c   : > { %v1836_v20 = vsel %vm1820_vm9, %v1812_v13, %v1828_v18 }
 0x31d   : > { %v2119_v22 = vpack.c.bf16 %v1836_v20, %v1835_v19 }
 0x31f   : > { %1864 = vst [vmem:[%s2665_s20 + $0x18] sm:$0xff] %v2119_v22 }
 0x320 PF: > { %s13_s12 = sadd.s32 1, %s2331_s12  }
 0x321   : > { %p10_p5 = scmp.ge.s32.totalorder %s13_s12, 4  }
 0x323   :  { %12 = sbr.rel (!%p10_p5) target bundleno = 1 (0x1), region = 84 }

// kernel: e_nlayers_forward.5
= control target key start
LH: loop header
LB: loop body
LE: loop exit
PB: predicated region body
PF: predicated region fallthrough
CT: control target
= control target key end

     0   :  { %s3731_s27 = smov 0   ;;  %s4199_s0 = inlined_call_operand.vmem [shape: bf16[16,32,72], index: 0, kind: input, shape index: {}]   ;;  %s4200_s1 = inlined_call_operand.vmem [shape: bf16[16,64,32], index: 1, kind: input, shape index: {}]   ;;  %s4201_s2 = inlined_call_operand.vmem [shape: f32[64,1], index: 2, kind: input, shape index: {}]   ;;  %s4202_s3 = inlined_call_operand.vmem [shape: f32[8,64], index: 3, kind: input, shape index: {}]   ;;  %s4203_s4 = inlined_call_operand.vmem [shape: f32[8,1], index: 4, kind: input, shape index: {}]   ;;  %s4204_s5 = inlined_call_operand.vmem [shape: f32[8,64], index: 5, kind: input, shape index: {}]   ;;  %s4205_s6 = inlined_call_operand.vmem [shape: f32[8,1], index: 6, kind: input, shape index: {}]   ;;  %s4206_s7 = inlined_call_operand.vmem [shape: f32[2,8,1], index: 7, kind: output, shape index: {0}]   ;;  %s4207_s8 = inlined_call_operand.vmem [shape: f32[2,8,1], index: 8, kind: output, shape index: {1}]  }
   0x1 LB: > { %s3737_s28 = sadd.s32 4294967295, %s3679_s27   ;;  %p2771_p0 = scmp.ge.s32.totalorder %s3679_s27, 1  ;;  %s3679_s27 = sphi %s3731_s27, %s19_s27  }
   0x2   : > { %p267_p1 = scmp.lt.s32.totalorder %s3679_s27, 3 }
   0x4   : > { %p268_p2 = pnand %p2771_p0, %p267_p1 }
   0x5   : > { %s2772_s29 = sshll.u32 (!%p268_p2), %s3737_s28, 3  ;;  %vm378_vm0 = vcmask (!%p268_p2), 261120   ;;  %v3592_v0 = vld [vmem:[%s4200_s1 + $0x160] sm:$0xff] (!%p268_p2)   ;;  %s3681_s16 = smov (!%p268_p2), 120   ;;  %v3593_v21 = vld [vmem:[%s4200_s1 + $0x168] sm:$0xff] (!%p268_p2)   ;;  %v3597_v22 = vld [vmem:[%s4200_s1 + $0x170] sm:$0xff] (!%p268_p2)  }
   0x6   : > { %271 = sbr.rel (%p268_p2) target bundleno = 1193 (0x4a9), region = 48  ;;  %p306_p3 = scmp.lt.s32.totalorder (!%p268_p2), %s2772_s29, 15  ;;  %3276 = vmatprep.mubr.msk.bf16.mxu0 (!%p268_p2), %vm378_vm0, %v3592_v0  ;;  %v3594_v1 = vld [vmem:[%s4200_s1 + $0x100] sm:$0xff] (!%p268_p2)   ;;  %v3596_v24 = vld [vmem:[%s4200_s1 + $0x108] sm:$0xff] (!%p268_p2)   ;;  %v3599_v25 = vld [vmem:[%s4200_s1 + $0x110] sm:$0xff] (!%p268_p2)   ;;  %v3682_v32 = vmov (!%p268_p2), 0  }
   0x7   : > { %3192 = vmatprep.mubr.msk.bf16.mxu1 (!%p268_p2), %vm378_vm0, %v3594_v1  ;;  %v3598_v27 = vld [vmem:[%s4200_s1 + $0x178] sm:$0xff] (!%p268_p2)   ;;  %v3601_v28 = vld [vmem:[%s4200_s1 + $0x80] sm:$0xff] (!%p268_p2)   ;;  %3576 = vset.pattern.permute.xlu1 (!%p268_p2), %v3682_v32  ;;  %v2313_v33 = vld [vmem:[%s4201_s2 + $0x8] sm:$0xff] (!%p268_p2)  ;;  %vm2368_vm1 = vcmask (!%p268_p2), 523264   ;;  %vm3684_vm10 = vmmov (!%p268_p2), 0   ;;  %p312_p4 = scmp.lt.s32.totalorder (!%p268_p2), %s3737_s28, 1 }
   0x8   : > { %v3600_v29 = vld [vmem:[%s4200_s1 + $0x118] sm:$0xff] (!%p268_p2)   ;;  %v2312_v30 = vld [vmem:[%s4201_s2] sm:$0xff] (!%p268_p2)  ;;  %3575 = vset.pattern.permute.xlu0 (!%p268_p2), %v3682_v32  ;;  %v3602_v34 = vld [vmem:[%s4200_s1 + $0x88] sm:$0xff] (!%p268_p2)   ;;  %vm2605_vm11 = vcmask (!%p268_p2), 7168  }
   0x9   : > { %v3603_v31 = vld [vmem:[%s4200_s1] sm:$0xff] (!%p268_p2)   ;;  %v2315_v35 = vld [vmem:[%s4201_s2 + $0x18] sm:$0xff] (!%p268_p2)  ;;  %v3605_v36 = vld [vmem:[%s4200_s1 + $0x90] sm:$0xff] (!%p268_p2)  }
   0xa   : > { %v2314_v37 = vld [vmem:[%s4201_s2 + $0x10] sm:$0xff] (!%p268_p2)  ;;  %v3604_v39 = vld [vmem:[%s4200_s1 + $0x8] sm:$0xff] (!%p268_p2)   ;;  %v2316_v42 = vld [vmem:[%s4201_s2 + $0x20] sm:$0xff] (!%p268_p2) }
   0xb   : > { %v2317_v40 = vld [vmem:[%s4201_s2 + $0x28] sm:$0xff] (!%p268_p2)  ;;  %v3607_v41 = vld [vmem:[%s4200_s1 + $0x10] sm:$0xff] (!%p268_p2)   ;;  %v3606_v44 = vld [vmem:[%s4200_s1 + $0x98] sm:$0xff] (!%p268_p2)  }
   0xc   : > { %v2319_v45 = vld [vmem:[%s4201_s2 + $0x38] sm:$0xff] (!%p268_p2)  ;;  %v3609_v46 = vld [vmem:[%s4200_s1 + $0x180] sm:$0xff] (!%p268_p2)   ;;  %v2318_v47 = vld [vmem:[%s4201_s2 + $0x30] sm:$0xff] (!%p268_p2) }
   0xd   : > { %s4209_s29 = smov (!%p306_p3, %s2772_s29), 15  ;;  %v3608_v48 = vld [vmem:[%s4200_s1 + $0x18] sm:$0xff]   ;;  %v3611_v50 = vld [vmem:[%s4200_s1 + $0x40] sm:$0xff]   ;;  %v3610_v51 = vld [vmem:[%s4200_s1 + $0x188] sm:$0xff]   ;;  %s4211_s28 = smov (!%p312_p4, %s3737_s28), 1 }
   0xe   : > { %s3073_s10 = sshll.u32 %s4209_s29, 4  ;;  %v3613_v52 = vld [vmem:[%s4200_s1 + $0x190] sm:$0xff]   ;;  %v3612_v54 = vld [vmem:[%s4200_s1 + $0x48] sm:$0xff]   ;;  %v3614_v56 = vld [vmem:[%s4200_s1 + $0x198] sm:$0xff]   ;;  %s2775_s21 = sshll.u32 %s4211_s28, 3 }
   0xf   : > { %s3752_s15 = scalar_lea.vmem %s4199_s0, %s3073_s10  ;;  %v3615_v55 = vld [vmem:[%s4200_s1 + $0x50] sm:$0xff]   ;;  %v3617_v58 = vld [vmem:[%s4200_s1 + $0xc0] sm:$0xff]   ;;  %v3616_v59 = vld [vmem:[%s4200_s1 + $0x58] sm:$0xff]   ;;  %s315_s26 = scalar_lea.vmem %s4206_s7, %s2775_s21 }
  0x10   : > { %v3755_v2 = vld [vmem:[%s3752_s15 + $0x30] sm:$0xff]   ;;  %v3759_v3 = vld [vmem:[%s3752_s15 + $0x38] sm:$0xff]   ;;  %v3579_v4 = vld [vmem:[%s3752_s15] sm:$0xff]   ;;  %s319_s28 = scalar_lea.vmem %s4207_s8, %s2775_s21 }
  0x11   : > { %1217 = vrot.lane.b32.xlu0 %v3755_v2, %s3681_s16  ;;  %372 = vrot.lane.b32.xlu1 %v3579_v4, %s3681_s16  ;;  %v3581_v5 = vld [vmem:[%s3752_s15 + $0x40] sm:$0xff]   ;;  %v3766_v6 = vld [vmem:[%s3752_s15 + $0x8] sm:$0xff]  }
  0x12   : > { %v3582_v7 = vld [vmem:[%s3752_s15 + $0x48] sm:$0xff]   ;;  %v3771_v8 = vld [vmem:[%s3752_s15 + $0x50] sm:$0xff]   ;;  %v3774_v9 = vld [vmem:[%s3752_s15 + $0x58] sm:$0xff]  }
  0x13   : > { %v3778_v10 = vld [vmem:[%s3752_s15 + $0x10] sm:$0xff]   ;;  %v3782_v11 = vld [vmem:[%s3752_s15 + $0x18] sm:$0xff]   ;;  %v3786_v12 = vld [vmem:[%s3752_s15 + $0x60] sm:$0xff]  }
  0x14   : > { %v3790_v13 = vld [vmem:[%s3752_s15 + $0x68] sm:$0xff]   ;;  %v3794_v14 = vld [vmem:[%s3752_s15 + $0x20] sm:$0xff]   ;;  %v3802_v16 = vld [vmem:[%s3752_s15 + $0x70] sm:$0xff]  }
  0x15   : > { %1219 = vrot.lane.b32.xlu0 %v3759_v3, %s3681_s16  ;;  %1468 = vrot.lane.b32.xlu1 %v3581_v5, %s3681_s16  ;;  %v3798_v15 = vld [vmem:[%s3752_s15 + $0x28] sm:$0xff]   ;;  %v3805_v17 = vld [vmem:[%s3752_s15 + $0x78] sm:$0xff]  }
  0x16   : > { %v3619_v60 = vld [vmem:[%s4200_s1 + $0x140] sm:$0xff]   ;;  %v3618_v61 = vld [vmem:[%s4200_s1 + $0xc8] sm:$0xff]   ;;  %v3621_v62 = vld [vmem:[%s4200_s1 + $0xd0] sm:$0xff]  }
  0x17   : > { %v3620_v63 = vld [vmem:[%s4200_s1 + $0x148] sm:$0xff]   ;;  %v3623_v0 = vld [vmem:[%s4200_s1 + $0x150] sm:$0xff]   ;;  %v3646_v32 = vld [vmem:[%s4200_s1 + $0x1b8] sm:$0xff]  }
  0x19   : > { %374 = vrot.lane.b32.xlu0 %v3766_v6, %s3681_s16  ;;  %1470 = vrot.lane.b32.xlu1 %v3582_v7, %s3681_s16 }
  0x1d   : > { %1719 = vrot.lane.b32.xlu0 %v3771_v8, %s3681_s16  ;;  %1721 = vrot.lane.b32.xlu1 %v3774_v9, %s3681_s16 }
  0x21   : > { %715 = vrot.lane.b32.xlu0 %v3778_v10, %s3681_s16  ;;  %717 = vrot.lane.b32.xlu1 %v3782_v11, %s3681_s16 }
  0x25   : > { %1970 = vrot.lane.b32.xlu0 %v3786_v12, %s3681_s16  ;;  %1972 = vrot.lane.b32.xlu1 %v3790_v13, %s3681_s16 }
  0x29   : > { %966 = vrot.lane.b32.xlu0 %v3794_v14, %s3681_s16  ;;  %968 = vrot.lane.b32.xlu1 %v3798_v15, %s3681_s16 }
  0x2d   : > { %2221 = vrot.lane.b32.xlu0 %v3802_v16, %s3681_s16  ;;  %2223 = vrot.lane.b32.xlu1 %v3805_v17, %s3681_s16 }
  0x31   : > { %2322 = vperm.xlu0 %3575, %v2312_v30   ;;  %2327 = vperm.xlu1 %3576, %v2313_v33   ;;  %v3644_v30 = vld [vmem:[%s4200_s1 + $0x68] sm:$0xff]   ;;  %v3648_v33 = vld [vmem:[%s4200_s1 + $0x78] sm:$0xff]  }
  0x35   : > { %2337 = vperm.xlu0 %3575, %v2315_v35   ;;  %2332 = vperm.xlu1 %3576, %v2314_v37   ;;  %v3653_v37 = vld [vmem:[%s4200_s1 + $0x1e0] sm:$0xff]  }
  0x39   : > { %2347 = vperm.xlu0 %3575, %v2317_v40   ;;  %2342 = vperm.xlu1 %3576, %v2316_v42   ;;  %v3656_v40 = vld [vmem:[%s4200_s1 + $0x1f8] sm:$0xff]  }
  0x3d   : > { %2357 = vperm.xlu0 %3575, %v2319_v45   ;;  %2352 = vperm.xlu1 %3576, %v2318_v47  }
  0x83   : > { %v1218_v18 = vpop.permute.xlu0 %1217  ;;  %v373_v19 = vpop.permute.xlu1 %372 }
  0x84   : > { %3272 = vmatprep.subr.bf16.mxu0 %v1218_v18  ;;  %3188 = vmatprep.subr.bf16.mxu1 %v373_v19 }
  0x85   : > { %3273 = vmatpush3.bf16.msra.mxu0 %v1218_v18  ;;  %3189 = vmatpush3.bf16.msra.mxu1 %v373_v19  ;;  %v3630_v18 = vld [vmem:[%s4200_s1 + $0x1d8] sm:$0xff]  }
  0x87   : > { %v1220_v20 = vpop.permute.xlu0 %1219  ;;  %v1469_v26 = vpop.permute.xlu1 %1468 }
  0x88   : > { %3274 = vmatprep.subr.bf16.mxu0 %v1220_v20 }
  0x89   : > { %3275 = vmatpush3.bf16.msra.mxu0 %v1220_v20  ;;  %v3632_v20 = vld [vmem:[%s4200_s1 + $0x38] sm:$0xff]  }
  0x8a   : > { %3284 = vmatprep.subr.bf16.mxu0 %v3581_v5 }
  0x8b   : > { %v375_v23 = vpop.permute.xlu0 %374  ;;  %v1471_v38 = vpop.permute.xlu1 %1470 }
  0x8c   : > { %3190 = vmatprep.subr.bf16.mxu1 %v375_v23  ;;  %3277 = vmatmul.mubr.msk.bf16.vlgmr.msra.gmra.mrb[0].mxu0 %vm378_vm0, %v3593_v21  ;;  %v3634_v21 = vld [vmem:[%s4200_s1 + $0xa8] sm:$0xff]  }
  0x8d   : > { %3191 = vmatpush3.bf16.msra.mxu1 %v375_v23  ;;  %3285 = vmatpush3.bf16.msra.mxu0 %v3581_v5  ;;  %v3625_v5 = vld [vmem:[%s4200_s1 + $0x1c0] sm:$0xff]   ;;  %v3636_v23 = vld [vmem:[%s4200_s1 + $0x128] sm:$0xff]  }
  0x8e   : > { %3280 = vmatprep.mubr.msk.bf16.mxu0 %vm378_vm0, %v3597_v22  ;;  %3286 = vmatprep.subr.bf16.mxu0 %v3582_v7  ;;  %v3637_v22 = vld [vmem:[%s4200_s1 + $0xb0] sm:$0xff]  }
  0x8f   : > { %3200 = vmatprep.subr.bf16.mxu1 %v3579_v4  ;;  %v1720_v43 = vpop.permute.xlu0 %1719  ;;  %v1722_v53 = vpop.permute.xlu1 %1721 }
  0x90   : > { %3193 = vmatmul.mubr.msk.bf16.vlgmr.msra.gmra.mrb[0].mxu1 %vm378_vm0, %v3596_v24  ;;  %v3639_v24 = vld [vmem:[%s4200_s1 + $0x130] sm:$0xff]  }
  0x91   : > { %3287 = vmatpush3.bf16.msra.mxu0 %v3582_v7  ;;  %3196 = vmatprep.mubr.msk.bf16.mxu1 %vm378_vm0, %v3599_v25  ;;  %v3638_v25 = vld [vmem:[%s4200_s1 + $0xb8] sm:$0xff]  }
  0x92   : > { %3201 = vmatpush3.bf16.msra.mxu1 %v3579_v4  ;;  %3296 = vmatprep.subr.bf16.mxu0 %v1469_v26  ;;  %v3622_v4 = vld [vmem:[%s4200_s1 + $0xd8] sm:$0xff]  }
  0x93   : > { %3202 = vmatprep.subr.bf16.mxu1 %v3766_v6  ;;  %v716_v49 = vpop.permute.xlu0 %715  ;;  %v718_v57 = vpop.permute.xlu1 %717 }
  0x94   : > { %3281 = vmatmul.mubr.msk.bf16.gmra.mrb[4].mxu0 %vm378_vm0, %v3598_v27  ;;  %v3640_v27 = vld [vmem:[%s4200_s1 + $0x138] sm:$0xff]  }
  0x95   : > { %3288 = vmatprep.mubr.msk.bf16.mxu0 %vm378_vm0, %v3601_v28  ;;  %v3643_v28 = vld [vmem:[%s4200_s1 + $0x60] sm:$0xff]  }
  0x96   : > { %3203 = vmatpush3.bf16.msra.mxu1 %v3766_v6  ;;  %v3624_v6 = vld [vmem:[%s4200_s1 + $0x158] sm:$0xff]  }
  0x97   : > { %3212 = vmatprep.subr.bf16.mxu1 %v3778_v10  ;;  %v1971_v1 = vpop.permute.xlu0 %1970 }
  0x98   : > { %3197 = vmatmul.mubr.msk.bf16.gmra.mrb[4].mxu1 %vm378_vm0, %v3600_v29  ;;  %v3645_v29 = vld [vmem:[%s4200_s1 + $0x1b0] sm:$0xff]  }
  0x99   : > { %3204 = vmatprep.mubr.msk.bf16.mxu1 %vm378_vm0, %v3603_v31 }
  0x9b   : > { %v967_v7 = vpop.permute.xlu0 %966 }
  0x9c   : > { %3289 = vmatmul.mubr.msk.bf16.vlgmr.msra.gmra.mrb[0].mxu0 %vm378_vm0, %v3602_v34  ;;  %v3651_v34 = vld [vmem:[%s4200_s1 + $0xf0] sm:$0xff]  }
  0x9d   : > { %3297 = vmatpush3.bf16.msra.mxu0 %v1469_v26  ;;  %3292 = vmatprep.mubr.msk.bf16.mxu0 %vm378_vm0, %v3605_v36  ;;  %v3641_v26 = vld [vmem:[%s4200_s1 + $0x1a0] sm:$0xff]   ;;  %v3652_v36 = vld [vmem:[%s4200_s1 + $0xf8] sm:$0xff]  }
  0x9e   : > { %3298 = vmatprep.subr.bf16.mxu0 %v1471_v38 }
  0x9f   : > { %v2222_v31 = vpop.permute.xlu0 %2221 }
  0xa0   : > { %3205 = vmatmul.mubr.msk.bf16.vlgmr.msra.gmra.mrb[0].mxu1 %vm378_vm0, %v3604_v39  ;;  %v3655_v39 = vld [vmem:[%s4200_s1 + $0x1f0] sm:$0xff]  }
  0xa1   : > { %3299 = vmatpush3.bf16.msra.mxu0 %v1471_v38  ;;  %3208 = vmatprep.mubr.msk.bf16.mxu1 %vm378_vm0, %v3607_v41  ;;  %v3654_v38 = vld [vmem:[%s4200_s1 + $0x1e8] sm:$0xff]  }
  0xa2   : > { %3213 = vmatpush3.bf16.msra.mxu1 %v3778_v10  ;;  %3308 = vmatprep.subr.bf16.mxu0 %v3771_v8  ;;  %v3629_v10 = vld [vmem:[%s4200_s1 + $0x1d0] sm:$0xff]  }
  0xa3   : > { %3214 = vmatprep.subr.bf16.mxu1 %v3782_v11 }
  0xa4   : > { %3293 = vmatmul.mubr.msk.bf16.gmra.mrb[4].mxu0 %vm378_vm0, %v3606_v44 }
  0xa5   : > { %3300 = vmatprep.mubr.msk.bf16.mxu0 %vm378_vm0, %v3609_v46 }
  0xa6   : > { %3215 = vmatpush3.bf16.msra.mxu1 %v3782_v11  ;;  %v1973_v11 = vpop.permute.xlu1 %1972 }
  0xa7   : > { %3224 = vmatprep.subr.bf16.mxu1 %v716_v49 }
  0xa8   : > { %3209 = vmatmul.mubr.msk.bf16.gmra.mrb[4].mxu1 %vm378_vm0, %v3608_v48 }
  0xa9   : > { %3216 = vmatprep.mubr.msk.bf16.mxu1 %vm378_vm0, %v3611_v50 }
  0xaa   : > { %v969_v19 = vpop.permute.xlu1 %968 }
  0xac   : > { %3301 = vmatmul.mubr.msk.bf16.vlgmr.msra.gmra.mrb[0].mxu0 %vm378_vm0, %v3610_v51 }
  0xad   : > { %3309 = vmatpush3.bf16.msra.mxu0 %v3771_v8  ;;  %3304 = vmatprep.mubr.msk.bf16.mxu0 %vm378_vm0, %v3613_v52  ;;  %v3627_v8 = vld [vmem:[%s4200_s1 + $0x20] sm:$0xff]  }
  0xae   : > { %3310 = vmatprep.subr.bf16.mxu0 %v3774_v9  ;;  %v2224_v35 = vpop.permute.xlu1 %2223 }
  0xb0   : > { %3217 = vmatmul.mubr.msk.bf16.vlgmr.msra.gmra.mrb[0].mxu1 %vm378_vm0, %v3612_v54 }
  0xb1   : > { %3311 = vmatpush3.bf16.msra.mxu0 %v3774_v9  ;;  %3220 = vmatprep.mubr.msk.bf16.mxu1 %vm378_vm0, %v3615_v55  ;;  %v3626_v9 = vld [vmem:[%s4200_s1 + $0x1c8] sm:$0xff]  }
  0xb2   : > { %3225 = vmatpush3.bf16.msra.mxu1 %v716_v49  ;;  %3320 = vmatprep.subr.bf16.mxu0 %v1720_v43  ;;  %v2323_v49 = vpop.permute.xlu0 %2322  ;;  %v2328_v50 = vpop.permute.xlu1 %2327 }
  0xb3   : > { %3226 = vmatprep.subr.bf16.mxu1 %v718_v57 }
  0xb4   : > { %3305 = vmatmul.mubr.msk.bf16.gmra.mrb[4].mxu0 %vm378_vm0, %v3614_v56 }
  0xb5   : > { %3312 = vmatprep.mubr.msk.bf16.mxu0 %vm378_vm0, %v3617_v58 }
  0xb6   : > { %3227 = vmatpush3.bf16.msra.mxu1 %v718_v57  ;;  %v2338_v54 = vpop.permute.xlu0 %2337  ;;  %v2333_v57 = vpop.permute.xlu1 %2332 }
  0xb7   : > { %3236 = vmatprep.subr.bf16.mxu1 %v3794_v14 }
  0xb8   : > { %3221 = vmatmul.mubr.msk.bf16.gmra.mrb[4].mxu1 %vm378_vm0, %v3616_v59 }
  0xb9   : > { %3228 = vmatprep.mubr.msk.bf16.mxu1 %vm378_vm0, %v3619_v60 }
  0xbc   : > { %3313 = vmatmul.mubr.msk.bf16.vlgmr.msra.gmra.mrb[0].mxu0 %vm378_vm0, %v3618_v61 }
  0xbd   : > { %3321 = vmatpush3.bf16.msra.mxu0 %v1720_v43  ;;  %3316 = vmatprep.mubr.msk.bf16.mxu0 %vm378_vm0, %v3621_v62 }
  0xbe   : > { %3322 = vmatprep.subr.bf16.mxu0 %v1722_v53 }
  0xc0   : > { %3229 = vmatmul.mubr.msk.bf16.vlgmr.msra.gmra.mrb[0].mxu1 %vm378_vm0, %v3620_v63 }
  0xc1   : > { %3323 = vmatpush3.bf16.msra.mxu0 %v1722_v53  ;;  %3232 = vmatprep.mubr.msk.bf16.mxu1 %vm378_vm0, %v3623_v0 }
  0xc2   : > { %3237 = vmatpush3.bf16.msra.mxu1 %v3794_v14  ;;  %3332 = vmatprep.subr.bf16.mxu0 %v3786_v12  ;;  %v3628_v14 = vld [vmem:[%s4200_s1 + $0x28] sm:$0xff]  }
  0xc3   : > { %3238 = vmatprep.subr.bf16.mxu1 %v3798_v15 }
  0xc4   : > { %3317 = vmatmul.mubr.msk.bf16.gmra.mrb[4].mxu0 %vm378_vm0, %v3622_v4 }
  0xc5   : > { %3324 = vmatprep.mubr.msk.bf16.mxu0 %vm378_vm0, %v3625_v5 }
  0xc6   : > { %3239 = vmatpush3.bf16.msra.mxu1 %v3798_v15  ;;  %v3631_v15 = vld [vmem:[%s4200_s1 + $0x30] sm:$0xff]  }
  0xc7   : > { %3248 = vmatprep.subr.bf16.mxu1 %v967_v7 }
  0xc8   : > { %3233 = vmatmul.mubr.msk.bf16.gmra.mrb[4].mxu1 %vm378_vm0, %v3624_v6 }
  0xc9   : > { %3240 = vmatprep.mubr.msk.bf16.mxu1 %vm378_vm0, %v3627_v8 }
  0xcc   : > { %3325 = vmatmul.mubr.msk.bf16.vlgmr.msra.gmra.mrb[0].mxu0 %vm378_vm0, %v3626_v9 }
  0xcd   : > { %3333 = vmatpush3.bf16.msra.mxu0 %v3786_v12  ;;  %3328 = vmatprep.mubr.msk.bf16.mxu0 %vm378_vm0, %v3629_v10  ;;  %v3633_v12 = vld [vmem:[%s4200_s1 + $0xa0] sm:$0xff]  }
  0xce   : > { %3334 = vmatprep.subr.bf16.mxu0 %v3790_v13 }
  0xd0   : > { %3241 = vmatmul.mubr.msk.bf16.vlgmr.msra.gmra.mrb[0].mxu1 %vm378_vm0, %v3628_v14 }
  0xd1   : > { %3335 = vmatpush3.bf16.msra.mxu0 %v3790_v13  ;;  %3244 = vmatprep.mubr.msk.bf16.mxu1 %vm378_vm0, %v3631_v15  ;;  %v3635_v13 = vld [vmem:[%s4200_s1 + $0x120] sm:$0xff]  }
  0xd2   : > { %3249 = vmatpush3.bf16.msra.mxu1 %v967_v7  ;;  %3344 = vmatprep.subr.bf16.mxu0 %v1971_v1  ;;  %v2343_v7 = vpop.permute.xlu1 %2342 }
  0xd3   : > { %3250 = vmatprep.subr.bf16.mxu1 %v969_v19 }
  0xd4   : > { %3329 = vmatmul.mubr.msk.bf16.gmra.mrb[4].mxu0 %vm378_vm0, %v3630_v18 }
  0xd5   : > { %3336 = vmatprep.mubr.msk.bf16.mxu0 %vm378_vm0, %v3633_v12 }
  0xd6   : > { %3251 = vmatpush3.bf16.msra.mxu1 %v969_v19 }
  0xd7   : > { %3260 = vmatprep.subr.bf16.mxu1 %v3755_v2 }
  0xd8   : > { %3245 = vmatmul.mubr.msk.bf16.gmra.mrb[4].mxu1 %vm378_vm0, %v3632_v20 }
  0xd9   : > { %3252 = vmatprep.mubr.msk.bf16.mxu1 %vm378_vm0, %v3635_v13 }
  0xdc   : > { %3337 = vmatmul.mubr.msk.bf16.vlgmr.msra.gmra.mrb[0].mxu0 %vm378_vm0, %v3634_v21 }
  0xdd   : > { %3345 = vmatpush3.bf16.msra.mxu0 %v1971_v1  ;;  %3340 = vmatprep.mubr.msk.bf16.mxu0 %vm378_vm0, %v3637_v22  ;;  %v2348_v1 = vpop.permute.xlu0 %2347  ;;  %v2353_v22 = vpop.permute.xlu1 %2352 }
  0xde   : > { %3346 = vmatprep.subr.bf16.mxu0 %v1973_v11 }
  0xe0   : > { %3253 = vmatmul.mubr.msk.bf16.vlgmr.msra.gmra.mrb[0].mxu1 %vm378_vm0, %v3636_v23 }
  0xe1   : > { %3347 = vmatpush3.bf16.msra.mxu0 %v1973_v11  ;;  %3256 = vmatprep.mubr.msk.bf16.mxu1 %vm378_vm0, %v3639_v24  ;;  %v2358_v21 = vpop.permute.xlu0 %2357 }
  0xe2   : > { %3261 = vmatpush3.bf16.msra.mxu1 %v3755_v2  ;;  %3356 = vmatprep.subr.bf16.mxu0 %v3802_v16  ;;  %v3642_v2 = vld [vmem:[%s4200_s1 + $0x1a8] sm:$0xff]  }
  0xe3   : > { %3262 = vmatprep.subr.bf16.mxu1 %v3759_v3 }
  0xe4   : > { %3341 = vmatmul.mubr.msk.bf16.gmra.mrb[4].mxu0 %vm378_vm0, %v3638_v25 }
  0xe5   : > { %3348 = vmatprep.mubr.msk.bf16.mxu0 %vm378_vm0, %v3641_v26 }
  0xe6   : > { %3263 = vmatpush3.bf16.msra.mxu1 %v3759_v3  ;;  %v3647_v3 = vld [vmem:[%s4200_s1 + $0x70] sm:$0xff]  }
  0xe8   : > { %3257 = vmatmul.mubr.msk.bf16.gmra.mrb[4].mxu1 %vm378_vm0, %v3640_v27 }
  0xe9   : > { %3264 = vmatprep.mubr.msk.bf16.mxu1 %vm378_vm0, %v3643_v28 }
  0xec   : > { %3349 = vmatmul.mubr.msk.bf16.vlgmr.msra.gmra.mrb[0].mxu0 %vm378_vm0, %v3642_v2 }
  0xed   : > { %3357 = vmatpush3.bf16.msra.mxu0 %v3802_v16  ;;  %3352 = vmatprep.mubr.msk.bf16.mxu0 %vm378_vm0, %v3645_v29  ;;  %v3649_v16 = vld [vmem:[%s4200_s1 + $0xe0] sm:$0xff]  }
  0xee   : > { %3358 = vmatprep.subr.bf16.mxu0 %v3805_v17 }
  0xf0   : > { %3265 = vmatmul.mubr.msk.bf16.vlgmr.msra.gmra.mrb[0].mxu1 %vm378_vm0, %v3644_v30 }
  0xf1   : > { %3359 = vmatpush3.bf16.msra.mxu0 %v3805_v17  ;;  %3268 = vmatprep.mubr.msk.bf16.mxu1 %vm378_vm0, %v3647_v3  ;;  %v3650_v17 = vld [vmem:[%s4200_s1 + $0xe8] sm:$0xff]  }
  0xf2   : > { %3368 = vmatprep.subr.bf16.mxu0 %v2222_v31 }
  0xf4   : > { %3353 = vmatmul.mubr.msk.bf16.gmra.mrb[4].mxu0 %vm378_vm0, %v3646_v32 }
  0xf5   : > { %3360 = vmatprep.mubr.msk.bf16.mxu0 %vm378_vm0, %v3649_v16 }
  0xf8   : > { %3269 = vmatmul.mubr.msk.bf16.gmra.mrb[4].mxu1 %vm378_vm0, %v3648_v33 }
  0xfc   : > { %3361 = vmatmul.mubr.msk.bf16.vlgmr.msra.gmra.mrb[0].mxu0 %vm378_vm0, %v3650_v17 }
  0xfd   : > { %3369 = vmatpush3.bf16.msra.mxu0 %v2222_v31  ;;  %3364 = vmatprep.mubr.msk.bf16.mxu0 %vm378_vm0, %v3651_v34 }
  0xfe   : > { %3370 = vmatprep.subr.bf16.mxu0 %v2224_v35 }
 0x101   : > { %3371 = vmatpush3.bf16.msra.mxu0 %v2224_v35 }
 0x104   : > { %3365 = vmatmul.mubr.msk.bf16.gmra.mrb[4].mxu0 %vm378_vm0, %v3652_v36 }
 0x105   : > { %3372 = vmatprep.mubr.msk.bf16.mxu0 %vm378_vm0, %v3653_v37 }
 0x10c   : > { %3373 = vmatmul.mubr.msk.bf16.vlgmr.msra.gmra.mrb[0].mxu0 %vm378_vm0, %v3654_v38 }
 0x10d   : > { %3376 = vmatprep.mubr.msk.bf16.mxu0 %vm378_vm0, %v3655_v39 }
 0x114   : > { %3377 = vmatmul.mubr.msk.bf16.gmra.mrb[4].mxu0 %vm378_vm0, %v3656_v40 }
 0x1c3   : > { %v3266_v41 = vpop.f32.mrb[0].mxu1 }
 0x1c4   : > { %v1149_v42 = vpop.f32.mrb[1].mxu1 }
 0x1c5   : > { %v3267_v43 = vpop.f32.mrb[2].mxu1 }
 0x1c6   : > { %v1152_v44 = vpop.f32.mrb[3].mxu1 }
 0x1cb   : > { %v3270_v45 = vpop.f32.mrb[4].mxu1 }
 0x1cc   : > { %v1165_v46 = vpop.f32.mrb[5].mxu1 }
 0x1cd   : > { %v3271_v47 = vpop.f32.mrb[6].mxu1 }
 0x1ce   : > { %v1168_v48 = vpop.f32.mrb[7].mxu1 }
 0x1df   : > { %v3374_v51 = vpop.f32.mrb[0].mxu0 }
 0x1e0   : > { %v3442_v52 = vadd.f32 %v3374_v51, %v3266_v41  ;;  %v2273_v53 = vpop.f32.mrb[1].mxu0 }
 0x1e1   : > { %v3443_v55 = vadd.f32 %v2273_v53, %v1149_v42  ;;  %v3375_v56 = vpop.f32.mrb[2].mxu0 }
 0x1e2   : > { %v3444_v58 = vadd.f32 %v3375_v56, %v3267_v43  ;;  %v2276_v59 = vpop.f32.mrb[3].mxu0  ;;  %v2362_v6 = vadd.f32 %v3442_v52, %v2333_v57 }
 0x1e3   : > { %v3445_v60 = vadd.f32 %v2276_v59, %v1152_v44  ;;  %v2360_v61 = vadd.f32 %v3443_v55, %v2323_v49 }
 0x1e4   : > { %v2363_v0 = vadd.f32 %v3444_v58, %v2338_v54  ;;  %v2375_v12 = vsel %vm2368_vm1, %v2362_v6, 0.0 }
 0x1e5   : > { %v2369_v62 = vsel %vm2368_vm1, %v2360_v61, 0.0  ;;  %v2361_v63 = vadd.f32 %v3445_v60, %v2328_v50 }
 0x1e6   : > { %2370 = vadd.xlane.f32.xlu1 %v2369_v62  ;;  %v2378_v14 = vsel %vm2368_vm1, %v2363_v0, 0.0 }
 0x1e7   : > { %v3378_v4 = vpop.f32.mrb[4].mxu0  ;;  %v2372_v5 = vsel %vm2368_vm1, %v2361_v63, 0.0 }
 0x1e8   : > { %v3446_v8 = vadd.f32 %v3378_v4, %v3270_v45  ;;  %v2289_v9 = vpop.f32.mrb[5].mxu0  ;;  %2373 = vadd.xlane.f32.xlu0 %v2372_v5 }
 0x1e9   : > { %v3447_v10 = vadd.f32 %v2289_v9, %v1165_v46  ;;  %v3379_v11 = vpop.f32.mrb[6].mxu0 }
 0x1ea   : > { %v3448_v15 = vadd.f32 %v3379_v11, %v3271_v47  ;;  %2379 = vadd.xlane.f32.xlu1 %v2378_v14  ;;  %v2292_v18 = vpop.f32.mrb[7].mxu0  ;;  %v2366_v26 = vadd.f32 %v3446_v8, %v2353_v22 }
 0x1eb   : > { %v3449_v19 = vadd.f32 %v2292_v18, %v1168_v48  ;;  %v2364_v20 = vadd.f32 %v3447_v10, %v2343_v7 }
 0x1ec   : > { %2376 = vadd.xlane.f32.xlu0 %v2375_v12  ;;  %v2367_v25 = vadd.f32 %v3448_v15, %v2358_v21  ;;  %v2387_v28 = vsel %vm2368_vm1, %v2366_v26, 0.0 }
 0x1ed   : > { %v2365_v13 = vadd.f32 %v3449_v19, %v2348_v1  ;;  %v2381_v24 = vsel %vm2368_vm1, %v2364_v20, 0.0 }
 0x1ee   : > { %v2390_v27 = vsel %vm2368_vm1, %v2367_v25, 0.0 }
 0x1ef   : > { %v2384_v23 = vsel %vm2368_vm1, %v2365_v13, 0.0 }
 0x1f0   : > { %2385 = vadd.xlane.f32.xlu1 %v2384_v23  ;;  %2382 = vadd.xlane.f32.xlu0 %v2381_v24 }
 0x1f4   : > { %2391 = vadd.xlane.f32.xlu1 %v2390_v27  ;;  %2388 = vadd.xlane.f32.xlu0 %v2387_v28 }
 0x273   : > { %v2371_v2 = vpop.xlane.xlu1 %2370 }
 0x274   : > { %v2394_v29 = vmul.f32 0.015625, %v2371_v2 }
 0x275   : > { %v2374_v30 = vpop.xlane.xlu0 %2373 }
 0x276   : > { %v4116_v3 = vsub.f32 %v2360_v61, %v2394_v29  ;;  %v2395_v31 = vmul.f32 0.015625, %v2374_v30 }
 0x277   : > { %v2380_v32 = vpop.xlane.xlu1 %2379 }
 0x278   : > { %v4118_v16 = vsub.f32 %v2361_v63, %v2395_v31  ;;  %v2397_v33 = vmul.f32 0.015625, %v2380_v32  ;;  %v2410_v17 = vmul.f32 %v4116_v3, %v4116_v3 }
 0x279   : > { %v2377_v34 = vpop.xlane.xlu0 %2376 }
 0x27a   : > { %v4122_v35 = vsub.f32 %v2363_v0, %v2397_v33  ;;  %v2396_v36 = vmul.f32 0.015625, %v2377_v34  ;;  %v2418_v37 = vsel %vm2368_vm1, %v2410_v17, 0.0  ;;  %v2411_v38 = vmul.f32 %v4118_v16, %v4118_v16 }
 0x27b   : > { %2419 = vadd.xlane.f32.xlu0 %v2418_v37 }
 0x27c   : > { %v4127_v39 = vsub.f32 %v2362_v6, %v2396_v36  ;;  %v2421_v40 = vsel %vm2368_vm1, %v2411_v38, 0.0  ;;  %v2413_v41 = vmul.f32 %v4122_v35, %v4122_v35 }
 0x27d   : > { %2422 = vadd.xlane.f32.xlu1 %v2421_v40  ;;  %v2383_v42 = vpop.xlane.xlu0 %2382  ;;  %v2386_v43 = vpop.xlane.xlu1 %2385 }
 0x27e   : > { %v2398_v44 = vmul.f32 0.015625, %v2383_v42  ;;  %v2399_v45 = vmul.f32 0.015625, %v2386_v43  ;;  %v2412_v46 = vmul.f32 %v4127_v39, %v4127_v39  ;;  %v2427_v50 = vsel %vm2368_vm1, %v2413_v41, 0.0 }
 0x280   : > { %v4134_v47 = vsub.f32 %v2364_v20, %v2398_v44  ;;  %v4136_v48 = vsub.f32 %v2365_v13, %v2399_v45  ;;  %v2424_v49 = vsel %vm2368_vm1, %v2412_v46, 0.0 }
 0x281   : > { %v2389_v51 = vpop.xlane.xlu0 %2388  ;;  %2425 = vadd.xlane.f32.xlu0 %v2424_v49  ;;  %2428 = vadd.xlane.f32.xlu1 %v2427_v50  ;;  %v2392_v52 = vpop.xlane.xlu1 %2391 }
 0x282   : > { %v2400_v53 = vmul.f32 0.015625, %v2389_v51  ;;  %v2401_v54 = vmul.f32 0.015625, %v2392_v52  ;;  %v2414_v55 = vmul.f32 %v4134_v47, %v4134_v47  ;;  %v2415_v56 = vmul.f32 %v4136_v48, %v4136_v48 }
 0x284   : > { %v4144_v57 = vsub.f32 %v2366_v26, %v2400_v53  ;;  %v4146_v58 = vsub.f32 %v2367_v25, %v2401_v54  ;;  %v2430_v59 = vsel %vm2368_vm1, %v2414_v55, 0.0  ;;  %v2433_v60 = vsel %vm2368_vm1, %v2415_v56, 0.0 }
 0x285   : > { %2431 = vadd.xlane.f32.xlu0 %v2430_v59  ;;  %2434 = vadd.xlane.f32.xlu1 %v2433_v60 }
 0x286   : > { %v2416_v61 = vmul.f32 %v4144_v57, %v4144_v57  ;;  %v2417_v62 = vmul.f32 %v4146_v58, %v4146_v58 }
 0x288   : > { %v2436_v63 = vsel %vm2368_vm1, %v2416_v61, 0.0  ;;  %v2439_v0 = vsel %vm2368_vm1, %v2417_v62, 0.0 }
 0x289   : > { %2437 = vadd.xlane.f32.xlu0 %v2436_v63  ;;  %2440 = vadd.xlane.f32.xlu1 %v2439_v0 }
 0x308   : > { %v2420_v1 = vpop.xlane.xlu0 %2419 }
 0x309   : > { %v2442_v4 = vmul.f32 0.015625, %v2420_v1 }
 0x30a   : > { %v2423_v5 = vpop.xlane.xlu1 %2422 }
 0x30b   : > { %v2450_v6 = vadd.f32 1e-05, %v2442_v4  ;;  %v2443_v7 = vmul.f32 0.015625, %v2423_v5  ;;  %v3683_v4 = vmov 0.0|0.0  }
 0x30c   : > { %3418 = vmatprep.subr.bf16.mxu1 %v3683_v4 }
 0x30d   : > { %3657 = vrsqrt.f32 %v2450_v6  ;;  %v2451_v8 = vadd.f32 1e-05, %v2443_v7 }
 0x30e   : > { %v2426_v9 = vpop.xlane.xlu0 %2425  ;;  %v2429_v10 = vpop.xlane.xlu1 %2428 }
 0x30f   : > { %3659 = vrsqrt.f32 %v2451_v8  ;;  %v2444_v11 = vmul.f32 0.015625, %v2426_v9  ;;  %v2445_v14 = vmul.f32 0.015625, %v2429_v10 }
 0x311   : > { %v2452_v15 = vadd.f32 1e-05, %v2444_v11  ;;  %v2453_v18 = vadd.f32 1e-05, %v2445_v14 }
 0x312   : > { %v2432_v19 = vpop.xlane.xlu0 %2431  ;;  %v2435_v12 = vpop.xlane.xlu1 %2434 }
 0x313   : > { %3661 = vrsqrt.f32 %v2452_v15  ;;  %v2446_v20 = vmul.f32 0.015625, %v2432_v19  ;;  %v2447_v13 = vmul.f32 0.015625, %v2435_v12 }
 0x314   : > { %3663 = vrsqrt.f32 %v2453_v18 }
 0x315   : > { %v2454_v21 = vadd.f32 1e-05, %v2446_v20  ;;  %v2455_v22 = vadd.f32 1e-05, %v2447_v13 }
 0x316   : > { %v2438_v23 = vpop.xlane.xlu0 %2437  ;;  %v2441_v24 = vpop.xlane.xlu1 %2440 }
 0x317   : > { %v3658_v25 = vpop.eup %3657  ;;  %3665 = vrsqrt.f32 %v2454_v21  ;;  %v2448_v26 = vmul.f32 0.015625, %v2438_v23  ;;  %v2449_v27 = vmul.f32 0.015625, %v2441_v24 }
 0x318   : > { %3667 = vrsqrt.f32 %v2455_v22  ;;  %v2466_v28 = vmul.f32 %v3658_v25, %v4116_v3 }
 0x319   : > { %v3660_v2 = vpop.eup %3659  ;;  %v2456_v29 = vadd.f32 1e-05, %v2448_v26  ;;  %v2457_v30 = vadd.f32 1e-05, %v2449_v27  ;;  %v2530_v27 = vld [vmem:[%s4202_s3] sm:$0xff] }
 0x31a   : > { %vm2474_vm2 = vcmp.gt.f32.partialorder %v2466_v28, 0.0  ;;  %v2482_v31 = vmul.f32 0.2, %v2466_v28  ;;  %v2467_v32 = vmul.f32 %v3660_v2, %v4118_v16  ;;  %v2531_v2 = vld [vmem:[%s4203_s4] sm:$0xff] }
 0x31b   : > { %3669 = vrsqrt.f32 %v2456_v29 }
 0x31c   : > { %3671 = vrsqrt.f32 %v2457_v30  ;;  %v2490_v33 = vsel %vm2474_vm2, %v2466_v28, %v2482_v31  ;;  %vm2475_vm3 = vcmp.gt.f32.partialorder %v2467_v32, 0.0  ;;  %v2483_v17 = vmul.f32 0.2, %v2467_v32  ;;  %v2607_v28 = vld [vmem:[%s4204_s5] sm:$0xff] }
 0x31d   : > { %v3662_v34 = vpop.eup %3661  ;;  %v2498_v36 = vsel %vm2368_vm1, %v2490_v33, 0.0 }
 0x31e   : > { %v3664_v37 = vpop.eup %3663  ;;  %2499 = vadd.xlane.f32.xlu0 %v2498_v36  ;;  %v2491_v38 = vsel %vm2475_vm3, %v2467_v32, %v2483_v17  ;;  %v2468_v3 = vmul.f32 %v3662_v34, %v4127_v39  ;;  %v2608_v32 = vld [vmem:[%s4205_s6] sm:$0xff] }
 0x31f   : > { %v2501_v40 = vsel %vm2368_vm1, %v2491_v38, 0.0  ;;  %v2469_v41 = vmul.f32 %v3664_v37, %v4122_v35 }
 0x320   : > { %2502 = vadd.xlane.f32.xlu1 %v2501_v40  ;;  %vm2476_vm4 = vcmp.gt.f32.partialorder %v2468_v3, 0.0  ;;  %v2484_v16 = vmul.f32 0.2, %v2468_v3 }
 0x321   : > { %v3666_v42 = vpop.eup %3665  ;;  %vm2477_vm5 = vcmp.gt.f32.partialorder %v2469_v41, 0.0  ;;  %v2485_v43 = vmul.f32 0.2, %v2469_v41 }
 0x322   : > { %v3668_v44 = vpop.eup %3667  ;;  %v2492_v45 = vsel %vm2476_vm4, %v2468_v3, %v2484_v16  ;;  %v2470_v46 = vmul.f32 %v3666_v42, %v4134_v47 }
 0x323   : > { %v2504_v49 = vsel %vm2368_vm1, %v2492_v45, 0.0  ;;  %v2493_v50 = vsel %vm2477_vm5, %v2469_v41, %v2485_v43  ;;  %v2471_v51 = vmul.f32 %v3668_v44, %v4136_v48 }
 0x324   : > { %2505 = vadd.xlane.f32.xlu0 %v2504_v49  ;;  %v2507_v39 = vsel %vm2368_vm1, %v2493_v50, 0.0  ;;  %vm2478_vm6 = vcmp.gt.f32.partialorder %v2470_v46, 0.0  ;;  %v2486_v35 = vmul.f32 0.2, %v2470_v46 }
 0x325   : > { %v3670_v52 = vpop.eup %3669  ;;  %2508 = vadd.xlane.f32.xlu1 %v2507_v39  ;;  %vm2479_vm7 = vcmp.gt.f32.partialorder %v2471_v51, 0.0  ;;  %v2487_v53 = vmul.f32 0.2, %v2471_v51 }
 0x326   : > { %v3672_v54 = vpop.eup %3671  ;;  %v2494_v55 = vsel %vm2478_vm6, %v2470_v46, %v2486_v35  ;;  %v2472_v56 = vmul.f32 %v3670_v52, %v4144_v57 }
 0x327   : > { %v2510_v47 = vsel %vm2368_vm1, %v2494_v55, 0.0  ;;  %v2495_v59 = vsel %vm2479_vm7, %v2471_v51, %v2487_v53  ;;  %v2473_v60 = vmul.f32 %v3672_v54, %v4146_v58  ;;  %v3685_v58 = vmov 0.0  }
 0x328   : > { %2511 = vadd.xlane.f32.xlu0 %v2510_v47  ;;  %v2513_v48 = vsel %vm2368_vm1, %v2495_v59, 0.0  ;;  %vm2480_vm8 = vcmp.gt.f32.partialorder %v2472_v56, 0.0  ;;  %v2488_v61 = vmul.f32 0.2, %v2472_v56  ;;  %3396 = vmatprep.mubr.msk.f32.mxu1 %vm3684_vm10, %v3685_v58 }
 0x329   : > { %2514 = vadd.xlane.f32.xlu1 %v2513_v48  ;;  %vm2481_vm9 = vcmp.gt.f32.partialorder %v2473_v60, 0.0  ;;  %v2489_v62 = vmul.f32 0.2, %v2473_v60 }
 0x32a   : > { %v2496_v63 = vsel %vm2480_vm8, %v2472_v56, %v2488_v61 }
 0x32b   : > { %v2516_v0 = vsel %vm2368_vm1, %v2496_v63, 0.0  ;;  %v2497_v1 = vsel %vm2481_vm9, %v2473_v60, %v2489_v62 }
 0x32c   : > { %2517 = vadd.xlane.f32.xlu0 %v2516_v0  ;;  %v2519_v57 = vsel %vm2368_vm1, %v2497_v1, 0.0 }
 0x32d   : > { %2520 = vadd.xlane.f32.xlu1 %v2519_v57 }
 0x3ab   : > { %v2500_v5 = vpop.xlane.xlu0 %2499 }
 0x3ac   : > { %v2522_v7 = vmul.f32 0.015625, %v2500_v5 }
 0x3ad   : > { %v2503_v6 = vpop.xlane.xlu1 %2502 }
 0x3ae   : > { %v2523_v8 = vmul.f32 0.015625, %v2503_v6 }
 0x3b0   : > { %v3419_v9 = vpack.c.bf16 %v2523_v8, %v2522_v7 }
 0x3b1   : > { %v2506_v10 = vpop.xlane.xlu0 %2505 }
 0x3b2   : > { %v2524_v11 = vmul.f32 0.015625, %v2506_v10  ;;  %v2509_v14 = vpop.xlane.xlu1 %2508  ;;  %3420 = vmatpush3.bf16.msra.mxu1 %v3419_v9 }
 0x3b3   : > { %v2525_v15 = vmul.f32 0.015625, %v2509_v14  ;;  %3421 = vmatprep.subr.bf16.mxu1 %v3683_v4 }
 0x3b5   : > { %v3422_v18 = vpack.c.bf16 %v2525_v15, %v2524_v11  ;;  %v2512_v19 = vpop.xlane.xlu0 %2511 }
 0x3b6   : > { %v2526_v12 = vmul.f32 0.015625, %v2512_v19  ;;  %v2515_v20 = vpop.xlane.xlu1 %2514 }
 0x3b7   : > { %v2527_v13 = vmul.f32 0.015625, %v2515_v20  ;;  %3423 = vmatpush3.bf16.msra.mxu1 %v3422_v18 }
 0x3b8   : > { %3424 = vmatprep.subr.bf16.mxu1 %v3683_v4 }
 0x3b9   : > { %v3425_v21 = vpack.c.bf16 %v2527_v13, %v2526_v12  ;;  %v2518_v22 = vpop.xlane.xlu0 %2517 }
 0x3ba   : > { %v2528_v23 = vmul.f32 0.015625, %v2518_v22  ;;  %v2521_v24 = vpop.xlane.xlu1 %2520 }
 0x3bb   : > { %v2529_v25 = vmul.f32 0.015625, %v2521_v24  ;;  %3426 = vmatpush3.bf16.msra.mxu1 %v3425_v21 }
 0x3bc   : > { %3427 = vmatprep.subr.bf16.mxu1 %v3683_v4 }
 0x3bd   : > { %v3428_v26 = vpack.c.bf16 %v2529_v25, %v2528_v23 }
 0x3bf   : > { %3429 = vmatpush3.bf16.msra.mxu1 %v3428_v26 }
 0x3c0   : > { %3430 = vmatprep.subr.bf16.mxu1 %v3683_v4 }
 0x3c2   : > { %3397 = vmatmul.mubr.msk.f32.vlgmr.msra.gmra.mrb[8].mxu1 %vm2368_vm1, %v2530_v27 }
 0x3c3   : > { %3432 = vmatpush3.bf16.msra.mxu1 %v3419_v9  ;;  %3415 = vmatprep.mubr.msk.f32.mxu1 %vm3684_vm10, %v3685_v58 }
 0x3c4   : > { %3433 = vmatprep.subr.bf16.mxu1 %v3683_v4 }
 0x3c7   : > { %3435 = vmatpush3.bf16.msra.mxu1 %v3422_v18 }
 0x3c8   : > { %3436 = vmatprep.subr.bf16.mxu1 %v3683_v4 }
 0x3cb   : > { %3438 = vmatpush3.bf16.msra.mxu1 %v3425_v21 }
 0x3cc   : > { %3439 = vmatprep.subr.bf16.mxu1 %v3683_v4 }
 0x3cf   : > { %3441 = vmatpush3.bf16.msra.mxu1 %v3428_v26 }
 0x3d2   : > { %3416 = vmatmul.mubr.msk.f32.vlgmr.msra.gmra.mrb[10].mxu1 %vm2368_vm1, %v2607_v28 }
 0x495   : > { %v2601_v29 = vpop.f32.mrb[8].mxu1 }
 0x496   : > { %v2602_v30 = vadd.f32 %v2601_v29, %v2531_v2  ;;  %v3398_v31 = vpop.f32.mrb[9].mxu1 }
 0x498   : > { %2606 = vst.msk [vmem:[%s315_s26] sm:$0xff] %vm2605_vm11, %v2602_v30 }
 0x4a5   : > { %v2678_v33 = vpop.f32.mrb[10].mxu1 }
 0x4a6   : > { %v2679_v17 = vadd.f32 %v2678_v33, %v2608_v32  ;;  %v3417_v34 = vpop.f32.mrb[11].mxu1 }
 0x4a8   : > { %2682 = vst.msk [vmem:[%s319_s28] sm:$0xff] %vm2605_vm11, %v2679_v17 }
 0x4a9 PF: > { %s19_s27 = sadd.s32 1, %s3679_s27  }
 0x4aa   : > { %p16_p5 = scmp.ge.s32.totalorder %s19_s27, 4  }
 0x4ac   :  { %18 = sbr.rel (!%p16_p5) target bundleno = 1 (0x1), region = 112 }

</bundles_post_ra>
